<compile_context>
chip_gen: v7x
topology: tpu7x:2x2x1
jax: 0.10.0
libtpu: 0.0.40
codegen_flags: <defaults>
</compile_context>

<pallas_src>
import jax
import jax.numpy as jnp
from jax.experimental import pallas as pl
from jax.experimental.pallas import tpu as pltpu

# ----------------------------- static configuration -------------------------
IN_C = 3                                         # input channels
IMG_HW = 16                                      # small spatial size (spec default 256)
KH = KW = 3                                      # encoder conv kernel
STRIDE = 2
PAD = 1
ENC_OC = 8                                       # encoder output channels
OH = OW = (IMG_HW + 2 * PAD - KH) // STRIDE + 1  # 8
S = OH * OW                                      # 64 spatial positions
K_PATCH = KH * KW * IN_C                         # 27 im2col features
FEAT = ENC_OC * S                                # 512 == linear1 in_features
HIDDEN = 512
N_OUT = 2
N_OUT_PAD = 128                                  # lane-dense padded output width


# ----------------------------- Pallas kernel --------------------------------
def _polnet_kernel(pa_ref, wcb_ref, bcb_ref,
                   w1_ref, b1_ref, w2_ref, b2_ref,
                   w3_ref, b3_ref, w4_ref, b4_ref, o_ref):
    """Fused encoder-conv (VPU) + ReLU + 4-layer MLP head (MXU)."""
    b = pa_ref.shape[1]

    # --- encoder conv as 27 unrolled VPU multiply-adds ----------------------
    # pa_ref : [K_PATCH, B, FEAT]   patch value repeated across output channels
    # wcb_ref: [K_PATCH, FEAT]      conv weight repeated across spatial slots
    # Result feat[b, c*S + s] == torch NCHW-flatten of the conv output.
    feat = jnp.broadcast_to(bcb_ref[...], (b, FEAT))
    for k in range(K_PATCH):
        feat = feat + pa_ref[k] * wcb_ref[k:k + 1, :]
    feat = jnp.maximum(feat, 0.0)                      # encoder ReLU (f32)

    # --- 4-layer MLP head: bf16 weights, f32 accumulation -------------------
    def dense(h, w_ref, b_ref):
        y = jnp.dot(h.astype(w_ref.dtype), w_ref[...],
                    preferred_element_type=jnp.float32)
        return y + b_ref[...]

    h = jnp.maximum(dense(feat, w1_ref, b1_ref), 0.0)
    h = jnp.maximum(dense(h, w2_ref, b2_ref), 0.0)
    h = jnp.maximum(dense(h, w3_ref, b3_ref), 0.0)
    o_ref[...] = dense(h, w4_ref, b4_ref).astype(o_ref.dtype)   # [B, 128]


# ----------------------------- host-side glue --------------------------------
def _encoder_inputs(x_nhwc):
    """im2col + channel tiling so the in-kernel VPU conv writes its output
    directly in NCHW-flatten order.  Returns [K_PATCH, B, FEAT] float32."""
    b = x_nhwc.shape[0]
    xp = jnp.pad(x_nhwc, ((0, 0), (PAD, PAD), (PAD, PAD), (0, 0)))
    cols = []
    for i in range(KH):
        for j in range(KW):
            cols.append(xp[:, i:i + STRIDE * OH:STRIDE,
                           j:j + STRIDE * OW:STRIDE, :])
    # patch feature index k = (i*KW + j)*IN_C + cin  (matches conv_w rows)
    patches = jnp.concatenate(cols, axis=-1)            # [B, OH, OW, K_PATCH]
    patches = patches.reshape(b, S, K_PATCH)            # [B, S, K_PATCH]
    pa = jnp.transpose(patches, (2, 0, 1))              # [K_PATCH, B, S]
    # tile spatial vector ENC_OC times along lanes -> feature index c*S + s
    pa = jnp.tile(pa, (1, 1, ENC_OC))                   # [K_PATCH, B, FEAT]
    return pa.astype(jnp.float32)


def polnet_bc_forward(params, x_nhwc):
    """Forward pass of PolNetBC.  x_nhwc: [B, H, W, C] float32 -> [B, 2]."""
    b = x_nhwc.shape[0]
    pa = _encoder_inputs(x_nhwc)
    args = (pa, params["conv_w_bcast"], params["conv_b_bcast"],
            params["w1"], params["b1"], params["w2"], params["b2"],
            params["w3"], params["b3"], params["w4"], params["b4"])

    vmem = pl.BlockSpec(memory_space=pltpu.MemorySpace.VMEM)
    out = pl.pallas_call(
        _polnet_kernel,
        in_specs=[vmem] * len(args),
        out_specs=vmem,
        out_shape=jax.ShapeDtypeStruct((b, N_OUT_PAD), jnp.float32),
    )(*args)
    return out[:, :N_OUT]


def init_params(key):
    """Deterministic parameters.  Only jnp arrays (no Python ints) so the
    params pytree is jit-safe."""
    ks = jax.random.split(key, 10)

    # synthetic encoder conv: weight rows ordered (kh, kw, cin) to match im2col
    conv_w = jax.random.normal(ks[0], (K_PATCH, ENC_OC), jnp.float32) * 0.05
    conv_b = jax.random.normal(ks[1], (ENC_OC,), jnp.float32) * 0.01

    def linear(kw_, kb_, fi, fo):
        sc = 1.0 / jnp.sqrt(jnp.float32(fi))
        w = jax.random.uniform(kw_, (fi, fo), jnp.float32, -sc, sc)
        bb = jax.random.uniform(kb_, (fo,), jnp.float32, -sc, sc)
        return w, bb

    w1, b1 = linear(ks[2], ks[3], FEAT, HIDDEN)
    w2, b2 = linear(ks[4], ks[5], HIDDEN, HIDDEN)
    w3, b3 = linear(ks[6], ks[7], HIDDEN, HIDDEN)
    w4, b4 = linear(ks[8], ks[9], HIDDEN, N_OUT)

    # lane-dense final layer: pad [512, 2] -> [512, 128] with zero columns
    w4p = jnp.zeros((HIDDEN, N_OUT_PAD), jnp.float32).at[:, :N_OUT].set(w4)
    b4p = jnp.zeros((N_OUT_PAD,), jnp.float32).at[:N_OUT].set(b4)

    return {
        # encoder weights pre-broadcast for the NCHW-flatten-order VPU conv
        "conv_w_bcast": jnp.repeat(conv_w, S, axis=1),             # [27, 512] f32
        "conv_b_bcast": jnp.repeat(conv_b, S).reshape(1, FEAT),    # [1, 512]  f32
        # MLP head: bf16 weights (half the HBM streaming), f32 biases
        "w1": w1.astype(jnp.bfloat16), "b1": b1.reshape(1, -1),
        "w2": w2.astype(jnp.bfloat16), "b2": b2.reshape(1, -1),
        "w3": w3.astype(jnp.bfloat16), "b3": b3.reshape(1, -1),
        "w4": w4p.astype(jnp.bfloat16), "b4": b4p.reshape(1, -1),
    }


# -----------------------------------------------------------------------------
if __name__ == "__main__":
    batch = 2

    key = jax.random.PRNGKey(0)
    k_param, k_x = jax.random.split(key)

    params = init_params(k_param)
    x = jax.random.normal(k_x, (batch, IMG_HW, IMG_HW, IN_C), jnp.float32)

    out = jax.jit(polnet_bc_forward)(params, x)
    out = jax.block_until_ready(out)
    assert out.shape == (batch, N_OUT) and out.dtype == jnp.float32
    print("KERNEL_OK")
</pallas_src>

<mosaic_0001>
module attributes {stable_mosaic.version = 11 : i64} {
  func.func @_polnet_kernel(%arg0: memref<27x2x512xf32, #tpu.memory_space<vmem>>, %arg1: memref<27x512xf32, #tpu.memory_space<vmem>>, %arg2: memref<1x512xf32, #tpu.memory_space<vmem>>, %arg3: memref<512x512xbf16, #tpu.memory_space<vmem>>, %arg4: memref<1x512xf32, #tpu.memory_space<vmem>>, %arg5: memref<512x512xbf16, #tpu.memory_space<vmem>>, %arg6: memref<1x512xf32, #tpu.memory_space<vmem>>, %arg7: memref<512x512xbf16, #tpu.memory_space<vmem>>, %arg8: memref<1x512xf32, #tpu.memory_space<vmem>>, %arg9: memref<512x128xbf16, #tpu.memory_space<vmem>>, %arg10: memref<1x128xf32, #tpu.memory_space<vmem>>, %arg11: memref<2x128xf32, #tpu.memory_space<vmem>>) attributes {dimension_semantics = [], scalar_prefetch = 0 : i64, scratch_operands = 0 : i64, tpu.core_type = #tpu.core_type<tc>} {
    %c0 = arith.constant 0 : index
    %c0_0 = arith.constant 0 : index
    %0 = vector.load %arg2[%c0, %c0_0] : memref<1x512xf32, #tpu.memory_space<vmem>>, vector<1x512xf32>
    %1 = vector.shape_cast %0 : vector<1x512xf32> to vector<1x512xf32>
    %2 = vector.broadcast %1 : vector<1x512xf32> to vector<2x512xf32>
    %c0_1 = arith.constant 0 : index
    %c0_2 = arith.constant 0 : index
    %c0_3 = arith.constant 0 : index
    %3 = vector.load %arg0[%c0_1, %c0_2, %c0_3] : memref<27x2x512xf32, #tpu.memory_space<vmem>>, vector<1x2x512xf32>
    %4 = vector.shape_cast %3 : vector<1x2x512xf32> to vector<2x512xf32>
    %c0_4 = arith.constant 0 : index
    %c0_5 = arith.constant 0 : index
    %5 = vector.load %arg1[%c0_4, %c0_5] : memref<27x512xf32, #tpu.memory_space<vmem>>, vector<1x512xf32>
    %6 = vector.broadcast %5 : vector<1x512xf32> to vector<2x512xf32>
    %7 = arith.mulf %4, %6 : vector<2x512xf32>
    %8 = arith.addf %2, %7 : vector<2x512xf32>
    %c1 = arith.constant 1 : index
    %c0_6 = arith.constant 0 : index
    %c0_7 = arith.constant 0 : index
    %9 = vector.load %arg0[%c1, %c0_6, %c0_7] : memref<27x2x512xf32, #tpu.memory_space<vmem>>, vector<1x2x512xf32>
    %10 = vector.shape_cast %9 : vector<1x2x512xf32> to vector<2x512xf32>
    %c1_8 = arith.constant 1 : index
    %c0_9 = arith.constant 0 : index
    %11 = vector.load %arg1[%c1_8, %c0_9] : memref<27x512xf32, #tpu.memory_space<vmem>>, vector<1x512xf32>
    %12 = vector.broadcast %11 : vector<1x512xf32> to vector<2x512xf32>
    %13 = arith.mulf %10, %12 : vector<2x512xf32>
    %14 = arith.addf %8, %13 : vector<2x512xf32>
    %c2 = arith.constant 2 : index
    %c0_10 = arith.constant 0 : index
    %c0_11 = arith.constant 0 : index
    %15 = vector.load %arg0[%c2, %c0_10, %c0_11] : memref<27x2x512xf32, #tpu.memory_space<vmem>>, vector<1x2x512xf32>
    %16 = vector.shape_cast %15 : vector<1x2x512xf32> to vector<2x512xf32>
    %c2_12 = arith.constant 2 : index
    %c0_13 = arith.constant 0 : index
    %17 = vector.load %arg1[%c2_12, %c0_13] : memref<27x512xf32, #tpu.memory_space<vmem>>, vector<1x512xf32>
    %18 = vector.broadcast %17 : vector<1x512xf32> to vector<2x512xf32>
    %19 = arith.mulf %16, %18 : vector<2x512xf32>
    %20 = arith.addf %14, %19 : vector<2x512xf32>
    %c3 = arith.constant 3 : index
    %c0_14 = arith.constant 0 : index
    %c0_15 = arith.constant 0 : index
    %21 = vector.load %arg0[%c3, %c0_14, %c0_15] : memref<27x2x512xf32, #tpu.memory_space<vmem>>, vector<1x2x512xf32>
    %22 = vector.shape_cast %21 : vector<1x2x512xf32> to vector<2x512xf32>
    %c3_16 = arith.constant 3 : index
    %c0_17 = arith.constant 0 : index
    %23 = vector.load %arg1[%c3_16, %c0_17] : memref<27x512xf32, #tpu.memory_space<vmem>>, vector<1x512xf32>
    %24 = vector.broadcast %23 : vector<1x512xf32> to vector<2x512xf32>
    %25 = arith.mulf %22, %24 : vector<2x512xf32>
    %26 = arith.addf %20, %25 : vector<2x512xf32>
    %c4 = arith.constant 4 : index
    %c0_18 = arith.constant 0 : index
    %c0_19 = arith.constant 0 : index
    %27 = vector.load %arg0[%c4, %c0_18, %c0_19] : memref<27x2x512xf32, #tpu.memory_space<vmem>>, vector<1x2x512xf32>
    %28 = vector.shape_cast %27 : vector<1x2x512xf32> to vector<2x512xf32>
    %c4_20 = arith.constant 4 : index
    %c0_21 = arith.constant 0 : index
    %29 = vector.load %arg1[%c4_20, %c0_21] : memref<27x512xf32, #tpu.memory_space<vmem>>, vector<1x512xf32>
    %30 = vector.broadcast %29 : vector<1x512xf32> to vector<2x512xf32>
    %31 = arith.mulf %28, %30 : vector<2x512xf32>
    %32 = arith.addf %26, %31 : vector<2x512xf32>
    %c5 = arith.constant 5 : index
    %c0_22 = arith.constant 0 : index
    %c0_23 = arith.constant 0 : index
    %33 = vector.load %arg0[%c5, %c0_22, %c0_23] : memref<27x2x512xf32, #tpu.memory_space<vmem>>, vector<1x2x512xf32>
    %34 = vector.shape_cast %33 : vector<1x2x512xf32> to vector<2x512xf32>
    %c5_24 = arith.constant 5 : index
    %c0_25 = arith.constant 0 : index
    %35 = vector.load %arg1[%c5_24, %c0_25] : memref<27x512xf32, #tpu.memory_space<vmem>>, vector<1x512xf32>
    %36 = vector.broadcast %35 : vector<1x512xf32> to vector<2x512xf32>
    %37 = arith.mulf %34, %36 : vector<2x512xf32>
    %38 = arith.addf %32, %37 : vector<2x512xf32>
    %c6 = arith.constant 6 : index
    %c0_26 = arith.constant 0 : index
    %c0_27 = arith.constant 0 : index
    %39 = vector.load %arg0[%c6, %c0_26, %c0_27] : memref<27x2x512xf32, #tpu.memory_space<vmem>>, vector<1x2x512xf32>
    %40 = vector.shape_cast %39 : vector<1x2x512xf32> to vector<2x512xf32>
    %c6_28 = arith.constant 6 : index
    %c0_29 = arith.constant 0 : index
    %41 = vector.load %arg1[%c6_28, %c0_29] : memref<27x512xf32, #tpu.memory_space<vmem>>, vector<1x512xf32>
    %42 = vector.broadcast %41 : vector<1x512xf32> to vector<2x512xf32>
    %43 = arith.mulf %40, %42 : vector<2x512xf32>
    %44 = arith.addf %38, %43 : vector<2x512xf32>
    %c7 = arith.constant 7 : index
    %c0_30 = arith.constant 0 : index
    %c0_31 = arith.constant 0 : index
    %45 = vector.load %arg0[%c7, %c0_30, %c0_31] : memref<27x2x512xf32, #tpu.memory_space<vmem>>, vector<1x2x512xf32>
    %46 = vector.shape_cast %45 : vector<1x2x512xf32> to vector<2x512xf32>
    %c7_32 = arith.constant 7 : index
    %c0_33 = arith.constant 0 : index
    %47 = vector.load %arg1[%c7_32, %c0_33] : memref<27x512xf32, #tpu.memory_space<vmem>>, vector<1x512xf32>
    %48 = vector.broadcast %47 : vector<1x512xf32> to vector<2x512xf32>
    %49 = arith.mulf %46, %48 : vector<2x512xf32>
    %50 = arith.addf %44, %49 : vector<2x512xf32>
    %c8 = arith.constant 8 : index
    %c0_34 = arith.constant 0 : index
    %c0_35 = arith.constant 0 : index
    %51 = vector.load %arg0[%c8, %c0_34, %c0_35] : memref<27x2x512xf32, #tpu.memory_space<vmem>>, vector<1x2x512xf32>
    %52 = vector.shape_cast %51 : vector<1x2x512xf32> to vector<2x512xf32>
    %c8_36 = arith.constant 8 : index
    %c0_37 = arith.constant 0 : index
    %53 = vector.load %arg1[%c8_36, %c0_37] : memref<27x512xf32, #tpu.memory_space<vmem>>, vector<1x512xf32>
    %54 = vector.broadcast %53 : vector<1x512xf32> to vector<2x512xf32>
    %55 = arith.mulf %52, %54 : vector<2x512xf32>
    %56 = arith.addf %50, %55 : vector<2x512xf32>
    %c9 = arith.constant 9 : index
    %c0_38 = arith.constant 0 : index
    %c0_39 = arith.constant 0 : index
    %57 = vector.load %arg0[%c9, %c0_38, %c0_39] : memref<27x2x512xf32, #tpu.memory_space<vmem>>, vector<1x2x512xf32>
    %58 = vector.shape_cast %57 : vector<1x2x512xf32> to vector<2x512xf32>
    %c9_40 = arith.constant 9 : index
    %c0_41 = arith.constant 0 : index
    %59 = vector.load %arg1[%c9_40, %c0_41] : memref<27x512xf32, #tpu.memory_space<vmem>>, vector<1x512xf32>
    %60 = vector.broadcast %59 : vector<1x512xf32> to vector<2x512xf32>
    %61 = arith.mulf %58, %60 : vector<2x512xf32>
    %62 = arith.addf %56, %61 : vector<2x512xf32>
    %c10 = arith.constant 10 : index
    %c0_42 = arith.constant 0 : index
    %c0_43 = arith.constant 0 : index
    %63 = vector.load %arg0[%c10, %c0_42, %c0_43] : memref<27x2x512xf32, #tpu.memory_space<vmem>>, vector<1x2x512xf32>
    %64 = vector.shape_cast %63 : vector<1x2x512xf32> to vector<2x512xf32>
    %c10_44 = arith.constant 10 : index
    %c0_45 = arith.constant 0 : index
    %65 = vector.load %arg1[%c10_44, %c0_45] : memref<27x512xf32, #tpu.memory_space<vmem>>, vector<1x512xf32>
    %66 = vector.broadcast %65 : vector<1x512xf32> to vector<2x512xf32>
    %67 = arith.mulf %64, %66 : vector<2x512xf32>
    %68 = arith.addf %62, %67 : vector<2x512xf32>
    %c11 = arith.constant 11 : index
    %c0_46 = arith.constant 0 : index
    %c0_47 = arith.constant 0 : index
    %69 = vector.load %arg0[%c11, %c0_46, %c0_47] : memref<27x2x512xf32, #tpu.memory_space<vmem>>, vector<1x2x512xf32>
    %70 = vector.shape_cast %69 : vector<1x2x512xf32> to vector<2x512xf32>
    %c11_48 = arith.constant 11 : index
    %c0_49 = arith.constant 0 : index
    %71 = vector.load %arg1[%c11_48, %c0_49] : memref<27x512xf32, #tpu.memory_space<vmem>>, vector<1x512xf32>
    %72 = vector.broadcast %71 : vector<1x512xf32> to vector<2x512xf32>
    %73 = arith.mulf %70, %72 : vector<2x512xf32>
    %74 = arith.addf %68, %73 : vector<2x512xf32>
    %c12 = arith.constant 12 : index
    %c0_50 = arith.constant 0 : index
    %c0_51 = arith.constant 0 : index
    %75 = vector.load %arg0[%c12, %c0_50, %c0_51] : memref<27x2x512xf32, #tpu.memory_space<vmem>>, vector<1x2x512xf32>
    %76 = vector.shape_cast %75 : vector<1x2x512xf32> to vector<2x512xf32>
    %c12_52 = arith.constant 12 : index
    %c0_53 = arith.constant 0 : index
    %77 = vector.load %arg1[%c12_52, %c0_53] : memref<27x512xf32, #tpu.memory_space<vmem>>, vector<1x512xf32>
    %78 = vector.broadcast %77 : vector<1x512xf32> to vector<2x512xf32>
    %79 = arith.mulf %76, %78 : vector<2x512xf32>
    %80 = arith.addf %74, %79 : vector<2x512xf32>
    %c13 = arith.constant 13 : index
    %c0_54 = arith.constant 0 : index
    %c0_55 = arith.constant 0 : index
    %81 = vector.load %arg0[%c13, %c0_54, %c0_55] : memref<27x2x512xf32, #tpu.memory_space<vmem>>, vector<1x2x512xf32>
    %82 = vector.shape_cast %81 : vector<1x2x512xf32> to vector<2x512xf32>
    %c13_56 = arith.constant 13 : index
    %c0_57 = arith.constant 0 : index
    %83 = vector.load %arg1[%c13_56, %c0_57] : memref<27x512xf32, #tpu.memory_space<vmem>>, vector<1x512xf32>
    %84 = vector.broadcast %83 : vector<1x512xf32> to vector<2x512xf32>
    %85 = arith.mulf %82, %84 : vector<2x512xf32>
    %86 = arith.addf %80, %85 : vector<2x512xf32>
    %c14 = arith.constant 14 : index
    %c0_58 = arith.constant 0 : index
    %c0_59 = arith.constant 0 : index
    %87 = vector.load %arg0[%c14, %c0_58, %c0_59] : memref<27x2x512xf32, #tpu.memory_space<vmem>>, vector<1x2x512xf32>
    %88 = vector.shape_cast %87 : vector<1x2x512xf32> to vector<2x512xf32>
    %c14_60 = arith.constant 14 : index
    %c0_61 = arith.constant 0 : index
    %89 = vector.load %arg1[%c14_60, %c0_61] : memref<27x512xf32, #tpu.memory_space<vmem>>, vector<1x512xf32>
    %90 = vector.broadcast %89 : vector<1x512xf32> to vector<2x512xf32>
    %91 = arith.mulf %88, %90 : vector<2x512xf32>
    %92 = arith.addf %86, %91 : vector<2x512xf32>
    %c15 = arith.constant 15 : index
    %c0_62 = arith.constant 0 : index
    %c0_63 = arith.constant 0 : index
    %93 = vector.load %arg0[%c15, %c0_62, %c0_63] : memref<27x2x512xf32, #tpu.memory_space<vmem>>, vector<1x2x512xf32>
    %94 = vector.shape_cast %93 : vector<1x2x512xf32> to vector<2x512xf32>
    %c15_64 = arith.constant 15 : index
    %c0_65 = arith.constant 0 : index
    %95 = vector.load %arg1[%c15_64, %c0_65] : memref<27x512xf32, #tpu.memory_space<vmem>>, vector<1x512xf32>
    %96 = vector.broadcast %95 : vector<1x512xf32> to vector<2x512xf32>
    %97 = arith.mulf %94, %96 : vector<2x512xf32>
    %98 = arith.addf %92, %97 : vector<2x512xf32>
    %c16 = arith.constant 16 : index
    %c0_66 = arith.constant 0 : index
    %c0_67 = arith.constant 0 : index
    %99 = vector.load %arg0[%c16, %c0_66, %c0_67] : memref<27x2x512xf32, #tpu.memory_space<vmem>>, vector<1x2x512xf32>
    %100 = vector.shape_cast %99 : vector<1x2x512xf32> to vector<2x512xf32>
    %c16_68 = arith.constant 16 : index
    %c0_69 = arith.constant 0 : index
    %101 = vector.load %arg1[%c16_68, %c0_69] : memref<27x512xf32, #tpu.memory_space<vmem>>, vector<1x512xf32>
    %102 = vector.broadcast %101 : vector<1x512xf32> to vector<2x512xf32>
    %103 = arith.mulf %100, %102 : vector<2x512xf32>
    %104 = arith.addf %98, %103 : vector<2x512xf32>
    %c17 = arith.constant 17 : index
    %c0_70 = arith.constant 0 : index
    %c0_71 = arith.constant 0 : index
    %105 = vector.load %arg0[%c17, %c0_70, %c0_71] : memref<27x2x512xf32, #tpu.memory_space<vmem>>, vector<1x2x512xf32>
    %106 = vector.shape_cast %105 : vector<1x2x512xf32> to vector<2x512xf32>
    %c17_72 = arith.constant 17 : index
    %c0_73 = arith.constant 0 : index
    %107 = vector.load %arg1[%c17_72, %c0_73] : memref<27x512xf32, #tpu.memory_space<vmem>>, vector<1x512xf32>
    %108 = vector.broadcast %107 : vector<1x512xf32> to vector<2x512xf32>
    %109 = arith.mulf %106, %108 : vector<2x512xf32>
    %110 = arith.addf %104, %109 : vector<2x512xf32>
    %c18 = arith.constant 18 : index
    %c0_74 = arith.constant 0 : index
    %c0_75 = arith.constant 0 : index
    %111 = vector.load %arg0[%c18, %c0_74, %c0_75] : memref<27x2x512xf32, #tpu.memory_space<vmem>>, vector<1x2x512xf32>
    %112 = vector.shape_cast %111 : vector<1x2x512xf32> to vector<2x512xf32>
    %c18_76 = arith.constant 18 : index
    %c0_77 = arith.constant 0 : index
    %113 = vector.load %arg1[%c18_76, %c0_77] : memref<27x512xf32, #tpu.memory_space<vmem>>, vector<1x512xf32>
    %114 = vector.broadcast %113 : vector<1x512xf32> to vector<2x512xf32>
    %115 = arith.mulf %112, %114 : vector<2x512xf32>
    %116 = arith.addf %110, %115 : vector<2x512xf32>
    %c19 = arith.constant 19 : index
    %c0_78 = arith.constant 0 : index
    %c0_79 = arith.constant 0 : index
    %117 = vector.load %arg0[%c19, %c0_78, %c0_79] : memref<27x2x512xf32, #tpu.memory_space<vmem>>, vector<1x2x512xf32>
    %118 = vector.shape_cast %117 : vector<1x2x512xf32> to vector<2x512xf32>
    %c19_80 = arith.constant 19 : index
    %c0_81 = arith.constant 0 : index
    %119 = vector.load %arg1[%c19_80, %c0_81] : memref<27x512xf32, #tpu.memory_space<vmem>>, vector<1x512xf32>
    %120 = vector.broadcast %119 : vector<1x512xf32> to vector<2x512xf32>
    %121 = arith.mulf %118, %120 : vector<2x512xf32>
    %122 = arith.addf %116, %121 : vector<2x512xf32>
    %c20 = arith.constant 20 : index
    %c0_82 = arith.constant 0 : index
    %c0_83 = arith.constant 0 : index
    %123 = vector.load %arg0[%c20, %c0_82, %c0_83] : memref<27x2x512xf32, #tpu.memory_space<vmem>>, vector<1x2x512xf32>
    %124 = vector.shape_cast %123 : vector<1x2x512xf32> to vector<2x512xf32>
    %c20_84 = arith.constant 20 : index
    %c0_85 = arith.constant 0 : index
    %125 = vector.load %arg1[%c20_84, %c0_85] : memref<27x512xf32, #tpu.memory_space<vmem>>, vector<1x512xf32>
    %126 = vector.broadcast %125 : vector<1x512xf32> to vector<2x512xf32>
    %127 = arith.mulf %124, %126 : vector<2x512xf32>
    %128 = arith.addf %122, %127 : vector<2x512xf32>
    %c21 = arith.constant 21 : index
    %c0_86 = arith.constant 0 : index
    %c0_87 = arith.constant 0 : index
    %129 = vector.load %arg0[%c21, %c0_86, %c0_87] : memref<27x2x512xf32, #tpu.memory_space<vmem>>, vector<1x2x512xf32>
    %130 = vector.shape_cast %129 : vector<1x2x512xf32> to vector<2x512xf32>
    %c21_88 = arith.constant 21 : index
    %c0_89 = arith.constant 0 : index
    %131 = vector.load %arg1[%c21_88, %c0_89] : memref<27x512xf32, #tpu.memory_space<vmem>>, vector<1x512xf32>
    %132 = vector.broadcast %131 : vector<1x512xf32> to vector<2x512xf32>
    %133 = arith.mulf %130, %132 : vector<2x512xf32>
    %134 = arith.addf %128, %133 : vector<2x512xf32>
    %c22 = arith.constant 22 : index
    %c0_90 = arith.constant 0 : index
    %c0_91 = arith.constant 0 : index
    %135 = vector.load %arg0[%c22, %c0_90, %c0_91] : memref<27x2x512xf32, #tpu.memory_space<vmem>>, vector<1x2x512xf32>
    %136 = vector.shape_cast %135 : vector<1x2x512xf32> to vector<2x512xf32>
    %c22_92 = arith.constant 22 : index
    %c0_93 = arith.constant 0 : index
    %137 = vector.load %arg1[%c22_92, %c0_93] : memref<27x512xf32, #tpu.memory_space<vmem>>, vector<1x512xf32>
    %138 = vector.broadcast %137 : vector<1x512xf32> to vector<2x512xf32>
    %139 = arith.mulf %136, %138 : vector<2x512xf32>
    %140 = arith.addf %134, %139 : vector<2x512xf32>
    %c23 = arith.constant 23 : index
    %c0_94 = arith.constant 0 : index
    %c0_95 = arith.constant 0 : index
    %141 = vector.load %arg0[%c23, %c0_94, %c0_95] : memref<27x2x512xf32, #tpu.memory_space<vmem>>, vector<1x2x512xf32>
    %142 = vector.shape_cast %141 : vector<1x2x512xf32> to vector<2x512xf32>
    %c23_96 = arith.constant 23 : index
    %c0_97 = arith.constant 0 : index
    %143 = vector.load %arg1[%c23_96, %c0_97] : memref<27x512xf32, #tpu.memory_space<vmem>>, vector<1x512xf32>
    %144 = vector.broadcast %143 : vector<1x512xf32> to vector<2x512xf32>
    %145 = arith.mulf %142, %144 : vector<2x512xf32>
    %146 = arith.addf %140, %145 : vector<2x512xf32>
    %c24 = arith.constant 24 : index
    %c0_98 = arith.constant 0 : index
    %c0_99 = arith.constant 0 : index
    %147 = vector.load %arg0[%c24, %c0_98, %c0_99] : memref<27x2x512xf32, #tpu.memory_space<vmem>>, vector<1x2x512xf32>
    %148 = vector.shape_cast %147 : vector<1x2x512xf32> to vector<2x512xf32>
    %c24_100 = arith.constant 24 : index
    %c0_101 = arith.constant 0 : index
    %149 = vector.load %arg1[%c24_100, %c0_101] : memref<27x512xf32, #tpu.memory_space<vmem>>, vector<1x512xf32>
    %150 = vector.broadcast %149 : vector<1x512xf32> to vector<2x512xf32>
    %151 = arith.mulf %148, %150 : vector<2x512xf32>
    %152 = arith.addf %146, %151 : vector<2x512xf32>
    %c25 = arith.constant 25 : index
    %c0_102 = arith.constant 0 : index
    %c0_103 = arith.constant 0 : index
    %153 = vector.load %arg0[%c25, %c0_102, %c0_103] : memref<27x2x512xf32, #tpu.memory_space<vmem>>, vector<1x2x512xf32>
    %154 = vector.shape_cast %153 : vector<1x2x512xf32> to vector<2x512xf32>
    %c25_104 = arith.constant 25 : index
    %c0_105 = arith.constant 0 : index
    %155 = vector.load %arg1[%c25_104, %c0_105] : memref<27x512xf32, #tpu.memory_space<vmem>>, vector<1x512xf32>
    %156 = vector.broadcast %155 : vector<1x512xf32> to vector<2x512xf32>
    %157 = arith.mulf %154, %156 : vector<2x512xf32>
    %158 = arith.addf %152, %157 : vector<2x512xf32>
    %c26 = arith.constant 26 : index
    %c0_106 = arith.constant 0 : index
    %c0_107 = arith.constant 0 : index
    %159 = vector.load %arg0[%c26, %c0_106, %c0_107] : memref<27x2x512xf32, #tpu.memory_space<vmem>>, vector<1x2x512xf32>
    %160 = vector.shape_cast %159 : vector<1x2x512xf32> to vector<2x512xf32>
    %c26_108 = arith.constant 26 : index
    %c0_109 = arith.constant 0 : index
    %161 = vector.load %arg1[%c26_108, %c0_109] : memref<27x512xf32, #tpu.memory_space<vmem>>, vector<1x512xf32>
    %162 = vector.broadcast %161 : vector<1x512xf32> to vector<2x512xf32>
    %163 = arith.mulf %160, %162 : vector<2x512xf32>
    %164 = arith.addf %158, %163 : vector<2x512xf32>
    %cst = arith.constant 0.000000e+00 : f32
    %165 = vector.broadcast %cst : f32 to vector<2x512xf32>
    %166 = arith.maximumf %164, %165 : vector<2x512xf32>
    %167 = arith.truncf %166 : vector<2x512xf32> to vector<2x512xbf16>
    %c0_110 = arith.constant 0 : index
    %c0_111 = arith.constant 0 : index
    %168 = vector.load %arg3[%c0_110, %c0_111] : memref<512x512xbf16, #tpu.memory_space<vmem>>, vector<512x512xbf16>
    %cst_112 = arith.constant dense<0.000000e+00> : vector<2x512xf32>
    %169 = tpu.matmul %167, %168, %cst_112 {dimension_numbers = #tpu.dot_dimension_numbers<[1], [0], [0], [1], [0, 0, 1, 1], [], []>} : vector<2x512xbf16>, vector<512x512xbf16>, vector<2x512xf32> -> vector<2x512xf32>
    %c0_113 = arith.constant 0 : index
    %c0_114 = arith.constant 0 : index
    %170 = vector.load %arg4[%c0_113, %c0_114] : memref<1x512xf32, #tpu.memory_space<vmem>>, vector<1x512xf32>
    %171 = vector.broadcast %170 : vector<1x512xf32> to vector<2x512xf32>
    %172 = arith.addf %169, %171 : vector<2x512xf32>
    %cst_115 = arith.constant 0.000000e+00 : f32
    %173 = vector.broadcast %cst_115 : f32 to vector<2x512xf32>
    %174 = arith.maximumf %172, %173 : vector<2x512xf32>
    %175 = arith.truncf %174 : vector<2x512xf32> to vector<2x512xbf16>
    %c0_116 = arith.constant 0 : index
    %c0_117 = arith.constant 0 : index
    %176 = vector.load %arg5[%c0_116, %c0_117] : memref<512x512xbf16, #tpu.memory_space<vmem>>, vector<512x512xbf16>
    %cst_118 = arith.constant dense<0.000000e+00> : vector<2x512xf32>
    %177 = tpu.matmul %175, %176, %cst_118 {dimension_numbers = #tpu.dot_dimension_numbers<[1], [0], [0], [1], [0, 0, 1, 1], [], []>} : vector<2x512xbf16>, vector<512x512xbf16>, vector<2x512xf32> -> vector<2x512xf32>
    %c0_119 = arith.constant 0 : index
    %c0_120 = arith.constant 0 : index
    %178 = vector.load %arg6[%c0_119, %c0_120] : memref<1x512xf32, #tpu.memory_space<vmem>>, vector<1x512xf32>
    %179 = vector.broadcast %178 : vector<1x512xf32> to vector<2x512xf32>
    %180 = arith.addf %177, %179 : vector<2x512xf32>
    %cst_121 = arith.constant 0.000000e+00 : f32
    %181 = vector.broadcast %cst_121 : f32 to vector<2x512xf32>
    %182 = arith.maximumf %180, %181 : vector<2x512xf32>
    %183 = arith.truncf %182 : vector<2x512xf32> to vector<2x512xbf16>
    %c0_122 = arith.constant 0 : index
    %c0_123 = arith.constant 0 : index
    %184 = vector.load %arg7[%c0_122, %c0_123] : memref<512x512xbf16, #tpu.memory_space<vmem>>, vector<512x512xbf16>
    %cst_124 = arith.constant dense<0.000000e+00> : vector<2x512xf32>
    %185 = tpu.matmul %183, %184, %cst_124 {dimension_numbers = #tpu.dot_dimension_numbers<[1], [0], [0], [1], [0, 0, 1, 1], [], []>} : vector<2x512xbf16>, vector<512x512xbf16>, vector<2x512xf32> -> vector<2x512xf32>
    %c0_125 = arith.constant 0 : index
    %c0_126 = arith.constant 0 : index
    %186 = vector.load %arg8[%c0_125, %c0_126] : memref<1x512xf32, #tpu.memory_space<vmem>>, vector<1x512xf32>
    %187 = vector.broadcast %186 : vector<1x512xf32> to vector<2x512xf32>
    %188 = arith.addf %185, %187 : vector<2x512xf32>
    %cst_127 = arith.constant 0.000000e+00 : f32
    %189 = vector.broadcast %cst_127 : f32 to vector<2x512xf32>
    %190 = arith.maximumf %188, %189 : vector<2x512xf32>
    %191 = arith.truncf %190 : vector<2x512xf32> to vector<2x512xbf16>
    %c0_128 = arith.constant 0 : index
    %c0_129 = arith.constant 0 : index
    %192 = vector.load %arg9[%c0_128, %c0_129] : memref<512x128xbf16, #tpu.memory_space<vmem>>, vector<512x128xbf16>
    %cst_130 = arith.constant dense<0.000000e+00> : vector<2x128xf32>
    %193 = tpu.matmul %191, %192, %cst_130 {dimension_numbers = #tpu.dot_dimension_numbers<[1], [0], [0], [1], [0, 0, 1, 1], [], []>} : vector<2x512xbf16>, vector<512x128xbf16>, vector<2x128xf32> -> vector<2x128xf32>
    %c0_131 = arith.constant 0 : index
    %c0_132 = arith.constant 0 : index
    %194 = vector.load %arg10[%c0_131, %c0_132] : memref<1x128xf32, #tpu.memory_space<vmem>>, vector<1x128xf32>
    %195 = vector.broadcast %194 : vector<1x128xf32> to vector<2x128xf32>
    %196 = arith.addf %193, %195 : vector<2x128xf32>
    %c0_133 = arith.constant 0 : index
    %c0_134 = arith.constant 0 : index
    %197 = vector.load %arg11[%c0_133, %c0_134] : memref<2x128xf32, #tpu.memory_space<vmem>>, vector<2x128xf32>
    tpu.vector_store %arg11[%c0_133, %c0_134], %196 {strides = array<i32>} : memref<2x128xf32, #tpu.memory_space<vmem>>, vector<2x128xf32>,
    return
  }
}

</mosaic_0001>

<bundles_post_ra>
// kernel: tile.9
= control target key start
LH: loop header
LB: loop body
LE: loop exit
PB: predicated region body
PF: predicated region fallthrough
CT: control target
= control target key end

     0   :  { %s1453_s8 = smov 64   ;;  %vm3_vm0 = vcmask 523264   ;;  %vm193_vm1 = vcmask 1048064   ;;  %s2139_s0 = inlined_call_operand.vmem [shape: f32[27,2,8,64], index: 0, kind: input, shape index: {}]   ;;  %s2140_s1 = inlined_call_operand.vmem [shape: f32[27,2,512], index: 1, kind: output, shape index: {}]  }
   0x1   :  { %v1318_v0 = vld.sshfl [vmem:[%s2139_s0 + $0x1] sm:$0xff pattern:$0xe6c4a280]   ;;  %v1319_v2 = vld.sshfl [vmem:[%s2139_s0 + $0x11] sm:$0xff pattern:$0xe6c4a280]  }
   0x2   :  { %191 = vrot.lane.b32.xlu0 %v1318_v0, %s1453_s8  ;;  %v1320_v1 = vld.sshfl [vmem:[%s2139_s0 + $0x21] sm:$0xff pattern:$0xe6c4a280]   ;;  %v1321_v3 = vld.sshfl [vmem:[%s2139_s0 + $0x31] sm:$0xff pattern:$0xe6c4a280]  }
   0x3   :  { %216 = vrot.lane.b32.xlu1 %v1320_v1, %s1453_s8  ;;  %v1322_v4 = vld.sshfl [vmem:[%s2139_s0 + $0x41] sm:$0xff pattern:$0xe6c4a280]   ;;  %v1323_v5 = vld.sshfl [vmem:[%s2139_s0 + $0x51] sm:$0xff pattern:$0xe6c4a280]  }
   0x4   :  { %v1324_v6 = vld.sshfl [vmem:[%s2139_s0 + $0x61] sm:$0xff pattern:$0xe6c4a280]   ;;  %v1325_v7 = vld.sshfl [vmem:[%s2139_s0 + $0x71] sm:$0xff pattern:$0xe6c4a280]  }
   0x5   :  { %v1326_v8 = vld.sshfl [vmem:[%s2139_s0 + $0x81] sm:$0xff pattern:$0xe6c4a280]   ;;  %v1327_v9 = vld.sshfl [vmem:[%s2139_s0 + $0x91] sm:$0xff pattern:$0xe6c4a280]  }
   0x6   :  { %203 = vrot.lane.b32.xlu0 %v1319_v2, %s1453_s8  ;;  %v2_v10 = vld [vmem:[%s2139_s0] ss:$2 sm:$0xff]   ;;  %v1292_v12 = vld [vmem:[%s2139_s0 + $0x10] ss:$2 sm:$0xff]  }
   0x7   :  { %229 = vrot.lane.b32.xlu1 %v1321_v3, %s1453_s8  ;;  %v1293_v11 = vld [vmem:[%s2139_s0 + $0x20] ss:$2 sm:$0xff]   ;;  %4 = vst.msk [vmem:[#allocation0] ss:$8 sm:$0xf] %vm3_vm0, %v2_v10  }
   0x8   :  { %6 = vst.msk [vmem:[#allocation0 - $0x1f] ss:$8 sm:$0xf0] %vm3_vm0, %v2_v10   ;;  %18 = vst.msk [vmem:[#allocation0 + $0x40] ss:$8 sm:$0xf] %vm3_vm0, %v1293_v11  }
   0x9   :  { %20 = vst.msk [vmem:[#allocation0 + $0x21] ss:$8 sm:$0xf0] %vm3_vm0, %v1293_v11   ;;  %11 = vst.msk [vmem:[#allocation0 + $0x20] ss:$8 sm:$0xf] %vm3_vm0, %v1292_v12  }
   0xa   :  { %242 = vrot.lane.b32.xlu0 %v1322_v4, %s1453_s8  ;;  %13 = vst.msk [vmem:[#allocation0 + $0x1] ss:$8 sm:$0xf0] %vm3_vm0, %v1292_v12   ;;  %v1294_v13 = vld [vmem:[%s2139_s0 + $0x30] ss:$2 sm:$0xff]  }
   0xb   :  { %255 = vrot.lane.b32.xlu1 %v1323_v5, %s1453_s8  ;;  %v1295_v14 = vld [vmem:[%s2139_s0 + $0x40] ss:$2 sm:$0xff]   ;;  %v1296_v15 = vld [vmem:[%s2139_s0 + $0x50] ss:$2 sm:$0xff]  }
   0xc   :  { %v1328_v16 = vld.sshfl [vmem:[%s2139_s0 + $0xa1] sm:$0xff pattern:$0xe6c4a280]   ;;  %25 = vst.msk [vmem:[#allocation0 + $0x60] ss:$8 sm:$0xf] %vm3_vm0, %v1294_v13  }
   0xd   :  { %27 = vst.msk [vmem:[#allocation0 + $0x41] ss:$8 sm:$0xf0] %vm3_vm0, %v1294_v13   ;;  %32 = vst.msk [vmem:[#allocation0 + $0x80] ss:$8 sm:$0xf] %vm3_vm0, %v1295_v14  }
   0xe   :  { %268 = vrot.lane.b32.xlu0 %v1324_v6, %s1453_s8  ;;  %34 = vst.msk [vmem:[#allocation0 + $0x61] ss:$8 sm:$0xf0] %vm3_vm0, %v1295_v14   ;;  %39 = vst.msk [vmem:[#allocation0 + $0xa0] ss:$8 sm:$0xf] %vm3_vm0, %v1296_v15  }
   0xf   :  { %281 = vrot.lane.b32.xlu1 %v1325_v7, %s1453_s8  ;;  %41 = vst.msk [vmem:[#allocation0 + $0x81] ss:$8 sm:$0xf0] %vm3_vm0, %v1296_v15   ;;  %v1297_v17 = vld [vmem:[%s2139_s0 + $0x60] ss:$2 sm:$0xff]  }
  0x10   :  { %v1298_v18 = vld [vmem:[%s2139_s0 + $0x70] ss:$2 sm:$0xff]   ;;  %v1299_v19 = vld [vmem:[%s2139_s0 + $0x80] ss:$2 sm:$0xff]  }
  0x11   :  { %v1329_v20 = vld.sshfl [vmem:[%s2139_s0 + $0xb1] sm:$0xff pattern:$0xe6c4a280]   ;;  %46 = vst.msk [vmem:[#allocation0 + $0xc0] ss:$8 sm:$0xf] %vm3_vm0, %v1297_v17  }
  0x12   :  { %294 = vrot.lane.b32.xlu0 %v1326_v8, %s1453_s8  ;;  %48 = vst.msk [vmem:[#allocation0 + $0xa1] ss:$8 sm:$0xf0] %vm3_vm0, %v1297_v17   ;;  %53 = vst.msk [vmem:[#allocation0 + $0xe0] ss:$8 sm:$0xf] %vm3_vm0, %v1298_v18  }
  0x13   :  { %55 = vst.msk [vmem:[#allocation0 + $0xc1] ss:$8 sm:$0xf0] %vm3_vm0, %v1298_v18   ;;  %60 = vst.msk [vmem:[#allocation0 + $0x100] ss:$8 sm:$0xf] %vm3_vm0, %v1299_v19   ;;  %307 = vrot.lane.b32.xlu1 %v1327_v9, %s1453_s8 }
  0x14   :  { %62 = vst.msk [vmem:[#allocation0 + $0xe1] ss:$8 sm:$0xf0] %vm3_vm0, %v1299_v19   ;;  %v1300_v21 = vld [vmem:[%s2139_s0 + $0x90] ss:$2 sm:$0xff]  }
  0x15   :  { %v1301_v22 = vld [vmem:[%s2139_s0 + $0xa0] ss:$2 sm:$0xff]   ;;  %v1302_v23 = vld [vmem:[%s2139_s0 + $0xb0] ss:$2 sm:$0xff]  }
  0x16   :  { %67 = vst.msk [vmem:[#allocation0 + $0x120] ss:$8 sm:$0xf] %vm3_vm0, %v1300_v21   ;;  %69 = vst.msk [vmem:[#allocation0 + $0x101] ss:$8 sm:$0xf0] %vm3_vm0, %v1300_v21   ;;  %320 = vrot.lane.b32.xlu0 %v1328_v16, %s1453_s8 }
  0x17   :  { %74 = vst.msk [vmem:[#allocation0 + $0x140] ss:$8 sm:$0xf] %vm3_vm0, %v1301_v22   ;;  %76 = vst.msk [vmem:[#allocation0 + $0x121] ss:$8 sm:$0xf0] %vm3_vm0, %v1301_v22   ;;  %333 = vrot.lane.b32.xlu1 %v1329_v20, %s1453_s8 }
  0x18   :  { %81 = vst.msk [vmem:[#allocation0 + $0x160] ss:$8 sm:$0xf] %vm3_vm0, %v1302_v23   ;;  %83 = vst.msk [vmem:[#allocation0 + $0x141] ss:$8 sm:$0xf0] %vm3_vm0, %v1302_v23  }
  0x19   :  { %v1303_v24 = vld [vmem:[%s2139_s0 + $0xc0] ss:$2 sm:$0xff]   ;;  %v1304_v25 = vld [vmem:[%s2139_s0 + $0xd0] ss:$2 sm:$0xff]  }
  0x1a   :  { %v1305_v26 = vld [vmem:[%s2139_s0 + $0xe0] ss:$2 sm:$0xff]   ;;  %88 = vst.msk [vmem:[#allocation0 + $0x180] ss:$8 sm:$0xf] %vm3_vm0, %v1303_v24  }
  0x1b   :  { %90 = vst.msk [vmem:[#allocation0 + $0x161] ss:$8 sm:$0xf0] %vm3_vm0, %v1303_v24   ;;  %95 = vst.msk [vmem:[#allocation0 + $0x1a0] ss:$8 sm:$0xf] %vm3_vm0, %v1304_v25  }
  0x1c   :  { %97 = vst.msk [vmem:[#allocation0 + $0x181] ss:$8 sm:$0xf0] %vm3_vm0, %v1304_v25   ;;  %102 = vst.msk [vmem:[#allocation0 + $0x1c0] ss:$8 sm:$0xf] %vm3_vm0, %v1305_v26  }
  0x1d   :  { %104 = vst.msk [vmem:[#allocation0 + $0x1a1] ss:$8 sm:$0xf0] %vm3_vm0, %v1305_v26   ;;  %v1306_v27 = vld [vmem:[%s2139_s0 + $0xf0] ss:$2 sm:$0xff]  }
  0x1e   :  { %v1307_v28 = vld [vmem:[%s2139_s0 + $0x100] ss:$2 sm:$0xff]   ;;  %109 = vst.msk [vmem:[#allocation0 + $0x1e0] ss:$8 sm:$0xf] %vm3_vm0, %v1306_v27  }
  0x1f   :  { %111 = vst.msk [vmem:[#allocation0 + $0x1c1] ss:$8 sm:$0xf0] %vm3_vm0, %v1306_v27   ;;  %116 = vst.msk [vmem:[#allocation0 + $0x200] ss:$8 sm:$0xf] %vm3_vm0, %v1307_v28  }
  0x20   :  { %118 = vst.msk [vmem:[#allocation0 + $0x1e1] ss:$8 sm:$0xf0] %vm3_vm0, %v1307_v28   ;;  %v1330_v29 = vld.sshfl [vmem:[%s2139_s0 + $0xc1] sm:$0xff pattern:$0xe6c4a280]  }
  0x21   :  { %v1331_v30 = vld.sshfl [vmem:[%s2139_s0 + $0xd1] sm:$0xff pattern:$0xe6c4a280]   ;;  %v1308_v31 = vld [vmem:[%s2139_s0 + $0x110] ss:$2 sm:$0xff]   ;;  %346 = vrot.lane.b32.xlu0 %v1330_v29, %s1453_s8 }
  0x22   :  { %v1309_v32 = vld [vmem:[%s2139_s0 + $0x120] ss:$2 sm:$0xff]   ;;  %123 = vst.msk [vmem:[#allocation0 + $0x220] ss:$8 sm:$0xf] %vm3_vm0, %v1308_v31   ;;  %359 = vrot.lane.b32.xlu1 %v1331_v30, %s1453_s8 }
  0x23   :  { %125 = vst.msk [vmem:[#allocation0 + $0x201] ss:$8 sm:$0xf0] %vm3_vm0, %v1308_v31   ;;  %130 = vst.msk [vmem:[#allocation0 + $0x240] ss:$8 sm:$0xf] %vm3_vm0, %v1309_v32  }
  0x24   :  { %132 = vst.msk [vmem:[#allocation0 + $0x221] ss:$8 sm:$0xf0] %vm3_vm0, %v1309_v32   ;;  %v1332_v33 = vld.sshfl [vmem:[%s2139_s0 + $0xe1] sm:$0xff pattern:$0xe6c4a280]  }
  0x25   :  { %v1333_v34 = vld.sshfl [vmem:[%s2139_s0 + $0xf1] sm:$0xff pattern:$0xe6c4a280]   ;;  %v1310_v35 = vld [vmem:[%s2139_s0 + $0x130] ss:$2 sm:$0xff]   ;;  %372 = vrot.lane.b32.xlu0 %v1332_v33, %s1453_s8 }
  0x26   :  { %v1311_v36 = vld [vmem:[%s2139_s0 + $0x140] ss:$2 sm:$0xff]   ;;  %137 = vst.msk [vmem:[#allocation0 + $0x260] ss:$8 sm:$0xf] %vm3_vm0, %v1310_v35   ;;  %385 = vrot.lane.b32.xlu1 %v1333_v34, %s1453_s8 }
  0x27   :  { %139 = vst.msk [vmem:[#allocation0 + $0x241] ss:$8 sm:$0xf0] %vm3_vm0, %v1310_v35   ;;  %144 = vst.msk [vmem:[#allocation0 + $0x280] ss:$8 sm:$0xf] %vm3_vm0, %v1311_v36  }
  0x28   :  { %146 = vst.msk [vmem:[#allocation0 + $0x261] ss:$8 sm:$0xf0] %vm3_vm0, %v1311_v36   ;;  %v1334_v37 = vld.sshfl [vmem:[%s2139_s0 + $0x101] sm:$0xff pattern:$0xe6c4a280]  }
  0x29   :  { %v1335_v38 = vld.sshfl [vmem:[%s2139_s0 + $0x111] sm:$0xff pattern:$0xe6c4a280]   ;;  %v1312_v39 = vld [vmem:[%s2139_s0 + $0x150] ss:$2 sm:$0xff]   ;;  %398 = vrot.lane.b32.xlu0 %v1334_v37, %s1453_s8 }
  0x2a   :  { %v1313_v40 = vld [vmem:[%s2139_s0 + $0x160] ss:$2 sm:$0xff]   ;;  %151 = vst.msk [vmem:[#allocation0 + $0x2a0] ss:$8 sm:$0xf] %vm3_vm0, %v1312_v39   ;;  %411 = vrot.lane.b32.xlu1 %v1335_v38, %s1453_s8 }
  0x2b   :  { %153 = vst.msk [vmem:[#allocation0 + $0x281] ss:$8 sm:$0xf0] %vm3_vm0, %v1312_v39   ;;  %158 = vst.msk [vmem:[#allocation0 + $0x2c0] ss:$8 sm:$0xf] %vm3_vm0, %v1313_v40  }
  0x2c   :  { %160 = vst.msk [vmem:[#allocation0 + $0x2a1] ss:$8 sm:$0xf0] %vm3_vm0, %v1313_v40   ;;  %v1336_v41 = vld.sshfl [vmem:[%s2139_s0 + $0x121] sm:$0xff pattern:$0xe6c4a280]  }
  0x2d   :  { %v1337_v42 = vld.sshfl [vmem:[%s2139_s0 + $0x131] sm:$0xff pattern:$0xe6c4a280]   ;;  %v1314_v43 = vld [vmem:[%s2139_s0 + $0x170] ss:$2 sm:$0xff]   ;;  %424 = vrot.lane.b32.xlu0 %v1336_v41, %s1453_s8 }
  0x2e   :  { %v1315_v44 = vld [vmem:[%s2139_s0 + $0x180] ss:$2 sm:$0xff]   ;;  %165 = vst.msk [vmem:[#allocation0 + $0x2e0] ss:$8 sm:$0xf] %vm3_vm0, %v1314_v43   ;;  %437 = vrot.lane.b32.xlu1 %v1337_v42, %s1453_s8 }
  0x2f   :  { %167 = vst.msk [vmem:[#allocation0 + $0x2c1] ss:$8 sm:$0xf0] %vm3_vm0, %v1314_v43   ;;  %172 = vst.msk [vmem:[#allocation0 + $0x300] ss:$8 sm:$0xf] %vm3_vm0, %v1315_v44  }
  0x30   :  { %174 = vst.msk [vmem:[#allocation0 + $0x2e1] ss:$8 sm:$0xf0] %vm3_vm0, %v1315_v44   ;;  %v1338_v45 = vld.sshfl [vmem:[%s2139_s0 + $0x141] sm:$0xff pattern:$0xe6c4a280]  }
  0x31   :  { %v1339_v46 = vld.sshfl [vmem:[%s2139_s0 + $0x151] sm:$0xff pattern:$0xe6c4a280]   ;;  %v1316_v47 = vld [vmem:[%s2139_s0 + $0x190] ss:$2 sm:$0xff]   ;;  %450 = vrot.lane.b32.xlu0 %v1338_v45, %s1453_s8 }
  0x32   :  { %v1317_v48 = vld [vmem:[%s2139_s0 + $0x1a0] ss:$2 sm:$0xff]   ;;  %179 = vst.msk [vmem:[#allocation0 + $0x320] ss:$8 sm:$0xf] %vm3_vm0, %v1316_v47   ;;  %463 = vrot.lane.b32.xlu1 %v1339_v46, %s1453_s8 }
  0x33   :  { %181 = vst.msk [vmem:[#allocation0 + $0x301] ss:$8 sm:$0xf0] %vm3_vm0, %v1316_v47   ;;  %186 = vst.msk [vmem:[#allocation0 + $0x340] ss:$8 sm:$0xf] %vm3_vm0, %v1317_v48  }
  0x34   :  { %188 = vst.msk [vmem:[#allocation0 + $0x321] ss:$8 sm:$0xf0] %vm3_vm0, %v1317_v48   ;;  %v1340_v49 = vld.sshfl [vmem:[%s2139_s0 + $0x161] sm:$0xff pattern:$0xe6c4a280]  }
  0x35   :  { %v1341_v50 = vld.sshfl [vmem:[%s2139_s0 + $0x171] sm:$0xff pattern:$0xe6c4a280]   ;;  %476 = vrot.lane.b32.xlu0 %v1340_v49, %s1453_s8  ;;  %v1342_v51 = vld.sshfl [vmem:[%s2139_s0 + $0x181] sm:$0xff pattern:$0xe6c4a280]  }
  0x36   :  { %489 = vrot.lane.b32.xlu1 %v1341_v50, %s1453_s8  ;;  %v1343_v52 = vld.sshfl [vmem:[%s2139_s0 + $0x191] sm:$0xff pattern:$0xe6c4a280]   ;;  %v1344_v53 = vld.sshfl [vmem:[%s2139_s0 + $0x1a1] sm:$0xff pattern:$0xe6c4a280]  }
  0x39   :  { %502 = vrot.lane.b32.xlu0 %v1342_v51, %s1453_s8 }
  0x3a   :  { %515 = vrot.lane.b32.xlu1 %v1343_v52, %s1453_s8 }
  0x3d   :  { %528 = vrot.lane.b32.xlu0 %v1344_v53, %s1453_s8 }
  0x74   :  { %v192_v54 = vpop.permute.xlu0 %191  }
  0x75   :  { %194 = vst.msk [vmem:[#allocation0] sm:$0x3] %vm193_vm1, %v192_v54   ;;  %196 = vst.msk [vmem:[#allocation0 + $0x6] sm:$0xc] %vm193_vm1, %v192_v54   ;;  %v217_v55 = vpop.permute.xlu1 %216  }
  0x76   :  { %198 = vst.msk [vmem:[#allocation0 + $0xc] sm:$0x30] %vm193_vm1, %v192_v54   ;;  %200 = vst.msk [vmem:[#allocation0 + $0x12] sm:$0xc0] %vm193_vm1, %v192_v54  }
  0x77   :  { %220 = vst.msk [vmem:[#allocation0 + $0x40] sm:$0x3] %vm193_vm1, %v217_v55   ;;  %222 = vst.msk [vmem:[#allocation0 + $0x46] sm:$0xc] %vm193_vm1, %v217_v55  }
  0x78   :  { %224 = vst.msk [vmem:[#allocation0 + $0x4c] sm:$0x30] %vm193_vm1, %v217_v55   ;;  %226 = vst.msk [vmem:[#allocation0 + $0x52] sm:$0xc0] %vm193_vm1, %v217_v55   ;;  %v204_v56 = vpop.permute.xlu0 %203  }
  0x79   :  { %207 = vst.msk [vmem:[#allocation0 + $0x20] sm:$0x3] %vm193_vm1, %v204_v56   ;;  %209 = vst.msk [vmem:[#allocation0 + $0x26] sm:$0xc] %vm193_vm1, %v204_v56   ;;  %v230_v57 = vpop.permute.xlu1 %229  }
  0x7a   :  { %211 = vst.msk [vmem:[#allocation0 + $0x2c] sm:$0x30] %vm193_vm1, %v204_v56   ;;  %213 = vst.msk [vmem:[#allocation0 + $0x32] sm:$0xc0] %vm193_vm1, %v204_v56  }
  0x7b   :  { %233 = vst.msk [vmem:[#allocation0 + $0x60] sm:$0x3] %vm193_vm1, %v230_v57   ;;  %235 = vst.msk [vmem:[#allocation0 + $0x66] sm:$0xc] %vm193_vm1, %v230_v57  }
  0x7c   :  { %237 = vst.msk [vmem:[#allocation0 + $0x6c] sm:$0x30] %vm193_vm1, %v230_v57   ;;  %239 = vst.msk [vmem:[#allocation0 + $0x72] sm:$0xc0] %vm193_vm1, %v230_v57   ;;  %v542_v58 = vld [vmem:[#allocation0] sm:$0x3]  ;;  %v243_v61 = vpop.permute.xlu0 %242  }
  0x7d   :  { %v546_v59 = vld [vmem:[#allocation0 + $0x8] sm:$0x3]  ;;  %v551_v60 = vld [vmem:[#allocation0 + $0x10] sm:$0x3]  ;;  %544 = vst [vmem:[%s2140_s1] sm:$0x3] %v542_v58  ;;  %v256_v1 = vpop.permute.xlu1 %255  }
  0x7e   :  { %1345 = vst [vmem:[%s2140_s1 + $0x2] sm:$0x3] %v546_v59  ;;  %1346 = vst [vmem:[%s2140_s1 + $0x4] sm:$0x3] %v551_v60  ;;  %v557_v62 = vld [vmem:[#allocation0 + $0x18] sm:$0x3] }
  0x7f   :  { %v587_v63 = vld [vmem:[#allocation0 + $0x40] sm:$0x3]  ;;  %v593_v0 = vld [vmem:[#allocation0 + $0x48] sm:$0x3]  ;;  %246 = vst.msk [vmem:[#allocation0 + $0x80] sm:$0x3] %vm193_vm1, %v243_v61  }
  0x80   :  { %248 = vst.msk [vmem:[#allocation0 + $0x86] sm:$0xc] %vm193_vm1, %v243_v61   ;;  %250 = vst.msk [vmem:[#allocation0 + $0x8c] sm:$0x30] %vm193_vm1, %v243_v61   ;;  %v599_v2 = vld [vmem:[#allocation0 + $0x50] sm:$0x3]  ;;  %v269_v7 = vpop.permute.xlu0 %268  }
  0x81   :  { %252 = vst.msk [vmem:[#allocation0 + $0x92] sm:$0xc0] %vm193_vm1, %v243_v61   ;;  %1347 = vst [vmem:[%s2140_s1 + $0x6] sm:$0x3] %v557_v62  ;;  %v605_v3 = vld [vmem:[#allocation0 + $0x58] sm:$0x3]  ;;  %v282_v11 = vpop.permute.xlu1 %281  }
  0x82   :  { %1352 = vst [vmem:[%s2140_s1 + $0x10] sm:$0x3] %v587_v63  ;;  %1353 = vst [vmem:[%s2140_s1 + $0x12] sm:$0x3] %v593_v0  ;;  %v563_v4 = vld [vmem:[#allocation0 + $0x20] sm:$0x3] }
  0x83   :  { %259 = vst.msk [vmem:[#allocation0 + $0xa0] sm:$0x3] %vm193_vm1, %v256_v1   ;;  %261 = vst.msk [vmem:[#allocation0 + $0xa6] sm:$0xc] %vm193_vm1, %v256_v1   ;;  %v569_v5 = vld [vmem:[#allocation0 + $0x28] sm:$0x3] }
  0x84   :  { %263 = vst.msk [vmem:[#allocation0 + $0xac] sm:$0x30] %vm193_vm1, %v256_v1   ;;  %265 = vst.msk [vmem:[#allocation0 + $0xb2] sm:$0xc0] %vm193_vm1, %v256_v1   ;;  %v575_v6 = vld [vmem:[#allocation0 + $0x30] sm:$0x3]  ;;  %v295_v17 = vpop.permute.xlu0 %294  }
  0x85   :  { %1354 = vst [vmem:[%s2140_s1 + $0x14] sm:$0x3] %v599_v2  ;;  %1355 = vst [vmem:[%s2140_s1 + $0x16] sm:$0x3] %v605_v3  ;;  %v581_v8 = vld [vmem:[#allocation0 + $0x38] sm:$0x3]  ;;  %v308_v21 = vpop.permute.xlu1 %307  }
  0x86   :  { %1348 = vst [vmem:[%s2140_s1 + $0x8] sm:$0x3] %v563_v4  ;;  %1349 = vst [vmem:[%s2140_s1 + $0xa] sm:$0x3] %v569_v5  ;;  %v611_v9 = vld [vmem:[#allocation0 + $0x60] sm:$0x3] }
  0x87   :  { %1350 = vst [vmem:[%s2140_s1 + $0xc] sm:$0x3] %v575_v6  ;;  %v617_v10 = vld [vmem:[#allocation0 + $0x68] sm:$0x3]  ;;  %272 = vst.msk [vmem:[#allocation0 + $0xc0] sm:$0x3] %vm193_vm1, %v269_v7  }
  0x88   :  { %274 = vst.msk [vmem:[#allocation0 + $0xc6] sm:$0xc] %vm193_vm1, %v269_v7   ;;  %276 = vst.msk [vmem:[#allocation0 + $0xcc] sm:$0x30] %vm193_vm1, %v269_v7   ;;  %v623_v12 = vld [vmem:[#allocation0 + $0x70] sm:$0x3]  ;;  %v321_v27 = vpop.permute.xlu0 %320  }
  0x89   :  { %278 = vst.msk [vmem:[#allocation0 + $0xd2] sm:$0xc0] %vm193_vm1, %v269_v7   ;;  %1351 = vst [vmem:[%s2140_s1 + $0xe] sm:$0x3] %v581_v8  ;;  %v629_v13 = vld [vmem:[#allocation0 + $0x78] sm:$0x3]  ;;  %v334_v31 = vpop.permute.xlu1 %333  }
  0x8a   :  { %1356 = vst [vmem:[%s2140_s1 + $0x18] sm:$0x3] %v611_v9  ;;  %1357 = vst [vmem:[%s2140_s1 + $0x1a] sm:$0x3] %v617_v10  ;;  %v635_v14 = vld [vmem:[#allocation0 + $0x80] sm:$0x3] }
  0x8b   :  { %285 = vst.msk [vmem:[#allocation0 + $0xe0] sm:$0x3] %vm193_vm1, %v282_v11   ;;  %287 = vst.msk [vmem:[#allocation0 + $0xe6] sm:$0xc] %vm193_vm1, %v282_v11   ;;  %v641_v15 = vld [vmem:[#allocation0 + $0x88] sm:$0x3] }
  0x8c   :  { %289 = vst.msk [vmem:[#allocation0 + $0xec] sm:$0x30] %vm193_vm1, %v282_v11   ;;  %291 = vst.msk [vmem:[#allocation0 + $0xf2] sm:$0xc0] %vm193_vm1, %v282_v11   ;;  %v647_v16 = vld [vmem:[#allocation0 + $0x90] sm:$0x3] }
  0x8d   :  { %1358 = vst [vmem:[%s2140_s1 + $0x1c] sm:$0x3] %v623_v12  ;;  %1359 = vst [vmem:[%s2140_s1 + $0x1e] sm:$0x3] %v629_v13  ;;  %v653_v18 = vld [vmem:[#allocation0 + $0x98] sm:$0x3] }
  0x8e   :  { %1360 = vst [vmem:[%s2140_s1 + $0x20] sm:$0x3] %v635_v14  ;;  %1361 = vst [vmem:[%s2140_s1 + $0x22] sm:$0x3] %v641_v15  ;;  %v659_v19 = vld [vmem:[#allocation0 + $0xa0] sm:$0x3] }
  0x8f   :  { %1362 = vst [vmem:[%s2140_s1 + $0x24] sm:$0x3] %v647_v16  ;;  %v665_v20 = vld [vmem:[#allocation0 + $0xa8] sm:$0x3]  ;;  %298 = vst.msk [vmem:[#allocation0 + $0x100] sm:$0x3] %vm193_vm1, %v295_v17  }
  0x90   :  { %300 = vst.msk [vmem:[#allocation0 + $0x106] sm:$0xc] %vm193_vm1, %v295_v17   ;;  %302 = vst.msk [vmem:[#allocation0 + $0x10c] sm:$0x30] %vm193_vm1, %v295_v17   ;;  %v671_v22 = vld [vmem:[#allocation0 + $0xb0] sm:$0x3] }
  0x91   :  { %304 = vst.msk [vmem:[#allocation0 + $0x112] sm:$0xc0] %vm193_vm1, %v295_v17   ;;  %1363 = vst [vmem:[%s2140_s1 + $0x26] sm:$0x3] %v653_v18  ;;  %v677_v23 = vld [vmem:[#allocation0 + $0xb8] sm:$0x3] }
  0x92   :  { %1364 = vst [vmem:[%s2140_s1 + $0x28] sm:$0x3] %v659_v19  ;;  %1365 = vst [vmem:[%s2140_s1 + $0x2a] sm:$0x3] %v665_v20  ;;  %v683_v24 = vld [vmem:[#allocation0 + $0xc0] sm:$0x3] }
  0x93   :  { %311 = vst.msk [vmem:[#allocation0 + $0x120] sm:$0x3] %vm193_vm1, %v308_v21   ;;  %313 = vst.msk [vmem:[#allocation0 + $0x126] sm:$0xc] %vm193_vm1, %v308_v21   ;;  %v689_v25 = vld [vmem:[#allocation0 + $0xc8] sm:$0x3]  ;;  %v347_v37 = vpop.permute.xlu0 %346  }
  0x94   :  { %315 = vst.msk [vmem:[#allocation0 + $0x12c] sm:$0x30] %vm193_vm1, %v308_v21   ;;  %317 = vst.msk [vmem:[#allocation0 + $0x132] sm:$0xc0] %vm193_vm1, %v308_v21   ;;  %v695_v26 = vld [vmem:[#allocation0 + $0xd0] sm:$0x3]  ;;  %v360_v41 = vpop.permute.xlu1 %359  }
  0x95   :  { %1366 = vst [vmem:[%s2140_s1 + $0x2c] sm:$0x3] %v671_v22  ;;  %1367 = vst [vmem:[%s2140_s1 + $0x2e] sm:$0x3] %v677_v23  ;;  %v701_v28 = vld [vmem:[#allocation0 + $0xd8] sm:$0x3] }
  0x96   :  { %1368 = vst [vmem:[%s2140_s1 + $0x30] sm:$0x3] %v683_v24  ;;  %1369 = vst [vmem:[%s2140_s1 + $0x32] sm:$0x3] %v689_v25  ;;  %v707_v29 = vld [vmem:[#allocation0 + $0xe0] sm:$0x3] }
  0x97   :  { %1370 = vst [vmem:[%s2140_s1 + $0x34] sm:$0x3] %v695_v26  ;;  %v713_v30 = vld [vmem:[#allocation0 + $0xe8] sm:$0x3]  ;;  %324 = vst.msk [vmem:[#allocation0 + $0x140] sm:$0x3] %vm193_vm1, %v321_v27   ;;  %v373_v47 = vpop.permute.xlu0 %372  }
  0x98   :  { %326 = vst.msk [vmem:[#allocation0 + $0x146] sm:$0xc] %vm193_vm1, %v321_v27   ;;  %328 = vst.msk [vmem:[#allocation0 + $0x14c] sm:$0x30] %vm193_vm1, %v321_v27   ;;  %v719_v32 = vld [vmem:[#allocation0 + $0xf0] sm:$0x3]  ;;  %v386_v51 = vpop.permute.xlu1 %385  }
  0x99   :  { %330 = vst.msk [vmem:[#allocation0 + $0x152] sm:$0xc0] %vm193_vm1, %v321_v27   ;;  %1371 = vst [vmem:[%s2140_s1 + $0x36] sm:$0x3] %v701_v28  ;;  %v725_v33 = vld [vmem:[#allocation0 + $0xf8] sm:$0x3] }
  0x9a   :  { %1372 = vst [vmem:[%s2140_s1 + $0x38] sm:$0x3] %v707_v29  ;;  %1373 = vst [vmem:[%s2140_s1 + $0x3a] sm:$0x3] %v713_v30  ;;  %v731_v34 = vld [vmem:[#allocation0 + $0x100] sm:$0x3] }
  0x9b   :  { %337 = vst.msk [vmem:[#allocation0 + $0x160] sm:$0x3] %vm193_vm1, %v334_v31   ;;  %339 = vst.msk [vmem:[#allocation0 + $0x166] sm:$0xc] %vm193_vm1, %v334_v31   ;;  %v737_v35 = vld [vmem:[#allocation0 + $0x108] sm:$0x3]  ;;  %v399_v57 = vpop.permute.xlu0 %398  }
  0x9c   :  { %341 = vst.msk [vmem:[#allocation0 + $0x16c] sm:$0x30] %vm193_vm1, %v334_v31   ;;  %343 = vst.msk [vmem:[#allocation0 + $0x172] sm:$0xc0] %vm193_vm1, %v334_v31   ;;  %v743_v36 = vld [vmem:[#allocation0 + $0x110] sm:$0x3]  ;;  %v412_v61 = vpop.permute.xlu1 %411  }
  0x9d   :  { %1374 = vst [vmem:[%s2140_s1 + $0x3c] sm:$0x3] %v719_v32  ;;  %1375 = vst [vmem:[%s2140_s1 + $0x3e] sm:$0x3] %v725_v33  ;;  %v749_v38 = vld [vmem:[#allocation0 + $0x118] sm:$0x3] }
  0x9e   :  { %1376 = vst [vmem:[%s2140_s1 + $0x40] sm:$0x3] %v731_v34  ;;  %1377 = vst [vmem:[%s2140_s1 + $0x42] sm:$0x3] %v737_v35  ;;  %v755_v39 = vld [vmem:[#allocation0 + $0x120] sm:$0x3] }
  0x9f   :  { %1378 = vst [vmem:[%s2140_s1 + $0x44] sm:$0x3] %v743_v36  ;;  %v761_v40 = vld [vmem:[#allocation0 + $0x128] sm:$0x3]  ;;  %350 = vst.msk [vmem:[#allocation0 + $0x180] sm:$0x3] %vm193_vm1, %v347_v37   ;;  %v425_v3 = vpop.permute.xlu0 %424  }
  0xa0   :  { %352 = vst.msk [vmem:[#allocation0 + $0x186] sm:$0xc] %vm193_vm1, %v347_v37   ;;  %354 = vst.msk [vmem:[#allocation0 + $0x18c] sm:$0x30] %vm193_vm1, %v347_v37   ;;  %v767_v42 = vld [vmem:[#allocation0 + $0x130] sm:$0x3]  ;;  %v438_v7 = vpop.permute.xlu1 %437  }
  0xa1   :  { %356 = vst.msk [vmem:[#allocation0 + $0x192] sm:$0xc0] %vm193_vm1, %v347_v37   ;;  %1379 = vst [vmem:[%s2140_s1 + $0x46] sm:$0x3] %v749_v38  ;;  %v773_v43 = vld [vmem:[#allocation0 + $0x138] sm:$0x3] }
  0xa2   :  { %1380 = vst [vmem:[%s2140_s1 + $0x48] sm:$0x3] %v755_v39  ;;  %1381 = vst [vmem:[%s2140_s1 + $0x4a] sm:$0x3] %v761_v40  ;;  %v779_v44 = vld [vmem:[#allocation0 + $0x140] sm:$0x3] }
  0xa3   :  { %363 = vst.msk [vmem:[#allocation0 + $0x1a0] sm:$0x3] %vm193_vm1, %v360_v41   ;;  %365 = vst.msk [vmem:[#allocation0 + $0x1a6] sm:$0xc] %vm193_vm1, %v360_v41   ;;  %v785_v45 = vld [vmem:[#allocation0 + $0x148] sm:$0x3]  ;;  %v451_v13 = vpop.permute.xlu0 %450  }
  0xa4   :  { %367 = vst.msk [vmem:[#allocation0 + $0x1ac] sm:$0x30] %vm193_vm1, %v360_v41   ;;  %369 = vst.msk [vmem:[#allocation0 + $0x1b2] sm:$0xc0] %vm193_vm1, %v360_v41   ;;  %v791_v46 = vld [vmem:[#allocation0 + $0x150] sm:$0x3]  ;;  %v464_v17 = vpop.permute.xlu1 %463  }
  0xa5   :  { %1382 = vst [vmem:[%s2140_s1 + $0x4c] sm:$0x3] %v767_v42  ;;  %1383 = vst [vmem:[%s2140_s1 + $0x4e] sm:$0x3] %v773_v43  ;;  %v797_v48 = vld [vmem:[#allocation0 + $0x158] sm:$0x3] }
  0xa6   :  { %1384 = vst [vmem:[%s2140_s1 + $0x50] sm:$0x3] %v779_v44  ;;  %1385 = vst [vmem:[%s2140_s1 + $0x52] sm:$0x3] %v785_v45  ;;  %v803_v49 = vld [vmem:[#allocation0 + $0x160] sm:$0x3] }
  0xa7   :  { %1386 = vst [vmem:[%s2140_s1 + $0x54] sm:$0x3] %v791_v46  ;;  %v809_v50 = vld [vmem:[#allocation0 + $0x168] sm:$0x3]  ;;  %376 = vst.msk [vmem:[#allocation0 + $0x1c0] sm:$0x3] %vm193_vm1, %v373_v47   ;;  %v477_v23 = vpop.permute.xlu0 %476  }
  0xa8   :  { %378 = vst.msk [vmem:[#allocation0 + $0x1c6] sm:$0xc] %vm193_vm1, %v373_v47   ;;  %380 = vst.msk [vmem:[#allocation0 + $0x1cc] sm:$0x30] %vm193_vm1, %v373_v47   ;;  %v815_v52 = vld [vmem:[#allocation0 + $0x170] sm:$0x3]  ;;  %v490_v27 = vpop.permute.xlu1 %489  }
  0xa9   :  { %382 = vst.msk [vmem:[#allocation0 + $0x1d2] sm:$0xc0] %vm193_vm1, %v373_v47   ;;  %1387 = vst [vmem:[%s2140_s1 + $0x56] sm:$0x3] %v797_v48  ;;  %v821_v53 = vld [vmem:[#allocation0 + $0x178] sm:$0x3] }
  0xaa   :  { %1388 = vst [vmem:[%s2140_s1 + $0x58] sm:$0x3] %v803_v49  ;;  %1389 = vst [vmem:[%s2140_s1 + $0x5a] sm:$0x3] %v809_v50  ;;  %v827_v54 = vld [vmem:[#allocation0 + $0x180] sm:$0x3] }
  0xab   :  { %389 = vst.msk [vmem:[#allocation0 + $0x1e0] sm:$0x3] %vm193_vm1, %v386_v51   ;;  %391 = vst.msk [vmem:[#allocation0 + $0x1e6] sm:$0xc] %vm193_vm1, %v386_v51   ;;  %v833_v55 = vld [vmem:[#allocation0 + $0x188] sm:$0x3]  ;;  %v503_v33 = vpop.permute.xlu0 %502  }
  0xac   :  { %393 = vst.msk [vmem:[#allocation0 + $0x1ec] sm:$0x30] %vm193_vm1, %v386_v51   ;;  %395 = vst.msk [vmem:[#allocation0 + $0x1f2] sm:$0xc0] %vm193_vm1, %v386_v51   ;;  %v839_v56 = vld [vmem:[#allocation0 + $0x190] sm:$0x3]  ;;  %v516_v37 = vpop.permute.xlu1 %515  }
  0xad   :  { %1390 = vst [vmem:[%s2140_s1 + $0x5c] sm:$0x3] %v815_v52  ;;  %1391 = vst [vmem:[%s2140_s1 + $0x5e] sm:$0x3] %v821_v53  ;;  %v845_v58 = vld [vmem:[#allocation0 + $0x198] sm:$0x3] }
  0xae   :  { %1392 = vst [vmem:[%s2140_s1 + $0x60] sm:$0x3] %v827_v54  ;;  %1393 = vst [vmem:[%s2140_s1 + $0x62] sm:$0x3] %v833_v55  ;;  %v851_v59 = vld [vmem:[#allocation0 + $0x1a0] sm:$0x3] }
  0xaf   :  { %1394 = vst [vmem:[%s2140_s1 + $0x64] sm:$0x3] %v839_v56  ;;  %v857_v60 = vld [vmem:[#allocation0 + $0x1a8] sm:$0x3]  ;;  %402 = vst.msk [vmem:[#allocation0 + $0x200] sm:$0x3] %vm193_vm1, %v399_v57   ;;  %v529_v43 = vpop.permute.xlu0 %528  }
  0xb0   :  { %404 = vst.msk [vmem:[#allocation0 + $0x206] sm:$0xc] %vm193_vm1, %v399_v57   ;;  %406 = vst.msk [vmem:[#allocation0 + $0x20c] sm:$0x30] %vm193_vm1, %v399_v57   ;;  %v863_v62 = vld [vmem:[#allocation0 + $0x1b0] sm:$0x3] }
  0xb1   :  { %408 = vst.msk [vmem:[#allocation0 + $0x212] sm:$0xc0] %vm193_vm1, %v399_v57   ;;  %1395 = vst [vmem:[%s2140_s1 + $0x66] sm:$0x3] %v845_v58  ;;  %v869_v63 = vld [vmem:[#allocation0 + $0x1b8] sm:$0x3] }
  0xb2   :  { %1396 = vst [vmem:[%s2140_s1 + $0x68] sm:$0x3] %v851_v59  ;;  %1397 = vst [vmem:[%s2140_s1 + $0x6a] sm:$0x3] %v857_v60  ;;  %v875_v0 = vld [vmem:[#allocation0 + $0x1c0] sm:$0x3] }
  0xb3   :  { %415 = vst.msk [vmem:[#allocation0 + $0x220] sm:$0x3] %vm193_vm1, %v412_v61   ;;  %417 = vst.msk [vmem:[#allocation0 + $0x226] sm:$0xc] %vm193_vm1, %v412_v61   ;;  %v881_v1 = vld [vmem:[#allocation0 + $0x1c8] sm:$0x3] }
  0xb4   :  { %419 = vst.msk [vmem:[#allocation0 + $0x22c] sm:$0x30] %vm193_vm1, %v412_v61   ;;  %421 = vst.msk [vmem:[#allocation0 + $0x232] sm:$0xc0] %vm193_vm1, %v412_v61   ;;  %v887_v2 = vld [vmem:[#allocation0 + $0x1d0] sm:$0x3] }
  0xb5   :  { %1398 = vst [vmem:[%s2140_s1 + $0x6c] sm:$0x3] %v863_v62  ;;  %1399 = vst [vmem:[%s2140_s1 + $0x6e] sm:$0x3] %v869_v63  ;;  %v893_v4 = vld [vmem:[#allocation0 + $0x1d8] sm:$0x3] }
  0xb6   :  { %1400 = vst [vmem:[%s2140_s1 + $0x70] sm:$0x3] %v875_v0  ;;  %1401 = vst [vmem:[%s2140_s1 + $0x72] sm:$0x3] %v881_v1  ;;  %v899_v5 = vld [vmem:[#allocation0 + $0x1e0] sm:$0x3] }
  0xb7   :  { %1402 = vst [vmem:[%s2140_s1 + $0x74] sm:$0x3] %v887_v2  ;;  %v905_v6 = vld [vmem:[#allocation0 + $0x1e8] sm:$0x3]  ;;  %428 = vst.msk [vmem:[#allocation0 + $0x240] sm:$0x3] %vm193_vm1, %v425_v3  }
  0xb8   :  { %430 = vst.msk [vmem:[#allocation0 + $0x246] sm:$0xc] %vm193_vm1, %v425_v3   ;;  %432 = vst.msk [vmem:[#allocation0 + $0x24c] sm:$0x30] %vm193_vm1, %v425_v3   ;;  %v911_v8 = vld [vmem:[#allocation0 + $0x1f0] sm:$0x3] }
  0xb9   :  { %434 = vst.msk [vmem:[#allocation0 + $0x252] sm:$0xc0] %vm193_vm1, %v425_v3   ;;  %1403 = vst [vmem:[%s2140_s1 + $0x76] sm:$0x3] %v893_v4  ;;  %v917_v9 = vld [vmem:[#allocation0 + $0x1f8] sm:$0x3] }
  0xba   :  { %1404 = vst [vmem:[%s2140_s1 + $0x78] sm:$0x3] %v899_v5  ;;  %1405 = vst [vmem:[%s2140_s1 + $0x7a] sm:$0x3] %v905_v6  ;;  %v923_v10 = vld [vmem:[#allocation0 + $0x200] sm:$0x3] }
  0xbb   :  { %441 = vst.msk [vmem:[#allocation0 + $0x260] sm:$0x3] %vm193_vm1, %v438_v7   ;;  %443 = vst.msk [vmem:[#allocation0 + $0x266] sm:$0xc] %vm193_vm1, %v438_v7   ;;  %v929_v11 = vld [vmem:[#allocation0 + $0x208] sm:$0x3] }
  0xbc   :  { %445 = vst.msk [vmem:[#allocation0 + $0x26c] sm:$0x30] %vm193_vm1, %v438_v7   ;;  %447 = vst.msk [vmem:[#allocation0 + $0x272] sm:$0xc0] %vm193_vm1, %v438_v7   ;;  %v935_v12 = vld [vmem:[#allocation0 + $0x210] sm:$0x3] }
  0xbd   :  { %1406 = vst [vmem:[%s2140_s1 + $0x7c] sm:$0x3] %v911_v8  ;;  %1407 = vst [vmem:[%s2140_s1 + $0x7e] sm:$0x3] %v917_v9  ;;  %v941_v14 = vld [vmem:[#allocation0 + $0x218] sm:$0x3] }
  0xbe   :  { %1408 = vst [vmem:[%s2140_s1 + $0x80] sm:$0x3] %v923_v10  ;;  %1409 = vst [vmem:[%s2140_s1 + $0x82] sm:$0x3] %v929_v11  ;;  %v947_v15 = vld [vmem:[#allocation0 + $0x220] sm:$0x3] }
  0xbf   :  { %1410 = vst [vmem:[%s2140_s1 + $0x84] sm:$0x3] %v935_v12  ;;  %v953_v16 = vld [vmem:[#allocation0 + $0x228] sm:$0x3]  ;;  %454 = vst.msk [vmem:[#allocation0 + $0x280] sm:$0x3] %vm193_vm1, %v451_v13  }
  0xc0   :  { %456 = vst.msk [vmem:[#allocation0 + $0x286] sm:$0xc] %vm193_vm1, %v451_v13   ;;  %458 = vst.msk [vmem:[#allocation0 + $0x28c] sm:$0x30] %vm193_vm1, %v451_v13   ;;  %v959_v18 = vld [vmem:[#allocation0 + $0x230] sm:$0x3] }
  0xc1   :  { %460 = vst.msk [vmem:[#allocation0 + $0x292] sm:$0xc0] %vm193_vm1, %v451_v13   ;;  %1411 = vst [vmem:[%s2140_s1 + $0x86] sm:$0x3] %v941_v14  ;;  %v965_v19 = vld [vmem:[#allocation0 + $0x238] sm:$0x3] }
  0xc2   :  { %1412 = vst [vmem:[%s2140_s1 + $0x88] sm:$0x3] %v947_v15  ;;  %1413 = vst [vmem:[%s2140_s1 + $0x8a] sm:$0x3] %v953_v16  ;;  %v971_v20 = vld [vmem:[#allocation0 + $0x240] sm:$0x3] }
  0xc3   :  { %467 = vst.msk [vmem:[#allocation0 + $0x2a0] sm:$0x3] %vm193_vm1, %v464_v17   ;;  %469 = vst.msk [vmem:[#allocation0 + $0x2a6] sm:$0xc] %vm193_vm1, %v464_v17   ;;  %v977_v21 = vld [vmem:[#allocation0 + $0x248] sm:$0x3] }
  0xc4   :  { %471 = vst.msk [vmem:[#allocation0 + $0x2ac] sm:$0x30] %vm193_vm1, %v464_v17   ;;  %473 = vst.msk [vmem:[#allocation0 + $0x2b2] sm:$0xc0] %vm193_vm1, %v464_v17   ;;  %v983_v22 = vld [vmem:[#allocation0 + $0x250] sm:$0x3] }
  0xc5   :  { %1414 = vst [vmem:[%s2140_s1 + $0x8c] sm:$0x3] %v959_v18  ;;  %1415 = vst [vmem:[%s2140_s1 + $0x8e] sm:$0x3] %v965_v19  ;;  %v989_v24 = vld [vmem:[#allocation0 + $0x258] sm:$0x3] }
  0xc6   :  { %1416 = vst [vmem:[%s2140_s1 + $0x90] sm:$0x3] %v971_v20  ;;  %1417 = vst [vmem:[%s2140_s1 + $0x92] sm:$0x3] %v977_v21  ;;  %v995_v25 = vld [vmem:[#allocation0 + $0x260] sm:$0x3] }
  0xc7   :  { %1418 = vst [vmem:[%s2140_s1 + $0x94] sm:$0x3] %v983_v22  ;;  %v1001_v26 = vld [vmem:[#allocation0 + $0x268] sm:$0x3]  ;;  %480 = vst.msk [vmem:[#allocation0 + $0x2c0] sm:$0x3] %vm193_vm1, %v477_v23  }
  0xc8   :  { %482 = vst.msk [vmem:[#allocation0 + $0x2c6] sm:$0xc] %vm193_vm1, %v477_v23   ;;  %484 = vst.msk [vmem:[#allocation0 + $0x2cc] sm:$0x30] %vm193_vm1, %v477_v23   ;;  %v1007_v28 = vld [vmem:[#allocation0 + $0x270] sm:$0x3] }
  0xc9   :  { %486 = vst.msk [vmem:[#allocation0 + $0x2d2] sm:$0xc0] %vm193_vm1, %v477_v23   ;;  %1419 = vst [vmem:[%s2140_s1 + $0x96] sm:$0x3] %v989_v24  ;;  %v1013_v29 = vld [vmem:[#allocation0 + $0x278] sm:$0x3] }
  0xca   :  { %1420 = vst [vmem:[%s2140_s1 + $0x98] sm:$0x3] %v995_v25  ;;  %1421 = vst [vmem:[%s2140_s1 + $0x9a] sm:$0x3] %v1001_v26  ;;  %v1019_v30 = vld [vmem:[#allocation0 + $0x280] sm:$0x3] }
  0xcb   :  { %493 = vst.msk [vmem:[#allocation0 + $0x2e0] sm:$0x3] %vm193_vm1, %v490_v27   ;;  %495 = vst.msk [vmem:[#allocation0 + $0x2e6] sm:$0xc] %vm193_vm1, %v490_v27   ;;  %v1025_v31 = vld [vmem:[#allocation0 + $0x288] sm:$0x3] }
  0xcc   :  { %497 = vst.msk [vmem:[#allocation0 + $0x2ec] sm:$0x30] %vm193_vm1, %v490_v27   ;;  %499 = vst.msk [vmem:[#allocation0 + $0x2f2] sm:$0xc0] %vm193_vm1, %v490_v27   ;;  %v1031_v32 = vld [vmem:[#allocation0 + $0x290] sm:$0x3] }
  0xcd   :  { %1422 = vst [vmem:[%s2140_s1 + $0x9c] sm:$0x3] %v1007_v28  ;;  %1423 = vst [vmem:[%s2140_s1 + $0x9e] sm:$0x3] %v1013_v29  ;;  %v1037_v34 = vld [vmem:[#allocation0 + $0x298] sm:$0x3] }
  0xce   :  { %1424 = vst [vmem:[%s2140_s1 + $0xa0] sm:$0x3] %v1019_v30  ;;  %1425 = vst [vmem:[%s2140_s1 + $0xa2] sm:$0x3] %v1025_v31  ;;  %v1043_v35 = vld [vmem:[#allocation0 + $0x2a0] sm:$0x3] }
  0xcf   :  { %1426 = vst [vmem:[%s2140_s1 + $0xa4] sm:$0x3] %v1031_v32  ;;  %v1049_v36 = vld [vmem:[#allocation0 + $0x2a8] sm:$0x3]  ;;  %506 = vst.msk [vmem:[#allocation0 + $0x300] sm:$0x3] %vm193_vm1, %v503_v33  }
  0xd0   :  { %508 = vst.msk [vmem:[#allocation0 + $0x306] sm:$0xc] %vm193_vm1, %v503_v33   ;;  %510 = vst.msk [vmem:[#allocation0 + $0x30c] sm:$0x30] %vm193_vm1, %v503_v33   ;;  %v1055_v38 = vld [vmem:[#allocation0 + $0x2b0] sm:$0x3] }
  0xd1   :  { %512 = vst.msk [vmem:[#allocation0 + $0x312] sm:$0xc0] %vm193_vm1, %v503_v33   ;;  %1427 = vst [vmem:[%s2140_s1 + $0xa6] sm:$0x3] %v1037_v34  ;;  %v1061_v39 = vld [vmem:[#allocation0 + $0x2b8] sm:$0x3] }
  0xd2   :  { %1428 = vst [vmem:[%s2140_s1 + $0xa8] sm:$0x3] %v1043_v35  ;;  %1429 = vst [vmem:[%s2140_s1 + $0xaa] sm:$0x3] %v1049_v36  ;;  %v1067_v40 = vld [vmem:[#allocation0 + $0x2c0] sm:$0x3] }
  0xd3   :  { %519 = vst.msk [vmem:[#allocation0 + $0x320] sm:$0x3] %vm193_vm1, %v516_v37   ;;  %521 = vst.msk [vmem:[#allocation0 + $0x326] sm:$0xc] %vm193_vm1, %v516_v37   ;;  %v1073_v41 = vld [vmem:[#allocation0 + $0x2c8] sm:$0x3] }
  0xd4   :  { %523 = vst.msk [vmem:[#allocation0 + $0x32c] sm:$0x30] %vm193_vm1, %v516_v37   ;;  %525 = vst.msk [vmem:[#allocation0 + $0x332] sm:$0xc0] %vm193_vm1, %v516_v37   ;;  %v1079_v42 = vld [vmem:[#allocation0 + $0x2d0] sm:$0x3] }
  0xd5   :  { %1430 = vst [vmem:[%s2140_s1 + $0xac] sm:$0x3] %v1055_v38  ;;  %1431 = vst [vmem:[%s2140_s1 + $0xae] sm:$0x3] %v1061_v39  ;;  %v1085_v44 = vld [vmem:[#allocation0 + $0x2d8] sm:$0x3] }
  0xd6   :  { %1432 = vst [vmem:[%s2140_s1 + $0xb0] sm:$0x3] %v1067_v40  ;;  %1433 = vst [vmem:[%s2140_s1 + $0xb2] sm:$0x3] %v1073_v41  ;;  %v1091_v45 = vld [vmem:[#allocation0 + $0x2e0] sm:$0x3] }
  0xd7   :  { %1434 = vst [vmem:[%s2140_s1 + $0xb4] sm:$0x3] %v1079_v42  ;;  %v1097_v46 = vld [vmem:[#allocation0 + $0x2e8] sm:$0x3]  ;;  %532 = vst.msk [vmem:[#allocation0 + $0x340] sm:$0x3] %vm193_vm1, %v529_v43  }
  0xd8   :  { %534 = vst.msk [vmem:[#allocation0 + $0x346] sm:$0xc] %vm193_vm1, %v529_v43   ;;  %536 = vst.msk [vmem:[#allocation0 + $0x34c] sm:$0x30] %vm193_vm1, %v529_v43   ;;  %v1103_v47 = vld [vmem:[#allocation0 + $0x2f0] sm:$0x3] }
  0xd9   :  { %538 = vst.msk [vmem:[#allocation0 + $0x352] sm:$0xc0] %vm193_vm1, %v529_v43   ;;  %1435 = vst [vmem:[%s2140_s1 + $0xb6] sm:$0x3] %v1085_v44  ;;  %v1109_v48 = vld [vmem:[#allocation0 + $0x2f8] sm:$0x3] }
  0xda   :  { %1436 = vst [vmem:[%s2140_s1 + $0xb8] sm:$0x3] %v1091_v45  ;;  %1437 = vst [vmem:[%s2140_s1 + $0xba] sm:$0x3] %v1097_v46  ;;  %v1115_v49 = vld [vmem:[#allocation0 + $0x300] sm:$0x3] }
  0xdb   :  { %1438 = vst [vmem:[%s2140_s1 + $0xbc] sm:$0x3] %v1103_v47  ;;  %1439 = vst [vmem:[%s2140_s1 + $0xbe] sm:$0x3] %v1109_v48  ;;  %v1121_v50 = vld [vmem:[#allocation0 + $0x308] sm:$0x3] }
  0xdc   :  { %v1127_v51 = vld [vmem:[#allocation0 + $0x310] sm:$0x3]  ;;  %1440 = vst [vmem:[%s2140_s1 + $0xc0] sm:$0x3] %v1115_v49  ;;  %1441 = vst [vmem:[%s2140_s1 + $0xc2] sm:$0x3] %v1121_v50 }
  0xdd   :  { %1442 = vst [vmem:[%s2140_s1 + $0xc4] sm:$0x3] %v1127_v51  ;;  %v1133_v52 = vld [vmem:[#allocation0 + $0x318] sm:$0x3]  ;;  %v1139_v53 = vld [vmem:[#allocation0 + $0x320] sm:$0x3] }
  0xde   :  { %v1145_v54 = vld [vmem:[#allocation0 + $0x328] sm:$0x3]  ;;  %1443 = vst [vmem:[%s2140_s1 + $0xc6] sm:$0x3] %v1133_v52  ;;  %1444 = vst [vmem:[%s2140_s1 + $0xc8] sm:$0x3] %v1139_v53 }
  0xdf   :  { %1445 = vst [vmem:[%s2140_s1 + $0xca] sm:$0x3] %v1145_v54  ;;  %v1151_v55 = vld [vmem:[#allocation0 + $0x330] sm:$0x3]  ;;  %v1157_v56 = vld [vmem:[#allocation0 + $0x338] sm:$0x3] }
  0xe0   :  { %1446 = vst [vmem:[%s2140_s1 + $0xcc] sm:$0x3] %v1151_v55  ;;  %1447 = vst [vmem:[%s2140_s1 + $0xce] sm:$0x3] %v1157_v56  ;;  %v1163_v57 = vld [vmem:[#allocation0 + $0x340] sm:$0x3] }
  0xe1   :  { %v1169_v58 = vld [vmem:[#allocation0 + $0x348] sm:$0x3]  ;;  %v1175_v59 = vld [vmem:[#allocation0 + $0x350] sm:$0x3]  ;;  %1448 = vst [vmem:[%s2140_s1 + $0xd0] sm:$0x3] %v1163_v57 }
  0xe2   :  { %1449 = vst [vmem:[%s2140_s1 + $0xd2] sm:$0x3] %v1169_v58  ;;  %1450 = vst [vmem:[%s2140_s1 + $0xd4] sm:$0x3] %v1175_v59  ;;  %v1181_v60 = vld [vmem:[#allocation0 + $0x358] sm:$0x3] }
  0xe3   :  { %1451 = vst [vmem:[%s2140_s1 + $0xd6] sm:$0x3] %v1181_v60 }

// kernel: polnet_bc_forward.1
= control target key start
LH: loop header
LB: loop body
LE: loop exit
PB: predicated region body
PF: predicated region fallthrough
CT: control target
= control target key end

     0   :  { %v42_v36 = vlaneseq  ;;  %v6278_v41 = vmov 1983009808   ;;  %s8465_s0 = inlined_call_operand.vmem [shape: f32[27,2,512], index: 0, kind: input, shape index: {}]   ;;  %s8466_s1 = inlined_call_operand.vmem [shape: f32[27,512], index: 1, kind: input, shape index: {}]   ;;  %s8467_s2 = inlined_call_operand.vmem [shape: f32[1,512], index: 2, kind: input, shape index: {}]   ;;  %s8468_s3 = inlined_call_operand.vmem [shape: bf16[512,512], index: 3, kind: input, shape index: {}]   ;;  %s8469_s4 = inlined_call_operand.vmem [shape: f32[1,512], index: 4, kind: input, shape index: {}]   ;;  %s8470_s5 = inlined_call_operand.vmem [shape: bf16[512,512], index: 5, kind: input, shape index: {}]   ;;  %s8471_s6 = inlined_call_operand.vmem [shape: f32[1,512], index: 6, kind: input, shape index: {}]   ;;  %s8472_s7 = inlined_call_operand.vmem [shape: bf16[512,512], index: 7, kind: input, shape index: {}]   ;;  %s8473_s8 = inlined_call_operand.vmem [shape: f32[1,512], index: 8, kind: input, shape index: {}]   ;;  %s8474_s9 = inlined_call_operand.vmem [shape: bf16[512,128], index: 9, kind: input, shape index: {}]   ;;  %s8475_s10 = inlined_call_operand.vmem [shape: f32[1,128], index: 10, kind: input, shape index: {}]   ;;  %s8476_s11 = inlined_call_operand.hbm [shape: f32[2,128], index: 11, kind: output, shape index: {}]  }
   0x1   :  { %v5645_v0 = vld [vmem:[%s8468_s3 + $0x4] ss:$16 sps:$4 sm:$0xff]   ;;  %v5647_v1 = vld [vmem:[%s8468_s3 + $0xc] ss:$16 sps:$4 sm:$0xff]   ;;  %v5649_v2 = vld [vmem:[%s8468_s3] ss:$16 sps:$4 sm:$0xff]   ;;  %v84_v42 = vunpack.c.l.s4 %v6278_v41 }
   0x2   :  { %2640 = vmatprep.subr.bf16.mxu0 %v5645_v0  ;;  %v5650_v3 = vld [vmem:[%s8468_s3 + $0x8] ss:$16 sps:$4 sm:$0xff]   ;;  %2722 = vmatprep.subr.bf16.mxu1 %v5647_v1  ;;  %v5651_v4 = vld [vmem:[%s8468_s3 + $0x24] ss:$16 sps:$4 sm:$0xff]   ;;  %v5653_v5 = vld [vmem:[%s8468_s3 + $0x2c] ss:$16 sps:$4 sm:$0xff]  }
   0x3   :  { %2641 = vmatpush1.bf16.msra.mxu0 %v5649_v2  ;;  %2723 = vmatpush1.bf16.msra.mxu1 %v5650_v3  ;;  %v5655_v6 = vld [vmem:[%s8468_s3 + $0x20] ss:$16 sps:$4 sm:$0xff]   ;;  %v5656_v7 = vld [vmem:[%s8468_s3 + $0x28] ss:$16 sps:$4 sm:$0xff]   ;;  %v5657_v8 = vld [vmem:[%s8468_s3 + $0x44] ss:$16 sps:$4 sm:$0xff]   ;;  %v85_v49 = vunpack.c.0.s8 %v84_v42 }
   0x4   :  { %2642 = vmatprep.subr.bf16.mxu0 %v5651_v4  ;;  %2724 = vmatprep.subr.bf16.mxu1 %v5653_v5  ;;  %v5659_v9 = vld [vmem:[%s8468_s3 + $0x4c] ss:$16 sps:$4 sm:$0xff]   ;;  %v5661_v10 = vld [vmem:[%s8468_s3 + $0x40] ss:$16 sps:$4 sm:$0xff]   ;;  %v5662_v11 = vld [vmem:[%s8468_s3 + $0x48] ss:$16 sps:$4 sm:$0xff]  }
   0x5   :  { %v5663_v12 = vld [vmem:[%s8468_s3 + $0x64] ss:$16 sps:$4 sm:$0xff]   ;;  %v5665_v13 = vld [vmem:[%s8468_s3 + $0x6c] ss:$16 sps:$4 sm:$0xff]   ;;  %v5667_v14 = vld [vmem:[%s8468_s3 + $0x60] ss:$16 sps:$4 sm:$0xff]  }
   0x6   :  { %v5668_v15 = vld [vmem:[%s8468_s3 + $0x68] ss:$16 sps:$4 sm:$0xff]   ;;  %v5669_v16 = vld [vmem:[%s8468_s3 + $0x84] ss:$16 sps:$4 sm:$0xff]   ;;  %v5671_v17 = vld [vmem:[%s8468_s3 + $0x8c] ss:$16 sps:$4 sm:$0xff]  }
   0x7   :  { %2643 = vmatpush1.bf16.msra.mxu0 %v5655_v6  ;;  %2725 = vmatpush1.bf16.msra.mxu1 %v5656_v7  ;;  %v5673_v18 = vld [vmem:[%s8468_s3 + $0x80] ss:$16 sps:$4 sm:$0xff]   ;;  %v5674_v19 = vld [vmem:[%s8468_s3 + $0x88] ss:$16 sps:$4 sm:$0xff]   ;;  %v5675_v20 = vld [vmem:[%s8468_s3 + $0xa4] ss:$16 sps:$4 sm:$0xff]  }
   0x8   :  { %2644 = vmatprep.subr.bf16.mxu0 %v5657_v8  ;;  %2726 = vmatprep.subr.bf16.mxu1 %v5659_v9  ;;  %v5677_v21 = vld [vmem:[%s8468_s3 + $0xac] ss:$16 sps:$4 sm:$0xff]   ;;  %v5679_v22 = vld [vmem:[%s8468_s3 + $0xa0] ss:$16 sps:$4 sm:$0xff]   ;;  %v5680_v23 = vld [vmem:[%s8468_s3 + $0xa8] ss:$16 sps:$4 sm:$0xff]  }
   0x9   :  { %v5681_v24 = vld [vmem:[%s8468_s3 + $0xc4] ss:$16 sps:$4 sm:$0xff]   ;;  %v5683_v25 = vld [vmem:[%s8468_s3 + $0xcc] ss:$16 sps:$4 sm:$0xff]   ;;  %v5685_v26 = vld [vmem:[%s8468_s3 + $0xc0] ss:$16 sps:$4 sm:$0xff]  }
   0xa   :  { %v5686_v27 = vld [vmem:[%s8468_s3 + $0xc8] ss:$16 sps:$4 sm:$0xff]   ;;  %v5687_v28 = vld [vmem:[%s8468_s3 + $0xe4] ss:$16 sps:$4 sm:$0xff]   ;;  %v5689_v29 = vld [vmem:[%s8468_s3 + $0xec] ss:$16 sps:$4 sm:$0xff]  }
   0xb   :  { %2645 = vmatpush1.bf16.msra.mxu0 %v5661_v10  ;;  %2727 = vmatpush1.bf16.msra.mxu1 %v5662_v11  ;;  %v5691_v30 = vld [vmem:[%s8468_s3 + $0xe0] ss:$16 sps:$4 sm:$0xff]   ;;  %v5692_v31 = vld [vmem:[%s8468_s3 + $0xe8] ss:$16 sps:$4 sm:$0xff]   ;;  %v5693_v32 = vld [vmem:[%s8468_s3 + $0x104] ss:$16 sps:$4 sm:$0xff]  }
   0xc   :  { %2646 = vmatprep.subr.bf16.mxu0 %v5663_v12  ;;  %2728 = vmatprep.subr.bf16.mxu1 %v5665_v13  ;;  %v5695_v33 = vld [vmem:[%s8468_s3 + $0x10c] ss:$16 sps:$4 sm:$0xff]   ;;  %v5697_v34 = vld [vmem:[%s8468_s3 + $0x100] ss:$16 sps:$4 sm:$0xff]   ;;  %v5698_v35 = vld [vmem:[%s8468_s3 + $0x108] ss:$16 sps:$4 sm:$0xff]  }
   0xd   :  { %v5699_v37 = vld [vmem:[%s8468_s3 + $0x124] ss:$16 sps:$4 sm:$0xff]   ;;  %v5701_v38 = vld [vmem:[%s8468_s3 + $0x12c] ss:$16 sps:$4 sm:$0xff]   ;;  %v5703_v39 = vld [vmem:[%s8468_s3 + $0x120] ss:$16 sps:$4 sm:$0xff]  }
   0xe   :  { %v43_v40 = vshrl.u32 %v42_v36, 7  ;;  %v5704_v43 = vld [vmem:[%s8468_s3 + $0x128] ss:$16 sps:$4 sm:$0xff]   ;;  %v5705_v44 = vld [vmem:[%s8468_s3 + $0x144] ss:$16 sps:$4 sm:$0xff]  }
   0xf   :  { %2647 = vmatpush1.bf16.msra.mxu0 %v5667_v14  ;;  %2729 = vmatpush1.bf16.msra.mxu1 %v5668_v15  ;;  %v5707_v45 = vld [vmem:[%s8468_s3 + $0x14c] ss:$16 sps:$4 sm:$0xff]   ;;  %v5709_v46 = vld [vmem:[%s8468_s3 + $0x140] ss:$16 sps:$4 sm:$0xff]   ;;  %v5710_v47 = vld [vmem:[%s8468_s3 + $0x148] ss:$16 sps:$4 sm:$0xff]  }
  0x10   :  { %2648 = vmatprep.subr.bf16.mxu0 %v5669_v16  ;;  %2730 = vmatprep.subr.bf16.mxu1 %v5671_v17  ;;  %v6472_v48 = vsub.s32 0, %v43_v40  ;;  %v5711_v50 = vld [vmem:[%s8468_s3 + $0x164] ss:$16 sps:$4 sm:$0xff]   ;;  %v6477_v51 = vsub.s32 1, %v43_v40  ;;  %v6479_v52 = vsub.s32 2, %v43_v40  ;;  %v6484_v54 = vsub.s32 3, %v43_v40 }
  0x11   :  { %v5713_v53 = vld [vmem:[%s8468_s3 + $0x16c] ss:$16 sps:$4 sm:$0xff]   ;;  %v5715_v55 = vld [vmem:[%s8468_s3 + $0x160] ss:$16 sps:$4 sm:$0xff]   ;;  %v5716_v56 = vld [vmem:[%s8468_s3 + $0x168] ss:$16 sps:$4 sm:$0xff]   ;;  %v6495_v58 = vsub.s32 %v85_v49, %v43_v40 }
  0x12   :  { %8489 = vst [vmem:[#allocation5_spill] sm:$0xff] %v6477_v51  ;;  %v63_v57 = vld [vmem:[%s8466_s1] ss:$8 sm:$0xf]  ;;  %v5717_v59 = vld [vmem:[%s8468_s3 + $0x184] ss:$16 sps:$4 sm:$0xff]  }
  0x13   :  { %2649 = vmatpush1.bf16.msra.mxu0 %v5673_v18  ;;  %2731 = vmatpush1.bf16.msra.mxu1 %v5674_v19  ;;  %v68_v60 = vrot.slane %v63_v57, %v6472_v48  ;;  %v72_v61 = vrot.slane %v63_v57, %v6477_v51  ;;  %v76_v62 = vrot.slane %v63_v57, %v6479_v52  ;;  %v5095_v63 = vld [vmem:[%s8466_s1 + $0x1] ss:$8 sm:$0xf]  ;;  %v5719_v0 = vld [vmem:[%s8468_s3 + $0x18c] ss:$16 sps:$4 sm:$0xff]  }
  0x14   :  { %2650 = vmatprep.subr.bf16.mxu0 %v5675_v20  ;;  %2732 = vmatprep.subr.bf16.mxu1 %v5677_v21  ;;  %v80_v1 = vrot.slane %v63_v57, %v6484_v54  ;;  %v134_v2 = vrot.slane %v5095_v63, %v6472_v48  ;;  %v138_v3 = vrot.slane %v5095_v63, %v6477_v51  ;;  %v5097_v4 = vld [vmem:[%s8466_s1 + $0x2] ss:$8 sm:$0xf]  ;;  %v5099_v13 = vld [vmem:[%s8466_s1 + $0x3] ss:$8 sm:$0xf] }
  0x15   :  { %v81_v5 = vcombine.low %v68_v60, %v72_v61  ;;  %v142_v6 = vrot.slane %v5095_v63, %v6479_v52  ;;  %v146_v7 = vrot.slane %v5095_v63, %v6484_v54  ;;  %v200_v8 = vrot.slane %v5097_v4, %v6472_v48  ;;  %v5721_v14 = vld [vmem:[%s8468_s3 + $0x180] ss:$16 sps:$4 sm:$0xff]   ;;  %v5722_v15 = vld [vmem:[%s8468_s3 + $0x188] ss:$16 sps:$4 sm:$0xff]   ;;  %v5723_v19 = vld [vmem:[%s8468_s3 + $0x1a4] ss:$16 sps:$4 sm:$0xff]  }
  0x16   :  { %v82_v9 = vcombine.low %v76_v62, %v80_v1  ;;  %v147_v10 = vcombine.low %v134_v2, %v138_v3  ;;  %v204_v11 = vrot.slane %v5097_v4, %v6477_v51  ;;  %v208_v12 = vrot.slane %v5097_v4, %v6479_v52  ;;  %v5725_v20 = vld [vmem:[%s8468_s3 + $0x1ac] ss:$16 sps:$4 sm:$0xff]   ;;  %v5728_v36 = vld [vmem:[%s8468_s3 + $0x1a8] ss:$16 sps:$4 sm:$0xff]   ;;  %v5729_v41 = vld [vmem:[%s8468_s3 + $0x1c4] ss:$16 sps:$4 sm:$0xff]  }
  0x17   :  { %2651 = vmatpush1.bf16.msra.mxu0 %v5679_v22  ;;  %2733 = vmatpush1.bf16.msra.mxu1 %v5680_v23  ;;  %v89_v16 = vrot.slane %v81_v5, %v6495_v58  ;;  %v148_v17 = vcombine.low %v142_v6, %v146_v7  ;;  %v212_v18 = vrot.slane %v5097_v4, %v6484_v54  ;;  %v5731_v42 = vld [vmem:[%s8468_s3 + $0x1cc] ss:$16 sps:$4 sm:$0xff]   ;;  %v5734_v61 = vld [vmem:[%s8468_s3 + $0x1c8] ss:$16 sps:$4 sm:$0xff]   ;;  %v5735_v2 = vld [vmem:[%s8468_s3 + $0x1e4] ss:$16 sps:$4 sm:$0xff]  }
  0x18   :  { %2652 = vmatprep.subr.bf16.mxu0 %v5681_v24  ;;  %2734 = vmatprep.subr.bf16.mxu1 %v5683_v25  ;;  %v96_v21 = vrot.slane %v82_v9, %v6495_v58  ;;  %v155_v22 = vrot.slane %v147_v10, %v6495_v58  ;;  %v213_v23 = vcombine.low %v200_v8, %v204_v11  ;;  %v62_v24 = vld [vmem:[%s8465_s0] sm:$0xff]  ;;  %v5737_v3 = vld [vmem:[%s8468_s3 + $0x1ec] ss:$16 sps:$4 sm:$0xff]  }
  0x19   :  { %v162_v25 = vrot.slane %v148_v17, %v6495_v58  ;;  %v5103_v1 = vld [vmem:[%s8466_s1 + $0x5] ss:$8 sm:$0xf]  ;;  %v5739_v10 = vld [vmem:[%s8468_s3 + $0x1e0] ss:$16 sps:$4 sm:$0xff]  }
  0x1b   :  { %2653 = vmatpush1.bf16.msra.mxu0 %v5685_v26  ;;  %2735 = vmatpush1.bf16.msra.mxu1 %v5686_v27  ;;  %v214_v26 = vcombine.low %v208_v12, %v212_v18  ;;  %v266_v27 = vrot.slane %v5099_v13, %v6472_v48  ;;  %v402_v18 = vrot.slane %v5103_v1, %v6477_v51 }
  0x1c   :  { %2654 = vmatprep.subr.bf16.mxu0 %v5687_v28  ;;  %2736 = vmatprep.subr.bf16.mxu1 %v5689_v29  ;;  %v270_v28 = vrot.slane %v5099_v13, %v6477_v51  ;;  %v5101_v29 = vld [vmem:[%s8466_s1 + $0x4] ss:$8 sm:$0xf] }
  0x1d   :  { %v340_v60 = vrot.slane %v5101_v29, %v6479_v52  ;;  %v344_v6 = vrot.slane %v5101_v29, %v6484_v54 }
  0x1e   :  { %v279_v40 = vcombine.low %v266_v27, %v270_v28  ;;  %v5100_v28 = vld [vmem:[%s8465_s0 + $0x20] sm:$0xff] }
  0x1f   :  { %2655 = vmatpush1.bf16.msra.mxu0 %v5691_v30  ;;  %2737 = vmatpush1.bf16.msra.mxu1 %v5692_v31  ;;  %v97_v30 = vcombine.low %v89_v16, %v96_v21  ;;  %v5094_v31 = vld [vmem:[%s8465_s0 + $0x8] sm:$0xff] }
  0x20   :  { %2656 = vmatprep.subr.bf16.mxu0 %v5693_v32  ;;  %2738 = vmatprep.subr.bf16.mxu1 %v5695_v33  ;;  %v221_v32 = vrot.slane %v213_v23, %v6495_v58  ;;  %v274_v33 = vrot.slane %v5099_v13, %v6479_v52  ;;  %v406_v23 = vrot.slane %v5103_v1, %v6479_v52 }
  0x23   :  { %2657 = vmatpush1.bf16.msra.mxu0 %v5697_v34  ;;  %2739 = vmatpush1.bf16.msra.mxu1 %v5698_v35  ;;  %v278_v34 = vrot.slane %v5099_v13, %v6484_v54  ;;  %v5727_v35 = vld [vmem:[%s8468_s3 + $0x1a0] ss:$16 sps:$4 sm:$0xff]   ;;  %v346_v13 = vcombine.low %v340_v60, %v344_v6 }
  0x24   :  { %2658 = vmatprep.subr.bf16.mxu0 %v5699_v37  ;;  %2740 = vmatprep.subr.bf16.mxu1 %v5701_v38  ;;  %v6563_v37 = vld [vmem:[%s8467_s2] sm:$0xf]  ;;  %v163_v38 = vcombine.low %v155_v22, %v162_v25 }
  0x25   :  { %v360_v22 = vrot.slane %v346_v13, %v6495_v58 }
  0x27   :  { %2659 = vmatpush1.bf16.msra.mxu0 %v5703_v39  ;;  %2741 = vmatpush1.bf16.msra.mxu1 %v5704_v43  ;;  %v228_v39 = vrot.slane %v214_v26, %v6495_v58  ;;  %v6572_v43 = vmul.f32 %v97_v30, %v62_v24  ;;  %v410_v24 = vrot.slane %v5103_v1, %v6484_v54 }
  0x28   :  { %2660 = vmatprep.subr.bf16.mxu0 %v5705_v44  ;;  %2742 = vmatprep.subr.bf16.mxu1 %v5707_v45  ;;  %v5096_v44 = vld [vmem:[%s8465_s0 + $0x10] sm:$0xff]  ;;  %v280_v45 = vcombine.low %v274_v33, %v278_v34 }
  0x29   :  { %v229_v49 = vcombine.low %v221_v32, %v228_v39  ;;  %v6589_v57 = vrot.slane %v6572_v43, %v6495_v58  ;;  %v412_v33 = vcombine.low %v406_v23, %v410_v24 }
  0x2b   :  { %2661 = vmatpush1.bf16.msra.mxu0 %v5709_v46  ;;  %2743 = vmatpush1.bf16.msra.mxu1 %v5710_v47  ;;  %v332_v46 = vrot.slane %v5101_v29, %v6472_v48  ;;  %v6578_v47 = vmul.f32 %v5094_v31, %v163_v38  ;;  %v6600_v63 = vmul.f32 %v5096_v44, %v229_v49  ;;  %v5107_v31 = vld [vmem:[%s8466_s1 + $0x7] ss:$8 sm:$0xf] }
  0x2c   :  { %2662 = vmatprep.subr.bf16.mxu0 %v5711_v50  ;;  %2744 = vmatprep.subr.bf16.mxu1 %v5713_v53  ;;  %v287_v50 = vrot.slane %v279_v40, %v6495_v58  ;;  %v336_v53 = vrot.slane %v5101_v29, %v6477_v51  ;;  %v116_v4 = vcombine.high %v6589_v57, %v6589_v57  ;;  %v5746_v40 = vld [vmem:[%s8468_s3 + $0x20c] ss:$16 sps:$4 sm:$0xff]  }
  0x2d   :  { %v6598_v62 = vrot.slane %v6578_v47, %v6495_v58  ;;  %v6621_v8 = vrot.slane %v6600_v63, %v6495_v58  ;;  %v530_v44 = vrot.slane %v5107_v31, %v6472_v48  ;;  %v5102_v49 = vld [vmem:[%s8465_s0 + $0x28] sm:$0xff] }
  0x2e   :  { %v345_v9 = vcombine.low %v332_v46, %v336_v53  ;;  %v5109_v46 = vld [vmem:[%s8466_s1 + $0x20] ss:$8 sm:$0xf] }
  0x2f   :  { %2663 = vmatpush1.bf16.msra.mxu0 %v5715_v55  ;;  %2745 = vmatpush1.bf16.msra.mxu1 %v5716_v56  ;;  %v5733_v55 = vld [vmem:[%s8468_s3 + $0x1c0] ss:$16 sps:$4 sm:$0xff]   ;;  %v49_v56 = vrot.slane %v6563_v37, %v6477_v51  ;;  %v182_v7 = vcombine.high %v6598_v62, %v6598_v62  ;;  %v248_v16 = vcombine.high %v6621_v8, %v6621_v8 }
  0x30   :  { %2664 = vmatprep.subr.bf16.mxu0 %v5717_v59  ;;  %2746 = vmatprep.subr.bf16.mxu1 %v5719_v0  ;;  %v294_v59 = vrot.slane %v280_v45, %v6495_v58  ;;  %v5098_v0 = vld [vmem:[%s8465_s0 + $0x18] sm:$0xff]  ;;  %v353_v17 = vrot.slane %v345_v9, %v6495_v58  ;;  %v534_v45 = vrot.slane %v5107_v31, %v6477_v51  ;;  %v5104_v9 = vld [vmem:[%s8465_s0 + $0x30] sm:$0xff] }
  0x31   :  { %v123_v11 = vadd.f32 %v116_v4, %v49_v56  ;;  %v542_v56 = vrot.slane %v5107_v31, %v6484_v54  ;;  %v596_v4 = vrot.slane %v5109_v46, %v6472_v48 }
  0x32   :  { %v295_v5 = vcombine.low %v287_v50, %v294_v59  ;;  %v361_v32 = vcombine.low %v353_v17, %v360_v22 }
  0x33   :  { %2665 = vmatpush1.bf16.msra.mxu0 %v5721_v14  ;;  %2747 = vmatpush1.bf16.msra.mxu1 %v5722_v15  ;;  %v398_v14 = vrot.slane %v5103_v1, %v6472_v48  ;;  %v5740_v15 = vld [vmem:[%s8468_s3 + $0x1e8] ss:$16 sps:$4 sm:$0xff]  }
  0x34   :  { %2666 = vmatprep.subr.bf16.mxu0 %v5723_v19  ;;  %2748 = vmatprep.subr.bf16.mxu1 %v5725_v20  ;;  %v6626_v12 = vmul.f32 %v5098_v0, %v295_v5  ;;  %v5105_v19 = vld [vmem:[%s8466_s1 + $0x6] ss:$8 sm:$0xf]  ;;  %v189_v20 = vadd.f32 %v182_v7, %v123_v11  ;;  %v543_v0 = vcombine.low %v530_v44, %v534_v45  ;;  %v5111_v1 = vld [vmem:[%s8466_s1 + $0x21] ss:$8 sm:$0xf] }
  0x35   :  { %v411_v25 = vcombine.low %v398_v14, %v402_v18  ;;  %v464_v29 = vrot.slane %v5105_v19, %v6472_v48  ;;  %v468_v30 = vrot.slane %v5105_v19, %v6477_v51  ;;  %v476_v38 = vrot.slane %v5105_v19, %v6484_v54  ;;  %v5106_v14 = vld [vmem:[%s8465_s0 + $0x38] sm:$0xff] }
  0x36   :  { %v6641_v21 = vrot.slane %v6626_v12, %v6495_v58  ;;  %v255_v26 = vadd.f32 %v248_v16, %v189_v20  ;;  %v600_v5 = vrot.slane %v5109_v46, %v6477_v51  ;;  %v604_v11 = vrot.slane %v5109_v46, %v6479_v52  ;;  %v5113_v18 = vld [vmem:[%s8466_s1 + $0x22] ss:$8 sm:$0xf] }
  0x37   :  { %2667 = vmatpush1.bf16.msra.mxu0 %v5727_v35  ;;  %2749 = vmatpush1.bf16.msra.mxu1 %v5728_v36  ;;  %v419_v34 = vrot.slane %v411_v25, %v6495_v58  ;;  %v5743_v35 = vld [vmem:[%s8468_s3 + $0x204] ss:$16 sps:$4 sm:$0xff]   ;;  %v472_v36 = vrot.slane %v5105_v19, %v6479_v52  ;;  %v477_v39 = vcombine.low %v464_v29, %v468_v30 }
  0x38   :  { %2668 = vmatprep.subr.bf16.mxu0 %v5729_v41  ;;  %2750 = vmatprep.subr.bf16.mxu1 %v5731_v42  ;;  %v314_v27 = vcombine.high %v6641_v21, %v6641_v21  ;;  %v6665_v41 = vmul.f32 %v5100_v28, %v361_v32  ;;  %v426_v42 = vrot.slane %v412_v33, %v6495_v58  ;;  %v5108_v33 = vld [vmem:[%s8465_s0 + $0x40] sm:$0xff] }
  0x39   :  { %v478_v50 = vcombine.low %v472_v36, %v476_v38  ;;  %v485_v53 = vrot.slane %v477_v39, %v6495_v58  ;;  %v608_v16 = vrot.slane %v5109_v46, %v6484_v54  ;;  %v609_v17 = vcombine.low %v596_v4, %v600_v5 }
  0x3a   :  { %v321_v59 = vadd.f32 %v314_v27, %v255_v26  ;;  %v6681_v60 = vrot.slane %v6665_v41, %v6495_v58  ;;  %v662_v22 = vrot.slane %v5111_v1, %v6472_v48  ;;  %v666_v28 = vrot.slane %v5111_v1, %v6477_v51 }
  0x3b   :  { %2669 = vmatpush1.bf16.msra.mxu0 %v5733_v55  ;;  %2751 = vmatpush1.bf16.msra.mxu1 %v5734_v61  ;;  %v538_v55 = vrot.slane %v5107_v31, %v6479_v52  ;;  %v427_v61 = vcombine.low %v419_v34, %v426_v42  ;;  %v610_v25 = vcombine.low %v604_v11, %v608_v16 }
  0x3c   :  { %2670 = vmatprep.subr.bf16.mxu0 %v5735_v2  ;;  %2752 = vmatprep.subr.bf16.mxu1 %v5737_v3  ;;  %v492_v2 = vrot.slane %v478_v50, %v6495_v58  ;;  %v380_v6 = vcombine.high %v6681_v60, %v6681_v60  ;;  %v617_v26 = vrot.slane %v609_v17, %v6495_v58  ;;  %v5112_v17 = vld [vmem:[%s8465_s0 + $0x50] sm:$0xff] }
  0x3d   :  { %v544_v3 = vcombine.low %v538_v55, %v542_v56  ;;  %v6691_v7 = vmul.f32 %v5102_v49, %v427_v61  ;;  %v670_v29 = vrot.slane %v5111_v1, %v6479_v52  ;;  %v674_v30 = vrot.slane %v5111_v1, %v6484_v54  ;;  %v5110_v61 = vld [vmem:[%s8465_s0 + $0x48] sm:$0xff] }
  0x3e   :  { %v493_v13 = vcombine.low %v485_v53, %v492_v2  ;;  %v387_v19 = vadd.f32 %v380_v6, %v321_v59  ;;  %v624_v34 = vrot.slane %v610_v25, %v6495_v58  ;;  %v675_v38 = vcombine.low %v662_v22, %v666_v28  ;;  %v5117_v1 = vld [vmem:[%s8466_s1 + $0x24] ss:$8 sm:$0xf] }
  0x3f   :  { %2671 = vmatpush1.bf16.msra.mxu0 %v5739_v10  ;;  %2753 = vmatpush1.bf16.msra.mxu1 %v5740_v15  ;;  %v551_v10 = vrot.slane %v543_v0, %v6495_v58  ;;  %v558_v15 = vrot.slane %v544_v3, %v6495_v58  ;;  %v6708_v20 = vrot.slane %v6691_v7, %v6495_v58 }
  0x40   :  { %2681 = vmatprep.subr.bf16.mxu0 %v5743_v35  ;;  %2763 = vmatprep.subr.bf16.mxu1 %v5746_v40  ;;  %v6711_v23 = vmul.f32 %v5104_v9, %v493_v13  ;;  %v5115_v35 = vld [vmem:[%s8466_s1 + $0x23] ss:$8 sm:$0xf]  ;;  %v676_v39 = vcombine.low %v670_v29, %v674_v30  ;;  %v728_v40 = vrot.slane %v5113_v18, %v6472_v48 }
  0x41   :  { %v559_v24 = vcombine.low %v551_v10, %v558_v15  ;;  %v446_v27 = vcombine.high %v6708_v20, %v6708_v20  ;;  %v625_v45 = vcombine.low %v617_v26, %v624_v34  ;;  %v683_v46 = vrot.slane %v675_v38, %v6495_v58 }
  0x42   :  { %v6721_v31 = vrot.slane %v6711_v23, %v6495_v58  ;;  %v690_v49 = vrot.slane %v676_v39, %v6495_v58  ;;  %v732_v50 = vrot.slane %v5113_v18, %v6477_v51  ;;  %v736_v53 = vrot.slane %v5113_v18, %v6479_v52 }
  0x43   :  { %v6723_v32 = vmul.f32 %v5106_v14, %v559_v24  ;;  %v453_v36 = vadd.f32 %v446_v27, %v387_v19  ;;  %v6745_v59 = vmul.f32 %v5108_v33, %v625_v45  ;;  %v740_v0 = vrot.slane %v5113_v18, %v6484_v54  ;;  %v5119_v24 = vld [vmem:[%s8466_s1 + $0x25] ss:$8 sm:$0xf] }
  0x44   :  { %v512_v42 = vcombine.high %v6721_v31, %v6721_v31  ;;  %v691_v2 = vcombine.low %v683_v46, %v690_v49  ;;  %v741_v3 = vcombine.low %v728_v40, %v732_v50  ;;  %v794_v4 = vrot.slane %v5115_v35, %v6472_v48  ;;  %v5114_v40 = vld [vmem:[%s8465_s0 + $0x58] sm:$0xff] }
  0x45   :  { %v6737_v44 = vrot.slane %v6723_v32, %v6495_v58  ;;  %v798_v5 = vrot.slane %v5115_v35, %v6477_v51  ;;  %v6758_v9 = vrot.slane %v6745_v59, %v6495_v58  ;;  %v742_v10 = vcombine.low %v736_v53, %v740_v0  ;;  %v5121_v49 = vld [vmem:[%s8466_s1 + $0x26] ss:$8 sm:$0xf] }
  0x46   :  { %v519_v55 = vadd.f32 %v512_v42, %v453_v36  ;;  %v6760_v11 = vmul.f32 %v5110_v61, %v691_v2  ;;  %v749_v13 = vrot.slane %v741_v3, %v6495_v58  ;;  %v802_v14 = vrot.slane %v5115_v35, %v6479_v52 }
  0x47   :  { %v578_v56 = vcombine.high %v6737_v44, %v6737_v44  ;;  %v806_v15 = vrot.slane %v5115_v35, %v6484_v54  ;;  %v644_v16 = vcombine.high %v6758_v9, %v6758_v9  ;;  %v756_v18 = vrot.slane %v742_v10, %v6495_v58 }
  0x48   :  { %v807_v19 = vcombine.low %v794_v4, %v798_v5  ;;  %v860_v22 = vrot.slane %v5117_v1, %v6472_v48  ;;  %v6777_v25 = vrot.slane %v6760_v11, %v6495_v58  ;;  %v864_v27 = vrot.slane %v5117_v1, %v6477_v51 }
  0x49   :  { %v585_v6 = vadd.f32 %v578_v56, %v519_v55  ;;  %v808_v26 = vcombine.low %v802_v14, %v806_v15  ;;  %v757_v29 = vcombine.low %v749_v13, %v756_v18  ;;  %v868_v33 = vrot.slane %v5117_v1, %v6479_v52  ;;  %v5116_v13 = vld [vmem:[%s8465_s0 + $0x60] sm:$0xff] }
  0x4a   :  { %v815_v30 = vrot.slane %v807_v19, %v6495_v58  ;;  %v710_v34 = vcombine.high %v6777_v25, %v6777_v25  ;;  %v872_v36 = vrot.slane %v5117_v1, %v6484_v54  ;;  %v873_v38 = vcombine.low %v860_v22, %v864_v27 }
  0x4b   :  { %v651_v28 = vadd.f32 %v644_v16, %v585_v6  ;;  %v822_v35 = vrot.slane %v808_v26, %v6495_v58  ;;  %v6786_v39 = vmul.f32 %v5112_v17, %v757_v29  ;;  %v926_v42 = vrot.slane %v5119_v24, %v6472_v48  ;;  %v5123_v6 = vld [vmem:[%s8466_s1 + $0x27] ss:$8 sm:$0xf] }
  0x4c   :  { %v930_v45 = vrot.slane %v5119_v24, %v6477_v51  ;;  %v934_v46 = vrot.slane %v5119_v24, %v6479_v52  ;;  %v874_v53 = vcombine.low %v868_v33, %v872_v36  ;;  %v881_v55 = vrot.slane %v873_v38, %v6495_v58  ;;  %v5120_v38 = vld [vmem:[%s8465_s0 + $0x70] sm:$0xff] }
  0x4d   :  { %v823_v50 = vcombine.low %v815_v30, %v822_v35  ;;  %v717_v56 = vadd.f32 %v710_v34, %v651_v28  ;;  %v6800_v61 = vrot.slane %v6786_v39, %v6495_v58  ;;  %v938_v0 = vrot.slane %v5119_v24, %v6484_v54  ;;  %v5118_v30 = vld [vmem:[%s8465_s0 + $0x68] sm:$0xff] }
  0x4e   :  { %v939_v1 = vcombine.low %v926_v42, %v930_v45  ;;  %v888_v3 = vrot.slane %v874_v53, %v6495_v58  ;;  %v992_v4 = vrot.slane %v5121_v49, %v6472_v48  ;;  %v996_v5 = vrot.slane %v5121_v49, %v6477_v51  ;;  %v5125_v35 = vld [vmem:[%s8466_s1 + $0x40] ss:$8 sm:$0xf] }
  0x4f   :  { %v6803_v2 = vmul.f32 %v5114_v40, %v823_v50  ;;  %v776_v10 = vcombine.high %v6800_v61, %v6800_v61  ;;  %v940_v14 = vcombine.low %v934_v46, %v938_v0  ;;  %v1000_v16 = vrot.slane %v5121_v49, %v6479_v52 }
  0x50   :  { %v947_v15 = vrot.slane %v939_v1, %v6495_v58  ;;  %v889_v18 = vcombine.low %v881_v55, %v888_v3  ;;  %v1004_v19 = vrot.slane %v5121_v49, %v6484_v54  ;;  %v1005_v26 = vcombine.low %v992_v4, %v996_v5 }
  0x51   :  { %v6820_v17 = vrot.slane %v6803_v2, %v6495_v58  ;;  %v783_v22 = vadd.f32 %v776_v10, %v717_v56  ;;  %v954_v24 = vrot.slane %v940_v14, %v6495_v58  ;;  %v1058_v27 = vrot.slane %v5123_v6, %v6472_v48 }
  0x52   :  { %v6827_v29 = vmul.f32 %v5116_v13, %v889_v18  ;;  %v1006_v33 = vcombine.low %v1000_v16, %v1004_v19  ;;  %v1062_v34 = vrot.slane %v5123_v6, %v6477_v51  ;;  %v1013_v40 = vrot.slane %v1005_v26, %v6495_v58  ;;  %v5122_v13 = vld [vmem:[%s8465_s0 + $0x78] sm:$0xff] }
  0x53   :  { %v842_v28 = vcombine.high %v6820_v17, %v6820_v17  ;;  %v955_v36 = vcombine.low %v947_v15, %v954_v24  ;;  %v1066_v42 = vrot.slane %v5123_v6, %v6479_v52  ;;  %v1070_v45 = vrot.slane %v5123_v6, %v6484_v54  ;;  %v5127_v6 = vld [vmem:[%s8466_s1 + $0x41] ss:$8 sm:$0xf]  ;;  %v5129_v16 = vld [vmem:[%s8466_s1 + $0x42] ss:$8 sm:$0xf] }
  0x54   :  { %v6844_v49 = vrot.slane %v6827_v29, %v6495_v58  ;;  %v1020_v50 = vrot.slane %v1006_v33, %v6495_v58  ;;  %v1071_v55 = vcombine.low %v1058_v27, %v1062_v34  ;;  %v1124_v0 = vrot.slane %v5125_v35, %v6472_v48 }
  0x55   :  { %v849_v46 = vadd.f32 %v842_v28, %v783_v22  ;;  %v6847_v53 = vmul.f32 %v5118_v30, %v955_v36  ;;  %v1072_v56 = vcombine.low %v1066_v42, %v1070_v45  ;;  %v1128_v4 = vrot.slane %v5125_v35, %v6477_v51 }
  0x56   :  { %v908_v1 = vcombine.high %v6844_v49, %v6844_v49  ;;  %v1021_v3 = vcombine.low %v1013_v40, %v1020_v50  ;;  %v1132_v5 = vrot.slane %v5125_v35, %v6479_v52  ;;  %v1079_v14 = vrot.slane %v1071_v55, %v6495_v58 }
  0x57   :  { %v6859_v10 = vrot.slane %v6847_v53, %v6495_v58  ;;  %v1086_v15 = vrot.slane %v1072_v56, %v6495_v58  ;;  %v1136_v22 = vrot.slane %v5125_v35, %v6484_v54  ;;  %v1137_v24 = vcombine.low %v1124_v0, %v1128_v4  ;;  %v5124_v35 = vld [vmem:[%s8465_s0 + $0x80] sm:$0xff] }
  0x58   :  { %v915_v18 = vadd.f32 %v908_v1, %v849_v46  ;;  %v6869_v19 = vmul.f32 %v5120_v38, %v1021_v3  ;;  %v1190_v28 = vrot.slane %v5127_v6, %v6472_v48  ;;  %v1194_v30 = vrot.slane %v5127_v6, %v6477_v51  ;;  %v5131_v46 = vld [vmem:[%s8466_s1 + $0x43] ss:$8 sm:$0xf] }
  0x59   :  { %v974_v26 = vcombine.high %v6859_v10, %v6859_v10  ;;  %v1087_v27 = vcombine.low %v1079_v14, %v1086_v15  ;;  %v1138_v34 = vcombine.low %v1132_v5, %v1136_v22  ;;  %v1145_v36 = vrot.slane %v1137_v24, %v6495_v58 }
  0x5a   :  { %v6878_v33 = vrot.slane %v6869_v19, %v6495_v58  ;;  %v1198_v42 = vrot.slane %v5127_v6, %v6479_v52  ;;  %v1202_v45 = vrot.slane %v5127_v6, %v6484_v54  ;;  %v1203_v56 = vcombine.low %v1190_v28, %v1194_v30 }
  0x5b   :  { %v981_v38 = vadd.f32 %v974_v26, %v915_v18  ;;  %v6881_v40 = vmul.f32 %v5122_v13, %v1087_v27  ;;  %v1152_v55 = vrot.slane %v1138_v34, %v6495_v58  ;;  %v1256_v0 = vrot.slane %v5129_v16, %v6472_v48  ;;  %v5126_v18 = vld [vmem:[%s8465_s0 + $0x88] sm:$0xff] }
  0x5c   :  { %v1040_v50 = vcombine.high %v6878_v33, %v6878_v33  ;;  %v1204_v3 = vcombine.low %v1198_v42, %v1202_v45  ;;  %v1260_v4 = vrot.slane %v5129_v16, %v6477_v51  ;;  %v1211_v13 = vrot.slane %v1203_v56, %v6495_v58  ;;  %v5133_v27 = vld [vmem:[%s8466_s1 + $0x44] ss:$8 sm:$0xf] }
  0x5d   :  { %v6897_v1 = vrot.slane %v6881_v40, %v6495_v58  ;;  %v1153_v6 = vcombine.low %v1145_v36, %v1152_v55  ;;  %v1264_v14 = vrot.slane %v5129_v16, %v6479_v52  ;;  %v1268_v24 = vrot.slane %v5129_v16, %v6484_v54 }
  0x5e   :  { %v1047_v5 = vadd.f32 %v1040_v50, %v981_v38  ;;  %v1218_v22 = vrot.slane %v1204_v3, %v6495_v58  ;;  %v1269_v26 = vcombine.low %v1256_v0, %v1260_v4  ;;  %v1322_v30 = vrot.slane %v5131_v46, %v6472_v48  ;;  %v5128_v0 = vld [vmem:[%s8465_s0 + $0x90] sm:$0xff] }
  0x5f   :  { %8490 = vst [vmem:[#allocation6_spill] sm:$0xff] %v6897_v1  ;;  %v1106_v15 = vcombine.high %v6897_v1, %v6897_v1  ;;  %v6912_v28 = vmul.f32 %v5124_v35, %v1153_v6  ;;  %v1326_v34 = vrot.slane %v5131_v46, %v6477_v51  ;;  %v1330_v36 = vrot.slane %v5131_v46, %v6479_v52 }
  0x60   :  { %v1219_v38 = vcombine.low %v1211_v13, %v1218_v22  ;;  %v1270_v42 = vcombine.low %v1264_v14, %v1268_v24  ;;  %v1277_v45 = vrot.slane %v1269_v26, %v6495_v58  ;;  %v1334_v55 = vrot.slane %v5131_v46, %v6484_v54 }
  0x61   :  { %v1113_v50 = vadd.f32 %v1106_v15, %v1047_v5  ;;  %v6920_v16 = vrot.slane %v6912_v28, %v6495_v58  ;;  %v1335_v56 = vcombine.low %v1322_v30, %v1326_v34  ;;  %v1388_v4 = vrot.slane %v5133_v27, %v6472_v48  ;;  %v5135_v5 = vld [vmem:[%s8466_s1 + $0x45] ss:$8 sm:$0xf] }
  0x62   :  { %v6923_v35 = vmul.f32 %v5126_v18, %v1219_v38  ;;  %v1284_v3 = vrot.slane %v1270_v42, %v6495_v58  ;;  %v1392_v6 = vrot.slane %v5133_v27, %v6477_v51  ;;  %v1336_v13 = vcombine.low %v1330_v36, %v1334_v55  ;;  %v5130_v55 = vld [vmem:[%s8465_s0 + $0x98] sm:$0xff] }
  0x63   :  { %8491 = vst [vmem:[#allocation7_spill] sm:$0xff] %v6920_v16  ;;  %v1172_v46 = vcombine.high %v6920_v16, %v6920_v16  ;;  %v1343_v14 = vrot.slane %v1335_v56, %v6495_v58  ;;  %v1396_v15 = vrot.slane %v5133_v27, %v6479_v52  ;;  %v1400_v24 = vrot.slane %v5133_v27, %v6484_v54  ;;  %v5137_v27 = vld [vmem:[%s8466_s1 + $0x46] ss:$8 sm:$0xf] }
  0x64   :  { %v6940_v18 = vrot.slane %v6923_v35, %v6495_v58  ;;  %v1285_v22 = vcombine.low %v1277_v45, %v1284_v3  ;;  %v1350_v30 = vrot.slane %v1336_v13, %v6495_v58  ;;  %v1401_v34 = vcombine.low %v1388_v4, %v1392_v6 }
  0x65   :  { %v1179_v26 = vadd.f32 %v1172_v46, %v1113_v50  ;;  %v1454_v38 = vrot.slane %v5135_v5, %v6472_v48  ;;  %v1402_v56 = vcombine.low %v1396_v15, %v1400_v24  ;;  %v1458_v45 = vrot.slane %v5135_v5, %v6477_v51 }
  0x66   :  { %8492 = vst [vmem:[#allocation8_spill] sm:$0xff] %v6940_v18  ;;  %v1238_v36 = vcombine.high %v6940_v18, %v6940_v18  ;;  %v6947_v42 = vmul.f32 %v5128_v0, %v1285_v22  ;;  %v1351_v50 = vcombine.low %v1343_v14, %v1350_v30  ;;  %v1409_v3 = vrot.slane %v1401_v34, %v6495_v58  ;;  %v5132_v14 = vld [vmem:[%s8465_s0 + $0xa0] sm:$0xff] }
  0x67   :  { %v1462_v4 = vrot.slane %v5135_v5, %v6479_v52  ;;  %v1466_v6 = vrot.slane %v5135_v5, %v6484_v54  ;;  %v1416_v13 = vrot.slane %v1402_v56, %v6495_v58  ;;  %v1467_v24 = vcombine.low %v1454_v38, %v1458_v45 }
  0x68   :  { %v1245_v0 = vadd.f32 %v1238_v36, %v1179_v26  ;;  %v6961_v46 = vrot.slane %v6947_v42, %v6495_v58  ;;  %v6966_v22 = vmul.f32 %v5130_v55, %v1351_v50  ;;  %v1520_v5 = vrot.slane %v5137_v27, %v6472_v48  ;;  %v5134_v36 = vld [vmem:[%s8465_s0 + $0xa8] sm:$0xff] }
  0x69   :  { %v1468_v30 = vcombine.low %v1462_v4, %v1466_v6  ;;  %v1417_v34 = vcombine.low %v1409_v3, %v1416_v13  ;;  %v1524_v56 = vrot.slane %v5137_v27, %v6477_v51  ;;  %v1528_v55 = vrot.slane %v5137_v27, %v6479_v52  ;;  %v5139_v50 = vld [vmem:[%s8466_s1 + $0x47] ss:$8 sm:$0xf] }
  0x6a   :  { %8493 = vst [vmem:[#allocation9_spill] sm:$0xff] %v6961_v46  ;;  %8494 = vst [vmem:[#allocation10_spill] sm:$0xff] %v6966_v22  ;;  %v1304_v26 = vcombine.high %v6961_v46, %v6961_v46  ;;  %v6986_v45 = vrot.slane %v6966_v22, %v6495_v58  ;;  %v1475_v3 = vrot.slane %v1467_v24, %v6495_v58  ;;  %v5141_v24 = vld [vmem:[%s8466_s1 + $0x60] ss:$8 sm:$0xf] }
  0x6b   :  { %v1482_v4 = vrot.slane %v1468_v30, %v6495_v58  ;;  %v6990_v13 = vmul.f32 %v5132_v14, %v1417_v34  ;;  %v1532_v15 = vrot.slane %v5137_v27, %v6484_v54  ;;  %v1533_v46 = vcombine.low %v1520_v5, %v1524_v56  ;;  %v5136_v34 = vld [vmem:[%s8465_s0 + $0xb0] sm:$0xff] }
  0x6c   :  { %8495 = vst [vmem:[#allocation11_spill] sm:$0xff] %v6986_v45  ;;  %v1311_v6 = vadd.f32 %v1304_v26, %v1245_v0  ;;  %v1370_v18 = vcombine.high %v6986_v45, %v6986_v45  ;;  %v1586_v38 = vrot.slane %v5139_v50, %v6472_v48  ;;  %v1590_v1 = vrot.slane %v5139_v50, %v6477_v51 }
  0x6d   :  { %8496 = vst [vmem:[#allocation12_spill] sm:$0xff] %v6990_v13  ;;  %v1483_v16 = vcombine.low %v1475_v3, %v1482_v4  ;;  %v7004_v14 = vrot.slane %v6990_v13, %v6495_v58  ;;  %v1534_v27 = vcombine.low %v1528_v55, %v1532_v15  ;;  %v1541_v30 = vrot.slane %v1533_v46, %v6495_v58  ;;  %v5143_v4 = vld [vmem:[%s8466_s1 + $0x61] ss:$8 sm:$0xf] }
  0x6e   :  { %v1377_v5 = vadd.f32 %v1370_v18, %v1311_v6  ;;  %v1594_v56 = vrot.slane %v5139_v50, %v6479_v52  ;;  %v1598_v3 = vrot.slane %v5139_v50, %v6484_v54  ;;  %v1599_v18 = vcombine.low %v1586_v38, %v1590_v1 }
  0x6f   :  { %8497 = vst [vmem:[#allocation13_spill] sm:$0xff] %v7004_v14  ;;  %v7007_v26 = vmul.f32 %v5134_v36, %v1483_v16  ;;  %v1436_v15 = vcombine.high %v7004_v14, %v7004_v14  ;;  %v1548_v46 = vrot.slane %v1534_v27, %v6495_v58  ;;  %v1652_v16 = vrot.slane %v5141_v24, %v6472_v48 }
  0x70   :  { %v1600_v50 = vcombine.low %v1594_v56, %v1598_v3  ;;  %v1656_v6 = vrot.slane %v5141_v24, %v6477_v51  ;;  %v1607_v13 = vrot.slane %v1599_v18, %v6495_v58  ;;  %v1660_v14 = vrot.slane %v5141_v24, %v6479_v52  ;;  %v5138_v56 = vld [vmem:[%s8465_s0 + $0xb8] sm:$0xff] }
  0x71   :  { %8498 = vst [vmem:[#allocation14_spill] sm:$0xff] %v7007_v26  ;;  %v7025_v55 = vrot.slane %v7007_v26, %v6495_v58  ;;  %v1443_v0 = vadd.f32 %v1436_v15, %v1377_v5  ;;  %v1549_v45 = vcombine.low %v1541_v30, %v1548_v46  ;;  %v1664_v27 = vrot.slane %v5141_v24, %v6484_v54  ;;  %v5145_v15 = vld [vmem:[%s8466_s1 + $0x62] ss:$8 sm:$0xf] }
  0x72   :  { %v1614_v38 = vrot.slane %v1600_v50, %v6495_v58  ;;  %v1665_v36 = vcombine.low %v1652_v16, %v1656_v6  ;;  %v1718_v30 = vrot.slane %v5143_v4, %v6472_v48  ;;  %v1722_v5 = vrot.slane %v5143_v4, %v6477_v51  ;;  %v5140_v50 = vld [vmem:[%s8465_s0 + $0xc0] sm:$0xff] }
  0x73   :  { %8499 = vst [vmem:[#allocation15_spill] sm:$0xff] %v7025_v55  ;;  %v1502_v1 = vcombine.high %v7025_v55, %v7025_v55  ;;  %v7034_v22 = vmul.f32 %v5136_v34, %v1549_v45  ;;  %v1726_v3 = vrot.slane %v5143_v4, %v6479_v52  ;;  %v299_v24 = vcombine.high %v6626_v12, %v6626_v12 }
  0x74   :  { %v1615_v46 = vcombine.low %v1607_v13, %v1614_v38  ;;  %v1666_v45 = vcombine.low %v1660_v14, %v1664_v27  ;;  %v1673_v34 = vrot.slane %v1665_v36, %v6495_v58  ;;  %v1730_v6 = vrot.slane %v5143_v4, %v6484_v54 }
  0x75   :  { %v1509_v18 = vadd.f32 %v1502_v1, %v1443_v0  ;;  %v7050_v16 = vrot.slane %v7034_v22, %v6495_v58  ;;  %v1731_v55 = vcombine.low %v1718_v30, %v1722_v5  ;;  %v1784_v13 = vrot.slane %v5145_v15, %v6472_v48 }
  0x76   :  { %v7056_v26 = vmul.f32 %v5138_v56, %v1615_v46  ;;  %v1680_v12 = vrot.slane %v1666_v45, %v6495_v58  ;;  %v1788_v14 = vrot.slane %v5145_v15, %v6477_v51  ;;  %v1732_v36 = vcombine.low %v1726_v3, %v1730_v6  ;;  %v5142_v46 = vld [vmem:[%s8465_s0 + $0xc8] sm:$0xff] }
  0x77   :  { %v1568_v0 = vcombine.high %v7050_v16, %v7050_v16  ;;  %v1739_v1 = vrot.slane %v1731_v55, %v6495_v58  ;;  %v1792_v38 = vrot.slane %v5145_v15, %v6479_v52  ;;  %v365_v4 = vcombine.high %v6665_v41, %v6665_v41 }
  0x78   :  { %v7069_v27 = vrot.slane %v7056_v26, %v6495_v58  ;;  %v1681_v56 = vcombine.low %v1673_v34, %v1680_v12  ;;  %v1796_v30 = vrot.slane %v5145_v15, %v6484_v54  ;;  %v1746_v3 = vrot.slane %v1732_v36, %v6495_v58  ;;  %v7087_v15 = vld [vmem:[%s8467_s2] sm:$0xf] }
  0x79   :  { %v1575_v5 = vadd.f32 %v1568_v0, %v1509_v18  ;;  %v1797_v55 = vcombine.low %v1784_v13, %v1788_v14  ;;  %v8500_v45 = vrot.slane %v6563_v37, %v6472_v48  ;;  %v57_v18 = vrot.slane %v7087_v15, %v6484_v54 }
  0x7a   :  { %v1634_v6 = vcombine.high %v7069_v27, %v7069_v27  ;;  %v7082_v51 = vmul.f32 %v5140_v50, %v1681_v56  ;;  %v1798_v34 = vcombine.low %v1792_v38, %v1796_v30  ;;  %v1747_v12 = vcombine.low %v1739_v1, %v1746_v3 }
  0x7b   :  { %v122_v41 = vadd.f32 %v6589_v57, %v8500_v45  ;;  %v1805_v13 = vrot.slane %v1797_v55, %v6495_v58  ;;  %v8501_v57 = vcombine.high %v6572_v43, %v6572_v43  ;;  %v431_v14 = vcombine.high %v6691_v7, %v6691_v7 }
  0x7c   :  { %v1641_v0 = vadd.f32 %v1634_v6, %v1575_v5  ;;  %v7103_v36 = vrot.slane %v7082_v51, %v6495_v58  ;;  %v1812_v1 = vrot.slane %v1798_v34, %v6495_v58  ;;  %v7106_v38 = vmul.f32 %v5142_v46, %v1747_v12 }
  0x7d   :  { %v188_v37 = vadd.f32 %v6598_v62, %v122_v41  ;;  %v7097_v50 = vrot.slane %v8501_v57, %v6495_v58  ;;  %v5144_v62 = vld [vmem:[%s8465_s0 + $0xd0] sm:$0xff]  ;;  %v8502_v7 = vcombine.high %v6578_v47, %v6578_v47  ;;  %v8503_v3 = vcombine.high %v6600_v63, %v6600_v63 }
  0x7e   :  { %v1700_v5 = vcombine.high %v7103_v36, %v7103_v36  ;;  %v1813_v46 = vcombine.low %v1805_v13, %v1812_v1  ;;  %v497_v45 = vcombine.high %v6711_v23, %v6711_v23  ;;  %v7135_v47 = vrot.slane %v7106_v38, %v6495_v58 }
  0x7f   :  { %v254_v43 = vadd.f32 %v6621_v8, %v188_v37  ;;  %v117_v56 = vcombine.high %v7097_v50, %v7097_v50  ;;  %v7118_v30 = vrot.slane %v8502_v7, %v6495_v58  ;;  %v7126_v55 = vrot.slane %v8503_v3, %v6495_v58 }
  0x80   :  { %v7129_v8 = vrot.slane %v299_v24, %v6495_v58  ;;  %v1707_v34 = vadd.f32 %v1700_v5, %v1641_v0  ;;  %v7138_v12 = vmul.f32 %v5144_v62, %v1813_v46  ;;  %v563_v13 = vcombine.high %v6723_v32, %v6723_v32 }
  0x81   :  { %v320_v41 = vadd.f32 %v6641_v21, %v254_v43  ;;  %v125_v6 = vadd.f32 %v117_v56, %v57_v18  ;;  %v183_v63 = vcombine.high %v7118_v30, %v7118_v30  ;;  %v249_v24 = vcombine.high %v7126_v55, %v7126_v55 }
  0x82   :  { %v1766_v23 = vcombine.high %v7135_v47, %v7135_v47  ;;  %v7150_v21 = vrot.slane %v365_v4, %v6495_v58  ;;  %v7154_v18 = vrot.slane %v7138_v12, %v6495_v58  ;;  %v315_v0 = vcombine.high %v7129_v8, %v7129_v8 }
  0x83   :  { %v386_v37 = vadd.f32 %v6681_v60, %v320_v41  ;;  %v191_v57 = vadd.f32 %v183_v63, %v125_v6  ;;  %v7159_v1 = vrot.slane %v431_v14, %v6495_v58  ;;  %v629_v32 = vcombine.high %v6745_v59, %v6745_v59 }
  0x84   :  { %v1773_v62 = vadd.f32 %v1766_v23, %v1707_v34  ;;  %v1832_v4 = vcombine.high %v7154_v18, %v7154_v18  ;;  %v381_v56 = vcombine.high %v7150_v21, %v7150_v21  ;;  %v7169_v7 = vrot.slane %v497_v45, %v6495_v58 }
  0x85   :  { %v452_v60 = vadd.f32 %v6708_v20, %v386_v37  ;;  %v257_v43 = vadd.f32 %v249_v24, %v191_v57  ;;  %v695_v14 = vcombine.high %v6760_v11, %v6760_v11  ;;  %v447_v20 = vcombine.high %v7159_v1, %v7159_v1 }
  0x86   :  { %v1839_v46 = vadd.f32 %v1832_v4, %v1773_v62  ;;  %v7177_v3 = vrot.slane %v563_v13, %v6495_v58  ;;  %v761_v41 = vcombine.high %v6786_v39, %v6786_v39  ;;  %v513_v11 = vcombine.high %v7169_v7, %v7169_v7 }
  0x87   :  { %v518_v5 = vadd.f32 %v6721_v31, %v452_v60  ;;  %v323_v59 = vadd.f32 %v315_v0, %v257_v43  ;;  %v7185_v31 = vrot.slane %v629_v32, %v6495_v58  ;;  %v827_v63 = vcombine.high %v6803_v2, %v6803_v2 }
  0x88   :  { %v1843_v45 = vmax.f32 %v1839_v46, 0.0  ;;  %v579_v39 = vcombine.high %v7177_v3, %v7177_v3  ;;  %v893_v37 = vcombine.high %v6827_v29, %v6827_v29  ;;  %v959_v62 = vcombine.high %v6847_v53, %v6847_v53 }
  0x89   :  { %v584_v6 = vadd.f32 %v6737_v44, %v518_v5  ;;  %v389_v34 = vadd.f32 %v381_v56, %v323_v59  ;;  %v7193_v44 = vrot.slane %v695_v14, %v6495_v58  ;;  %v645_v2 = vcombine.high %v7185_v31, %v7185_v31 }
  0x8a   :  { %v1847_v13 = vpack.c.bf16 %v1843_v45, %v1843_v45  ;;  %v1025_v43 = vcombine.high %v6869_v19, %v6869_v19  ;;  %v1091_v53 = vcombine.high %v6881_v40, %v6881_v40  ;;  %v53_v19 = vrot.slane %v7087_v15, %v6479_v52 }
  0x8b   :  { %v650_v24 = vadd.f32 %v6758_v9, %v584_v6  ;;  %v455_v23 = vadd.f32 %v447_v20, %v389_v34  ;;  %v7201_v9 = vrot.slane %v761_v41, %v6495_v58  ;;  %v711_v29 = vcombine.high %v7193_v44, %v7193_v44 }
  0x8c   :  { %2672 = vmatprep.mubr.bf16.mxu0 %v1847_v13  ;;  %2754 = vmatprep.mubr.bf16.mxu1 %v1847_v13  ;;  %v1157_v20 = vcombine.high %v6912_v28, %v6912_v28  ;;  %v124_v45 = vadd.f32 %v7097_v50, %v53_v19  ;;  %v1223_v34 = vcombine.high %v6923_v35, %v6923_v35  ;;  %v8504_v13 = vld [vmem:[#allocation6_spill] sm:$0xff] }
  0x8d   :  { %v716_v57 = vadd.f32 %v6777_v25, %v650_v24  ;;  %v521_v0 = vadd.f32 %v513_v11, %v455_v23  ;;  %v7209_v25 = vrot.slane %v827_v63, %v6495_v58  ;;  %v777_v14 = vcombine.high %v7201_v9, %v7201_v9 }
  0x8e   :  { %v190_v63 = vadd.f32 %v7118_v30, %v124_v45  ;;  %v1289_v24 = vcombine.high %v6947_v42, %v6947_v42  ;;  %v8511_v45 = vld [vmem:[#allocation11_spill] sm:$0xff] }
  0x8f   :  { %v782_v32 = vadd.f32 %v6800_v61, %v716_v57  ;;  %v587_v60 = vadd.f32 %v579_v39, %v521_v0  ;;  %v7217_v61 = vrot.slane %v893_v37, %v6495_v58  ;;  %v843_v59 = vcombine.high %v7209_v25, %v7209_v25  ;;  %v8505_v37 = vld [vmem:[#allocation10_spill] sm:$0xff]  ;;  %v8506_v0 = vld [vmem:[#allocation7_spill] sm:$0xff] }
  0x90   :  { %v256_v39 = vadd.f32 %v7126_v55, %v190_v63  ;;  %v1355_v57 = vcombine.high %v8505_v37, %v8505_v37  ;;  %v1619_v63 = vcombine.high %v7056_v26, %v7056_v26 }
  0x91   :  { %v848_v4 = vadd.f32 %v6820_v17, %v782_v32  ;;  %v653_v56 = vadd.f32 %v645_v2, %v587_v60  ;;  %v7225_v17 = vrot.slane %v959_v62, %v6495_v58  ;;  %v909_v40 = vcombine.high %v7217_v61, %v7217_v61  ;;  %v8507_v60 = vld [vmem:[#allocation12_spill] sm:$0xff] }
  0x92   :  { %v7262_v32 = vrot.slane %v1223_v34, %v6495_v58  ;;  %v322_v62 = vadd.f32 %v7129_v8, %v256_v39  ;;  %v8513_v39 = vld [vmem:[#allocation15_spill] sm:$0xff] }
  0x93   :  { %v914_v5 = vadd.f32 %v6844_v49, %v848_v4  ;;  %v719_v46 = vadd.f32 %v711_v29, %v653_v56  ;;  %v7235_v49 = vrot.slane %v1025_v43, %v6495_v58  ;;  %v975_v28 = vcombine.high %v7225_v17, %v7225_v17  ;;  %v8508_v4 = vld [vmem:[#allocation8_spill] sm:$0xff] }
  0x94   :  { %v1421_v29 = vcombine.high %v8507_v60, %v8507_v60  ;;  %v1817_v60 = vcombine.high %v7138_v12, %v7138_v12 }
  0x95   :  { %v980_v41 = vadd.f32 %v6859_v10, %v914_v5  ;;  %v785_v6 = vadd.f32 %v777_v14, %v719_v46  ;;  %v7244_v10 = vrot.slane %v1091_v53, %v6495_v58  ;;  %v1041_v35 = vcombine.high %v7235_v49, %v7235_v49  ;;  %v8509_v5 = vld [vmem:[#allocation14_spill] sm:$0xff] }
  0x96   :  { %v7271_v14 = vrot.slane %v1289_v24, %v6495_v58  ;;  %v388_v53 = vadd.f32 %v7150_v21, %v322_v62  ;;  %v1487_v46 = vcombine.high %v8509_v5, %v8509_v5  ;;  %v8512_v24 = vld [vmem:[#allocation13_spill] sm:$0xff] }
  0x97   :  { %v1046_v11 = vadd.f32 %v6878_v33, %v980_v41  ;;  %v851_v15 = vadd.f32 %v843_v59, %v785_v6  ;;  %v7253_v33 = vrot.slane %v1157_v20, %v6495_v58  ;;  %v1107_v42 = vcombine.high %v7244_v10, %v7244_v10  ;;  %v8510_v59 = vld [vmem:[#allocation9_spill] sm:$0xff] }
  0x98   :  { %v1239_v20 = vcombine.high %v7262_v32, %v7262_v32  ;;  %v7280_v41 = vrot.slane %v1355_v57, %v6495_v58  ;;  %v454_v6 = vadd.f32 %v7159_v1, %v388_v53 }
  0x99   :  { %v1112_v23 = vadd.f32 %v8504_v13, %v1046_v11  ;;  %v917_v50 = vadd.f32 %v909_v40, %v851_v15  ;;  %v1173_v56 = vcombine.high %v7253_v33, %v7253_v33  ;;  %v1553_v40 = vcombine.high %v7034_v22, %v7034_v22 }
  0x9a   :  { %v1305_v11 = vcombine.high %v7271_v14, %v7271_v14  ;;  %v7289_v15 = vrot.slane %v1421_v29, %v6495_v58  ;;  %v1371_v22 = vcombine.high %v7280_v41, %v7280_v41 }
  0x9b   :  { %v1178_v2 = vadd.f32 %v8506_v0, %v1112_v23  ;;  %v983_v30 = vadd.f32 %v975_v28, %v917_v50  ;;  %v520_v28 = vadd.f32 %v7169_v7, %v454_v6  ;;  %v7298_v23 = vrot.slane %v1487_v46, %v6495_v58 }
  0x9c   :  { %v1437_v26 = vcombine.high %v7289_v15, %v7289_v15  ;;  %v7307_v57 = vrot.slane %v1553_v40, %v6495_v58  ;;  %v7339_v46 = vrot.slane %v1817_v60, %v6495_v58  ;;  %v5779_v60 = vld [vmem:[%s8468_s3 + $0x2c4] ss:$16 sps:$4 sm:$0xff]  }
  0x9d   :  { %v1244_v43 = vadd.f32 %v8508_v4, %v1178_v2  ;;  %v1049_v55 = vadd.f32 %v1041_v35, %v983_v30  ;;  %v586_v50 = vadd.f32 %v7177_v3, %v520_v28  ;;  %v1685_v35 = vcombine.high %v7082_v51, %v7082_v51 }
  0x9e   :  { %v1751_v2 = vcombine.high %v7106_v38, %v7106_v38  ;;  %v1503_v51 = vcombine.high %v7298_v23, %v7298_v23  ;;  %v1569_v38 = vcombine.high %v7307_v57, %v7307_v57  ;;  %v1833_v6 = vcombine.high %v7339_v46, %v7339_v46 }
  0x9f   :  { %v1310_v19 = vadd.f32 %v8510_v59, %v1244_v43  ;;  %v1115_v8 = vadd.f32 %v1107_v42, %v1049_v55  ;;  %v652_v0 = vadd.f32 %v7185_v31, %v586_v50  ;;  %v7316_v42 = vrot.slane %v1619_v63, %v6495_v58  ;;  %v5744_v59 = vld [vmem:[%s8468_s3 + $0x208] ss:$16 sps:$4 sm:$0xff]  }
  0xa1   :  { %v1376_v34 = vadd.f32 %v8511_v45, %v1310_v19  ;;  %v1181_v21 = vadd.f32 %v1173_v56, %v1115_v8  ;;  %v718_v62 = vadd.f32 %v7193_v44, %v652_v0  ;;  %v1635_v44 = vcombine.high %v7316_v42, %v7316_v42  ;;  %v5747_v45 = vld [vmem:[%s8468_s3 + $0x220] ss:$16 sps:$4 sm:$0xff]  }
  0xa2   :  { %v7332_v56 = vrot.slane %v1751_v2, %v6495_v58  ;;  %v5765_v0 = vld [vmem:[%s8468_s3 + $0x280] ss:$16 sps:$4 sm:$0xff]   ;;  %v5768_v2 = vld [vmem:[%s8468_s3 + $0x288] ss:$16 sps:$4 sm:$0xff]  }
  0xa3   :  { %v1442_v13 = vadd.f32 %v8512_v24, %v1376_v34  ;;  %v1247_v1 = vadd.f32 %v1239_v20, %v1181_v21  ;;  %v784_v4 = vadd.f32 %v7201_v9, %v718_v62  ;;  %v5741_v9 = vld [vmem:[%s8468_s3 + $0x200] ss:$16 sps:$4 sm:$0xff]   ;;  %v5750_v34 = vld [vmem:[%s8468_s3 + $0x228] ss:$16 sps:$4 sm:$0xff]  }
  0xa4   :  { %v5753_v24 = vld [vmem:[%s8468_s3 + $0x240] ss:$16 sps:$4 sm:$0xff]   ;;  %v5774_v62 = vld [vmem:[%s8468_s3 + $0x2a8] ss:$16 sps:$4 sm:$0xff]  }
  0xa5   :  { %v1508_v37 = vadd.f32 %v8513_v39, %v1442_v13  ;;  %v1313_v7 = vadd.f32 %v1305_v11, %v1247_v1  ;;  %v850_v12 = vadd.f32 %v7209_v25, %v784_v4  ;;  %v1767_v25 = vcombine.high %v7332_v56, %v7332_v56  ;;  %v5758_v11 = vld [vmem:[%s8468_s3 + $0x24c] ss:$16 sps:$4 sm:$0xff]   ;;  %v5756_v13 = vld [vmem:[%s8468_s3 + $0x248] ss:$16 sps:$4 sm:$0xff]   ;;  %v5759_v39 = vld [vmem:[%s8468_s3 + $0x260] ss:$16 sps:$4 sm:$0xff]  }
  0xa6   :  { %v5785_v4 = vld [vmem:[%s8468_s3 + $0x2e4] ss:$16 sps:$4 sm:$0xff]  }
  0xa7   :  { %v1574_v30 = vadd.f32 %v7050_v16, %v1508_v37  ;;  %v1379_v3 = vadd.f32 %v1371_v22, %v1313_v7  ;;  %v7325_v16 = vrot.slane %v1685_v35, %v6495_v58  ;;  %v5749_v58 = vld [vmem:[%s8468_s3 + $0x224] ss:$16 sps:$4 sm:$0xff]   ;;  %v916_v8 = vadd.f32 %v7217_v61, %v850_v12  ;;  %v5762_v37 = vld [vmem:[%s8468_s3 + $0x268] ss:$16 sps:$4 sm:$0xff]  }
  0xa8   :  { %v5755_v61 = vld [vmem:[%s8468_s3 + $0x244] ss:$16 sps:$4 sm:$0xff]  }
  0xa9   :  { %v1640_v29 = vadd.f32 %v7069_v27, %v1574_v30  ;;  %v1445_v31 = vadd.f32 %v1437_v26, %v1379_v3  ;;  %v1701_v5 = vcombine.high %v7325_v16, %v7325_v16  ;;  %v982_v28 = vadd.f32 %v7225_v17, %v916_v8  ;;  %v5761_v22 = vld [vmem:[%s8468_s3 + $0x264] ss:$16 sps:$4 sm:$0xff]   ;;  %v5764_v17 = vld [vmem:[%s8468_s3 + $0x26c] ss:$16 sps:$4 sm:$0xff]  }
  0xaa   :  { %v5767_v7 = vld [vmem:[%s8468_s3 + $0x284] ss:$16 sps:$4 sm:$0xff]  }
  0xab   :  { %v1706_v43 = vadd.f32 %v7103_v36, %v1640_v29  ;;  %v1511_v55 = vadd.f32 %v1503_v51, %v1445_v31  ;;  %v1048_v50 = vadd.f32 %v7235_v49, %v982_v28  ;;  %v5770_v49 = vld [vmem:[%s8468_s3 + $0x28c] ss:$16 sps:$4 sm:$0xff]   ;;  %v5773_v30 = vld [vmem:[%s8468_s3 + $0x2a4] ss:$16 sps:$4 sm:$0xff]   ;;  %v5771_v51 = vld [vmem:[%s8468_s3 + $0x2a0] ss:$16 sps:$4 sm:$0xff]  }
  0xac   :  { %v5777_v31 = vld [vmem:[%s8468_s3 + $0x2c0] ss:$16 sps:$4 sm:$0xff]   ;;  %v5809_v8 = vld [vmem:[%s8468_s3 + $0x364] ss:$16 sps:$4 sm:$0xff]  }
  0xad   :  { %v1772_v27 = vadd.f32 %v7135_v47, %v1706_v43  ;;  %v1577_v53 = vadd.f32 %v1569_v38, %v1511_v55  ;;  %v1114_v26 = vadd.f32 %v7244_v10, %v1048_v50  ;;  %v5776_v10 = vld [vmem:[%s8468_s3 + $0x2ac] ss:$16 sps:$4 sm:$0xff]   ;;  %v5780_v38 = vld [vmem:[%s8468_s3 + $0x2c8] ss:$16 sps:$4 sm:$0xff]   ;;  %v5783_v55 = vld [vmem:[%s8468_s3 + $0x2e0] ss:$16 sps:$4 sm:$0xff]  }
  0xaf   :  { %v1838_v36 = vadd.f32 %v7154_v18, %v1772_v27  ;;  %v1643_v47 = vadd.f32 %v1635_v44, %v1577_v53  ;;  %v5752_v18 = vld [vmem:[%s8468_s3 + $0x22c] ss:$16 sps:$4 sm:$0xff]   ;;  %v1180_v3 = vadd.f32 %v7253_v33, %v1114_v26  ;;  %v5786_v44 = vld [vmem:[%s8468_s3 + $0x2e8] ss:$16 sps:$4 sm:$0xff]   ;;  %v5791_v27 = vld [vmem:[%s8468_s3 + $0x304] ss:$16 sps:$4 sm:$0xff]  }
  0xb0   :  { %v5782_v33 = vld [vmem:[%s8468_s3 + $0x2cc] ss:$16 sps:$4 sm:$0xff]   ;;  %v5789_v53 = vld [vmem:[%s8468_s3 + $0x300] ss:$16 sps:$4 sm:$0xff]  }
  0xb1   :  { %v1842_v19 = vmax.f32 %v1838_v36, 0.0  ;;  %v1709_v20 = vadd.f32 %v1701_v5, %v1643_v47  ;;  %v1246_v29 = vadd.f32 %v7262_v32, %v1180_v3  ;;  %v5788_v32 = vld [vmem:[%s8468_s3 + $0x2ec] ss:$16 sps:$4 sm:$0xff]   ;;  %v5792_v5 = vld [vmem:[%s8468_s3 + $0x308] ss:$16 sps:$4 sm:$0xff]  }
  0xb2   :  { %v5797_v36 = vld [vmem:[%s8468_s3 + $0x324] ss:$16 sps:$4 sm:$0xff]   ;;  %v5798_v47 = vld [vmem:[%s8468_s3 + $0x328] ss:$16 sps:$4 sm:$0xff]  }
  0xb3   :  { %v1846_v40 = vpack.c.bf16 %v1842_v19, %v1842_v19  ;;  %v1775_v21 = vadd.f32 %v1767_v25, %v1709_v20  ;;  %v1312_v43 = vadd.f32 %v7271_v14, %v1246_v29  ;;  %v5794_v14 = vld [vmem:[%s8468_s3 + $0x30c] ss:$16 sps:$4 sm:$0xff]   ;;  %v5803_v25 = vld [vmem:[%s8468_s3 + $0x344] ss:$16 sps:$4 sm:$0xff]  }
  0xb5   :  { %2673 = vmatmul.mubr.bf16.vlgmr.msra.gmra.mrb[0].mxu0 %v1846_v40  ;;  %2755 = vmatmul.mubr.bf16.vlgmr.msra.gmra.mrb[0].mxu1 %v1846_v40  ;;  %v1841_v63 = vadd.f32 %v1833_v6, %v1775_v21  ;;  %v1378_v12 = vadd.f32 %v7280_v41, %v1312_v43  ;;  %v5800_v41 = vld [vmem:[%s8468_s3 + $0x32c] ss:$16 sps:$4 sm:$0xff]  }
  0xb6   :  { %2682 = vmatpush1.bf16.msra.mxu0 %v5741_v9  ;;  %2764 = vmatpush1.bf16.msra.mxu1 %v5744_v59  ;;  %v5795_v59 = vld [vmem:[%s8468_s3 + $0x320] ss:$16 sps:$4 sm:$0xff]  }
  0xb7   :  { %2683 = vmatprep.subr.bf16.mxu0 %v5749_v58  ;;  %2765 = vmatprep.subr.bf16.mxu1 %v5752_v18  ;;  %v1845_v1 = vmax.f32 %v1841_v63, 0.0  ;;  %v1444_v9 = vadd.f32 %v7289_v15, %v1378_v12  ;;  %v5806_v15 = vld [vmem:[%s8468_s3 + $0x34c] ss:$16 sps:$4 sm:$0xff]   ;;  %v5801_v58 = vld [vmem:[%s8468_s3 + $0x340] ss:$16 sps:$4 sm:$0xff]  }
  0xb8   :  { %v5804_v18 = vld [vmem:[%s8468_s3 + $0x348] ss:$16 sps:$4 sm:$0xff]  }
  0xb9   :  { %v1849_v35 = vpack.c.bf16 %v1845_v1, %v1845_v1  ;;  %v1510_v19 = vadd.f32 %v7298_v23, %v1444_v9  ;;  %v5812_v23 = vld [vmem:[%s8468_s3 + $0x36c] ss:$16 sps:$4 sm:$0xff]  }
  0xba   :  { %2684 = vmatpush1.bf16.msra.mxu0 %v5747_v45  ;;  %2766 = vmatpush1.bf16.msra.mxu1 %v5750_v34 }
  0xbb   :  { %2685 = vmatprep.subr.bf16.mxu0 %v5755_v61  ;;  %2767 = vmatprep.subr.bf16.mxu1 %v5758_v11  ;;  %v1576_v20 = vadd.f32 %v7307_v57, %v1510_v19 }
  0xbc   :  { %2713 = vmatprep.mubr.bf16.mxu0 %v1849_v35  ;;  %2795 = vmatprep.mubr.bf16.mxu1 %v1849_v35 }
  0xbe   :  { %2686 = vmatpush1.bf16.msra.mxu0 %v5753_v24  ;;  %2768 = vmatpush1.bf16.msra.mxu1 %v5756_v13 }
  0xbf   :  { %2687 = vmatprep.subr.bf16.mxu0 %v5761_v22  ;;  %2769 = vmatprep.subr.bf16.mxu1 %v5764_v17 }
  0xc2   :  { %2688 = vmatpush1.bf16.msra.mxu0 %v5759_v39  ;;  %2770 = vmatpush1.bf16.msra.mxu1 %v5762_v37 }
  0xc3   :  { %2689 = vmatprep.subr.bf16.mxu0 %v5767_v7  ;;  %2771 = vmatprep.subr.bf16.mxu1 %v5770_v49 }
  0xc6   :  { %2690 = vmatpush1.bf16.msra.mxu0 %v5765_v0  ;;  %2772 = vmatpush1.bf16.msra.mxu1 %v5768_v2 }
  0xc7   :  { %2691 = vmatprep.subr.bf16.mxu0 %v5773_v30  ;;  %2773 = vmatprep.subr.bf16.mxu1 %v5776_v10 }
  0xca   :  { %2692 = vmatpush1.bf16.msra.mxu0 %v5771_v51  ;;  %2774 = vmatpush1.bf16.msra.mxu1 %v5774_v62 }
  0xcb   :  { %2693 = vmatprep.subr.bf16.mxu0 %v5779_v60  ;;  %2775 = vmatprep.subr.bf16.mxu1 %v5782_v33 }
  0xce   :  { %2694 = vmatpush1.bf16.msra.mxu0 %v5777_v31  ;;  %2776 = vmatpush1.bf16.msra.mxu1 %v5780_v38 }
  0xcf   :  { %2695 = vmatprep.subr.bf16.mxu0 %v5785_v4  ;;  %2777 = vmatprep.subr.bf16.mxu1 %v5788_v32 }
  0xd2   :  { %2696 = vmatpush1.bf16.msra.mxu0 %v5783_v55  ;;  %2778 = vmatpush1.bf16.msra.mxu1 %v5786_v44 }
  0xd3   :  { %2697 = vmatprep.subr.bf16.mxu0 %v5791_v27  ;;  %2779 = vmatprep.subr.bf16.mxu1 %v5794_v14 }
  0xd6   :  { %2698 = vmatpush1.bf16.msra.mxu0 %v5789_v53  ;;  %2780 = vmatpush1.bf16.msra.mxu1 %v5792_v5 }
  0xd7   :  { %2699 = vmatprep.subr.bf16.mxu0 %v5797_v36  ;;  %2781 = vmatprep.subr.bf16.mxu1 %v5800_v41 }
  0xda   :  { %2700 = vmatpush1.bf16.msra.mxu0 %v5795_v59  ;;  %2782 = vmatpush1.bf16.msra.mxu1 %v5798_v47 }
  0xdb   :  { %2701 = vmatprep.subr.bf16.mxu0 %v5803_v25  ;;  %2783 = vmatprep.subr.bf16.mxu1 %v5806_v15 }
  0xdc   :  { %16 = vsyncpa [#allocation3], 0  ;;  %v1642_v6 = vadd.f32 %v7316_v42, %v1576_v20  ;;  %v5807_v40 = vld [vmem:[%s8468_s3 + $0x360] ss:$16 sps:$4 sm:$0xff]   ;;  %v5810_v45 = vld [vmem:[%s8468_s3 + $0x368] ss:$16 sps:$4 sm:$0xff]  }
  0xdd   :  { %v5815_v57 = vld [vmem:[%s8468_s3 + $0x384] ss:$16 sps:$4 sm:$0xff]   ;;  %v5818_v42 = vld [vmem:[%s8468_s3 + $0x38c] ss:$16 sps:$4 sm:$0xff]   ;;  %v5813_v21 = vld [vmem:[%s8468_s3 + $0x380] ss:$16 sps:$4 sm:$0xff]  }
  0xde   :  { %2702 = vmatpush1.bf16.msra.mxu0 %v5801_v58  ;;  %2784 = vmatpush1.bf16.msra.mxu1 %v5804_v18  ;;  %v1708_v34 = vadd.f32 %v7325_v16, %v1642_v6  ;;  %v5816_v61 = vld [vmem:[%s8468_s3 + $0x388] ss:$16 sps:$4 sm:$0xff]   ;;  %v5821_v11 = vld [vmem:[%s8468_s3 + $0x3a4] ss:$16 sps:$4 sm:$0xff]   ;;  %v5824_v16 = vld [vmem:[%s8468_s3 + $0x3ac] ss:$16 sps:$4 sm:$0xff]  }
  0xdf   :  { %2703 = vmatprep.subr.bf16.mxu0 %v5809_v8  ;;  %2785 = vmatprep.subr.bf16.mxu1 %v5812_v23  ;;  %v5819_v63 = vld [vmem:[%s8468_s3 + $0x3a0] ss:$16 sps:$4 sm:$0xff]   ;;  %v5822_v24 = vld [vmem:[%s8468_s3 + $0x3a8] ss:$16 sps:$4 sm:$0xff]   ;;  %v5827_v13 = vld [vmem:[%s8468_s3 + $0x3c4] ss:$16 sps:$4 sm:$0xff]  }
  0xe0   :  { %v1774_v28 = vadd.f32 %v7332_v56, %v1708_v34  ;;  %v5830_v56 = vld [vmem:[%s8468_s3 + $0x3cc] ss:$16 sps:$4 sm:$0xff]   ;;  %v5825_v22 = vld [vmem:[%s8468_s3 + $0x3c0] ss:$16 sps:$4 sm:$0xff]   ;;  %v5828_v17 = vld [vmem:[%s8468_s3 + $0x3c8] ss:$16 sps:$4 sm:$0xff]  }
  0xe1   :  { %v5833_v50 = vld [vmem:[%s8468_s3 + $0x3e4] ss:$16 sps:$4 sm:$0xff]   ;;  %v5831_v39 = vld [vmem:[%s8468_s3 + $0x3e0] ss:$16 sps:$4 sm:$0xff]   ;;  %v5834_v37 = vld [vmem:[%s8468_s3 + $0x3e8] ss:$16 sps:$4 sm:$0xff]  }
  0xe2   :  { %2704 = vmatpush1.bf16.msra.mxu0 %v5807_v40  ;;  %2786 = vmatpush1.bf16.msra.mxu1 %v5810_v45  ;;  %v1840_v1 = vadd.f32 %v7339_v46, %v1774_v28  ;;  %v5836_v46 = vld [vmem:[%s8468_s3 + $0x3ec] ss:$16 sps:$4 sm:$0xff]   ;;  %v5839_v7 = vld [vmem:[%s8470_s5 + $0x4] ss:$16 sps:$4 sm:$0xff]   ;;  %v5837_v0 = vld [vmem:[%s8470_s5] ss:$16 sps:$4 sm:$0xff]  }
  0xe3   :  { %2705 = vmatprep.subr.bf16.mxu0 %v5815_v57  ;;  %2787 = vmatprep.subr.bf16.mxu1 %v5818_v42  ;;  %v5842_v49 = vld [vmem:[%s8470_s5 + $0xc] ss:$16 sps:$4 sm:$0xff]   ;;  %v5840_v2 = vld [vmem:[%s8470_s5 + $0x8] ss:$16 sps:$4 sm:$0xff]   ;;  %v5845_v30 = vld [vmem:[%s8470_s5 + $0x24] ss:$16 sps:$4 sm:$0xff]  }
  0xe4   :  { %v1844_v35 = vmax.f32 %v1840_v1, 0.0  ;;  %v5848_v10 = vld [vmem:[%s8470_s5 + $0x2c] ss:$16 sps:$4 sm:$0xff]   ;;  %v5843_v3 = vld [vmem:[%s8470_s5 + $0x20] ss:$16 sps:$4 sm:$0xff]   ;;  %s6279_s13 = smov [#allocation2]  }
  0xe5   :  { %v5846_v51 = vld [vmem:[%s8470_s5 + $0x28] ss:$16 sps:$4 sm:$0xff]   ;;  %v5851_v62 = vld [vmem:[%s8470_s5 + $0x44] ss:$16 sps:$4 sm:$0xff]   ;;  %v5854_v60 = vld [vmem:[%s8470_s5 + $0x4c] ss:$16 sps:$4 sm:$0xff]  }
  0xe6   :  { %2706 = vmatpush1.bf16.msra.mxu0 %v5813_v21  ;;  %2788 = vmatpush1.bf16.msra.mxu1 %v5816_v61  ;;  %v1848_v26 = vpack.c.bf16 %v1844_v35, %v1844_v35  ;;  %v5849_v33 = vld [vmem:[%s8470_s5 + $0x40] ss:$16 sps:$4 sm:$0xff]   ;;  %v5852_v29 = vld [vmem:[%s8470_s5 + $0x48] ss:$16 sps:$4 sm:$0xff]   ;;  %v5857_v31 = vld [vmem:[%s8470_s5 + $0x64] ss:$16 sps:$4 sm:$0xff]  }
  0xe7   :  { %2707 = vmatprep.subr.bf16.mxu0 %v5821_v11  ;;  %2789 = vmatprep.subr.bf16.mxu1 %v5824_v16  ;;  %v5860_v38 = vld [vmem:[%s8470_s5 + $0x6c] ss:$16 sps:$4 sm:$0xff]   ;;  %v5855_v4 = vld [vmem:[%s8470_s5 + $0x60] ss:$16 sps:$4 sm:$0xff]   ;;  %v5858_v32 = vld [vmem:[%s8470_s5 + $0x68] ss:$16 sps:$4 sm:$0xff]  }
  0xe8   :  { %v5863_v43 = vld [vmem:[%s8470_s5 + $0x84] ss:$16 sps:$4 sm:$0xff]   ;;  %v5866_v55 = vld [vmem:[%s8470_s5 + $0x8c] ss:$16 sps:$4 sm:$0xff]   ;;  %v5861_v44 = vld [vmem:[%s8470_s5 + $0x80] ss:$16 sps:$4 sm:$0xff]  }
  0xe9   :  { %v5864_v27 = vld [vmem:[%s8470_s5 + $0x88] ss:$16 sps:$4 sm:$0xff]   ;;  %v5869_v14 = vld [vmem:[%s8470_s5 + $0xa4] ss:$16 sps:$4 sm:$0xff]   ;;  %v5872_v12 = vld [vmem:[%s8470_s5 + $0xac] ss:$16 sps:$4 sm:$0xff]  }
  0xea   :  { %2708 = vmatpush1.bf16.msra.mxu0 %v5819_v63  ;;  %2790 = vmatpush1.bf16.msra.mxu1 %v5822_v24  ;;  %v5867_v53 = vld [vmem:[%s8470_s5 + $0xa0] ss:$16 sps:$4 sm:$0xff]   ;;  %v5870_v5 = vld [vmem:[%s8470_s5 + $0xa8] ss:$16 sps:$4 sm:$0xff]   ;;  %v5875_v36 = vld [vmem:[%s8470_s5 + $0xc4] ss:$16 sps:$4 sm:$0xff]  }
  0xeb   :  { %2709 = vmatprep.subr.bf16.mxu0 %v5827_v13  ;;  %2791 = vmatprep.subr.bf16.mxu1 %v5830_v56  ;;  %v5878_v41 = vld [vmem:[%s8470_s5 + $0xcc] ss:$16 sps:$4 sm:$0xff]   ;;  %v5873_v9 = vld [vmem:[%s8470_s5 + $0xc0] ss:$16 sps:$4 sm:$0xff]   ;;  %v5876_v59 = vld [vmem:[%s8470_s5 + $0xc8] ss:$16 sps:$4 sm:$0xff]  }
  0xec   :  { %v5881_v47 = vld [vmem:[%s8470_s5 + $0xe4] ss:$16 sps:$4 sm:$0xff]   ;;  %v5884_v25 = vld [vmem:[%s8470_s5 + $0xec] ss:$16 sps:$4 sm:$0xff]   ;;  %v5879_v15 = vld [vmem:[%s8470_s5 + $0xe0] ss:$16 sps:$4 sm:$0xff]  }
  0xed   :  { %v5882_v19 = vld [vmem:[%s8470_s5 + $0xe8] ss:$16 sps:$4 sm:$0xff]   ;;  %v5887_v58 = vld [vmem:[%s8470_s5 + $0x104] ss:$16 sps:$4 sm:$0xff]   ;;  %v5890_v18 = vld [vmem:[%s8470_s5 + $0x10c] ss:$16 sps:$4 sm:$0xff]  }
  0xee   :  { %2710 = vmatpush1.bf16.msra.mxu0 %v5825_v22  ;;  %2792 = vmatpush1.bf16.msra.mxu1 %v5828_v17  ;;  %v5885_v8 = vld [vmem:[%s8470_s5 + $0x100] ss:$16 sps:$4 sm:$0xff]   ;;  %v5888_v23 = vld [vmem:[%s8470_s5 + $0x108] ss:$16 sps:$4 sm:$0xff]   ;;  %v5893_v20 = vld [vmem:[%s8470_s5 + $0x124] ss:$16 sps:$4 sm:$0xff]  }
  0xef   :  { %2711 = vmatprep.subr.bf16.mxu0 %v5833_v50  ;;  %2793 = vmatprep.subr.bf16.mxu1 %v5836_v46  ;;  %v5896_v6 = vld [vmem:[%s8470_s5 + $0x12c] ss:$16 sps:$4 sm:$0xff]   ;;  %v5891_v40 = vld [vmem:[%s8470_s5 + $0x120] ss:$16 sps:$4 sm:$0xff]   ;;  %v5894_v45 = vld [vmem:[%s8470_s5 + $0x128] ss:$16 sps:$4 sm:$0xff]  }
  0xf0   :  { %v5899_v57 = vld [vmem:[%s8470_s5 + $0x144] ss:$16 sps:$4 sm:$0xff]   ;;  %v5902_v42 = vld [vmem:[%s8470_s5 + $0x14c] ss:$16 sps:$4 sm:$0xff]   ;;  %v5897_v34 = vld [vmem:[%s8470_s5 + $0x140] ss:$16 sps:$4 sm:$0xff]  }
  0xf1   :  { %v5900_v21 = vld [vmem:[%s8470_s5 + $0x148] ss:$16 sps:$4 sm:$0xff]   ;;  %v5905_v61 = vld [vmem:[%s8470_s5 + $0x164] ss:$16 sps:$4 sm:$0xff]   ;;  %v5908_v11 = vld [vmem:[%s8470_s5 + $0x16c] ss:$16 sps:$4 sm:$0xff]  }
  0xf2   :  { %2712 = vmatpush1.bf16.msra.mxu0 %v5831_v39  ;;  %2794 = vmatpush1.bf16.msra.mxu1 %v5834_v37  ;;  %v5903_v16 = vld [vmem:[%s8470_s5 + $0x160] ss:$16 sps:$4 sm:$0xff]   ;;  %v5906_v28 = vld [vmem:[%s8470_s5 + $0x168] ss:$16 sps:$4 sm:$0xff]   ;;  %v5911_v63 = vld [vmem:[%s8470_s5 + $0x184] ss:$16 sps:$4 sm:$0xff]  }
  0xf3   :  { %3602 = vmatprep.subr.bf16.mxu0 %v5839_v7  ;;  %3684 = vmatprep.subr.bf16.mxu1 %v5842_v49  ;;  %v5914_v24 = vld [vmem:[%s8470_s5 + $0x18c] ss:$16 sps:$4 sm:$0xff]   ;;  %v5909_v13 = vld [vmem:[%s8470_s5 + $0x180] ss:$16 sps:$4 sm:$0xff]   ;;  %v5912_v56 = vld [vmem:[%s8470_s5 + $0x188] ss:$16 sps:$4 sm:$0xff]  }
  0xf4   :  { %v5917_v1 = vld [vmem:[%s8470_s5 + $0x1a4] ss:$16 sps:$4 sm:$0xff]   ;;  %v5920_v22 = vld [vmem:[%s8470_s5 + $0x1ac] ss:$16 sps:$4 sm:$0xff]   ;;  %v5915_v17 = vld [vmem:[%s8470_s5 + $0x1a0] ss:$16 sps:$4 sm:$0xff]  }
  0xf5   :  { %2714 = vmatmul.mubr.bf16.vlgmr.msra.gmra.mrb[0].mxu0 %v1848_v26  ;;  %2796 = vmatmul.mubr.bf16.vlgmr.msra.gmra.mrb[0].mxu1 %v1848_v26  ;;  %v5918_v50 = vld [vmem:[%s8470_s5 + $0x1a8] ss:$16 sps:$4 sm:$0xff]   ;;  %v5923_v46 = vld [vmem:[%s8470_s5 + $0x1c4] ss:$16 sps:$4 sm:$0xff]   ;;  %v5926_v35 = vld [vmem:[%s8470_s5 + $0x1cc] ss:$16 sps:$4 sm:$0xff]  }
  0xf6   :  { %3603 = vmatpush1.bf16.msra.mxu0 %v5837_v0  ;;  %3685 = vmatpush1.bf16.msra.mxu1 %v5840_v2  ;;  %v5921_v39 = vld [vmem:[%s8470_s5 + $0x1c0] ss:$16 sps:$4 sm:$0xff]   ;;  %v5924_v37 = vld [vmem:[%s8470_s5 + $0x1c8] ss:$16 sps:$4 sm:$0xff]   ;;  %v5929_v7 = vld [vmem:[%s8470_s5 + $0x1e4] ss:$16 sps:$4 sm:$0xff]  }
  0xf7   :  { %3604 = vmatprep.subr.bf16.mxu0 %v5845_v30  ;;  %3686 = vmatprep.subr.bf16.mxu1 %v5848_v10  ;;  %v5932_v49 = vld [vmem:[%s8470_s5 + $0x1ec] ss:$16 sps:$4 sm:$0xff]   ;;  %v5927_v26 = vld [vmem:[%s8470_s5 + $0x1e0] ss:$16 sps:$4 sm:$0xff]   ;;  %v5930_v0 = vld [vmem:[%s8470_s5 + $0x1e8] ss:$16 sps:$4 sm:$0xff]  }
  0xf8   :  { %v5935_v2 = vld [vmem:[%s8470_s5 + $0x204] ss:$16 sps:$4 sm:$0xff]   ;;  %v5938_v30 = vld [vmem:[%s8470_s5 + $0x20c] ss:$16 sps:$4 sm:$0xff]   ;;  %v7748_v10 = vld [vmem:[%s8469_s4] sm:$0xf] }
  0xf9   :  { %s5086_s14 = sshll.u32 %s6279_s13, 4  ;;  %s5087_s14 = int_to_ptr.vmem [resolvable:$true] %s5086_s14 }
  0xfa   :  { %3605 = vmatpush1.bf16.msra.mxu0 %v5843_v3  ;;  %3687 = vmatpush1.bf16.msra.mxu1 %v5846_v51  ;;  %v1983_v3 = vrot.slane %v7748_v10, %v6472_v48  ;;  %v8514_v51 = vld [vmem:[#allocation5_spill] sm:$0xff]  ;;  %s6254_s15 = scalar_lea.vmem %s5087_s14, 32  ;;  %p6259_p1 = scmp.lt.s32.totalorder %s5087_s14, %s5087_s14 }
  0xfb   :  { %3606 = vmatprep.subr.bf16.mxu0 %v5851_v62  ;;  %3688 = vmatprep.subr.bf16.mxu1 %v5854_v60  ;;  %v1987_v62 = vrot.slane %v7748_v10, %v8514_v51  ;;  %v1995_v60 = vrot.slane %v7748_v10, %v6484_v54  ;;  %p6255_p0 = scmp.ne.s32.totalorder %s5087_s14, %s6254_s15  ;;  %p6260_p2 = scmp.lt.s32.totalorder %s6254_s15, %s6254_s15 }
  0xfd   :  { %p6261_p3 = por %p6260_p2, %p6259_p1 }
  0xfe   :  { %3607 = vmatpush1.bf16.msra.mxu0 %v5849_v33  ;;  %3689 = vmatpush1.bf16.msra.mxu1 %v5852_v29 }
  0xff   :  { %3608 = vmatprep.subr.bf16.mxu0 %v5857_v31  ;;  %3690 = vmatprep.subr.bf16.mxu1 %v5860_v38  ;;  %p6262_p4 = pnand %p6261_p3, %p6255_p0 }
 0x102   :  { %3609 = vmatpush1.bf16.msra.mxu0 %v5855_v4  ;;  %3691 = vmatpush1.bf16.msra.mxu1 %v5858_v32 }
 0x103   :  { %3610 = vmatprep.subr.bf16.mxu0 %v5863_v43  ;;  %3692 = vmatprep.subr.bf16.mxu1 %v5866_v55 }
 0x106   :  { %3611 = vmatpush1.bf16.msra.mxu0 %v5861_v44  ;;  %3693 = vmatpush1.bf16.msra.mxu1 %v5864_v27 }
 0x107   :  { %3612 = vmatprep.subr.bf16.mxu0 %v5869_v14  ;;  %3694 = vmatprep.subr.bf16.mxu1 %v5872_v12 }
 0x10a   :  { %3613 = vmatpush1.bf16.msra.mxu0 %v5867_v53  ;;  %3695 = vmatpush1.bf16.msra.mxu1 %v5870_v5 }
 0x10b   :  { %3614 = vmatprep.subr.bf16.mxu0 %v5875_v36  ;;  %3696 = vmatprep.subr.bf16.mxu1 %v5878_v41  ;;  %v5933_v41 = vld [vmem:[%s8470_s5 + $0x200] ss:$16 sps:$4 sm:$0xff]  }
 0x10e   :  { %3615 = vmatpush1.bf16.msra.mxu0 %v5873_v9  ;;  %3697 = vmatpush1.bf16.msra.mxu1 %v5876_v59  ;;  %v5936_v9 = vld [vmem:[%s8470_s5 + $0x208] ss:$16 sps:$4 sm:$0xff]  }
 0x10f   :  { %3616 = vmatprep.subr.bf16.mxu0 %v5881_v47  ;;  %3698 = vmatprep.subr.bf16.mxu1 %v5884_v25  ;;  %v5941_v47 = vld [vmem:[%s8470_s5 + $0x224] ss:$16 sps:$4 sm:$0xff]   ;;  %v5944_v25 = vld [vmem:[%s8470_s5 + $0x22c] ss:$16 sps:$4 sm:$0xff]  }
 0x112   :  { %3617 = vmatpush1.bf16.msra.mxu0 %v5879_v15  ;;  %3699 = vmatpush1.bf16.msra.mxu1 %v5882_v19  ;;  %v5939_v19 = vld [vmem:[%s8470_s5 + $0x220] ss:$16 sps:$4 sm:$0xff]  }
 0x113   :  { %3618 = vmatprep.subr.bf16.mxu0 %v5887_v58  ;;  %3700 = vmatprep.subr.bf16.mxu1 %v5890_v18  ;;  %v5942_v58 = vld [vmem:[%s8470_s5 + $0x228] ss:$16 sps:$4 sm:$0xff]   ;;  %v5947_v18 = vld [vmem:[%s8470_s5 + $0x244] ss:$16 sps:$4 sm:$0xff]  }
 0x116   :  { %3619 = vmatpush1.bf16.msra.mxu0 %v5885_v8  ;;  %3701 = vmatpush1.bf16.msra.mxu1 %v5888_v23  ;;  %v5950_v8 = vld [vmem:[%s8470_s5 + $0x24c] ss:$16 sps:$4 sm:$0xff]   ;;  %v5945_v23 = vld [vmem:[%s8470_s5 + $0x240] ss:$16 sps:$4 sm:$0xff]  }
 0x117   :  { %3620 = vmatprep.subr.bf16.mxu0 %v5893_v20  ;;  %3702 = vmatprep.subr.bf16.mxu1 %v5896_v6  ;;  %v5948_v20 = vld [vmem:[%s8470_s5 + $0x248] ss:$16 sps:$4 sm:$0xff]   ;;  %v5953_v6 = vld [vmem:[%s8470_s5 + $0x264] ss:$16 sps:$4 sm:$0xff]  }
 0x11a   :  { %3621 = vmatpush1.bf16.msra.mxu0 %v5891_v40  ;;  %3703 = vmatpush1.bf16.msra.mxu1 %v5894_v45  ;;  %v5956_v40 = vld [vmem:[%s8470_s5 + $0x26c] ss:$16 sps:$4 sm:$0xff]   ;;  %v5951_v45 = vld [vmem:[%s8470_s5 + $0x260] ss:$16 sps:$4 sm:$0xff]  }
 0x11b   :  { %3622 = vmatprep.subr.bf16.mxu0 %v5899_v57  ;;  %3704 = vmatprep.subr.bf16.mxu1 %v5902_v42  ;;  %v5954_v57 = vld [vmem:[%s8470_s5 + $0x268] ss:$16 sps:$4 sm:$0xff]   ;;  %v5959_v42 = vld [vmem:[%s8470_s5 + $0x284] ss:$16 sps:$4 sm:$0xff]  }
 0x11e   :  { %3623 = vmatpush1.bf16.msra.mxu0 %v5897_v34  ;;  %3705 = vmatpush1.bf16.msra.mxu1 %v5900_v21  ;;  %v5962_v34 = vld [vmem:[%s8470_s5 + $0x28c] ss:$16 sps:$4 sm:$0xff]   ;;  %v5957_v21 = vld [vmem:[%s8470_s5 + $0x280] ss:$16 sps:$4 sm:$0xff]  }
 0x11f   :  { %3624 = vmatprep.subr.bf16.mxu0 %v5905_v61  ;;  %3706 = vmatprep.subr.bf16.mxu1 %v5908_v11  ;;  %v5960_v61 = vld [vmem:[%s8470_s5 + $0x288] ss:$16 sps:$4 sm:$0xff]   ;;  %v5965_v11 = vld [vmem:[%s8470_s5 + $0x2a4] ss:$16 sps:$4 sm:$0xff]  }
 0x122   :  { %3625 = vmatpush1.bf16.msra.mxu0 %v5903_v16  ;;  %3707 = vmatpush1.bf16.msra.mxu1 %v5906_v28  ;;  %v5968_v16 = vld [vmem:[%s8470_s5 + $0x2ac] ss:$16 sps:$4 sm:$0xff]   ;;  %v5963_v28 = vld [vmem:[%s8470_s5 + $0x2a0] ss:$16 sps:$4 sm:$0xff]  }
 0x123   :  { %3626 = vmatprep.subr.bf16.mxu0 %v5911_v63  ;;  %3708 = vmatprep.subr.bf16.mxu1 %v5914_v24  ;;  %v5966_v63 = vld [vmem:[%s8470_s5 + $0x2a8] ss:$16 sps:$4 sm:$0xff]   ;;  %v5971_v24 = vld [vmem:[%s8470_s5 + $0x2c4] ss:$16 sps:$4 sm:$0xff]  }
 0x126   :  { %3627 = vmatpush1.bf16.msra.mxu0 %v5909_v13  ;;  %3709 = vmatpush1.bf16.msra.mxu1 %v5912_v56  ;;  %v5974_v13 = vld [vmem:[%s8470_s5 + $0x2cc] ss:$16 sps:$4 sm:$0xff]   ;;  %v5969_v56 = vld [vmem:[%s8470_s5 + $0x2c0] ss:$16 sps:$4 sm:$0xff]  }
 0x127   :  { %3628 = vmatprep.subr.bf16.mxu0 %v5917_v1  ;;  %3710 = vmatprep.subr.bf16.mxu1 %v5920_v22  ;;  %v5972_v1 = vld [vmem:[%s8470_s5 + $0x2c8] ss:$16 sps:$4 sm:$0xff]   ;;  %v5977_v22 = vld [vmem:[%s8470_s5 + $0x2e4] ss:$16 sps:$4 sm:$0xff]  }
 0x12a   :  { %3629 = vmatpush1.bf16.msra.mxu0 %v5915_v17  ;;  %3711 = vmatpush1.bf16.msra.mxu1 %v5918_v50  ;;  %v5980_v17 = vld [vmem:[%s8470_s5 + $0x2ec] ss:$16 sps:$4 sm:$0xff]   ;;  %v5975_v50 = vld [vmem:[%s8470_s5 + $0x2e0] ss:$16 sps:$4 sm:$0xff]  }
 0x12b   :  { %3630 = vmatprep.subr.bf16.mxu0 %v5923_v46  ;;  %3712 = vmatprep.subr.bf16.mxu1 %v5926_v35  ;;  %v5978_v46 = vld [vmem:[%s8470_s5 + $0x2e8] ss:$16 sps:$4 sm:$0xff]   ;;  %v5983_v35 = vld [vmem:[%s8470_s5 + $0x304] ss:$16 sps:$4 sm:$0xff]  }
 0x12e   :  { %3631 = vmatpush1.bf16.msra.mxu0 %v5921_v39  ;;  %3713 = vmatpush1.bf16.msra.mxu1 %v5924_v37  ;;  %v5986_v39 = vld [vmem:[%s8470_s5 + $0x30c] ss:$16 sps:$4 sm:$0xff]   ;;  %v5981_v37 = vld [vmem:[%s8470_s5 + $0x300] ss:$16 sps:$4 sm:$0xff]  }
 0x12f   :  { %3632 = vmatprep.subr.bf16.mxu0 %v5929_v7  ;;  %3714 = vmatprep.subr.bf16.mxu1 %v5932_v49  ;;  %v5984_v7 = vld [vmem:[%s8470_s5 + $0x308] ss:$16 sps:$4 sm:$0xff]   ;;  %v5989_v49 = vld [vmem:[%s8470_s5 + $0x324] ss:$16 sps:$4 sm:$0xff]  }
 0x132   :  { %3633 = vmatpush1.bf16.msra.mxu0 %v5927_v26  ;;  %3715 = vmatpush1.bf16.msra.mxu1 %v5930_v0  ;;  %v5992_v26 = vld [vmem:[%s8470_s5 + $0x32c] ss:$16 sps:$4 sm:$0xff]   ;;  %v5987_v0 = vld [vmem:[%s8470_s5 + $0x320] ss:$16 sps:$4 sm:$0xff]  }
 0x133   :  { %3643 = vmatprep.subr.bf16.mxu0 %v5935_v2  ;;  %3725 = vmatprep.subr.bf16.mxu1 %v5938_v30  ;;  %v5990_v2 = vld [vmem:[%s8470_s5 + $0x328] ss:$16 sps:$4 sm:$0xff]   ;;  %v5995_v30 = vld [vmem:[%s8470_s5 + $0x344] ss:$16 sps:$4 sm:$0xff]  }
 0x1c8   :  { %v2715_v33 = vpop.f32.mrb[0].mxu0  ;;  %v7756_v29 = vpop.f32.mrb[0].mxu1 }
 0x1c9   :  { %v5607_v31 = vadd.f32 %v2715_v33, %v1983_v3  ;;  %v2717_v38 = vpop.f32.mrb[1].mxu0  ;;  %v2799_v4 = vpop.f32.mrb[1].mxu1  ;;  %v5998_v3 = vld [vmem:[%s8470_s5 + $0x34c] ss:$16 sps:$4 sm:$0xff]   ;;  %v6001_v33 = vld [vmem:[%s8470_s5 + $0x364] ss:$16 sps:$4 sm:$0xff]  }
 0x1ca   :  { %v5608_v32 = vadd.f32 %v2717_v38, %v1987_v62  ;;  %v5610_v43 = vadd.f32 %v2799_v4, %v1995_v60  ;;  %v2719_v55 = vpop.f32.mrb[2].mxu0  ;;  %v2801_v44 = vpop.f32.mrb[2].mxu1  ;;  %v5993_v62 = vld [vmem:[%s8470_s5 + $0x340] ss:$16 sps:$4 sm:$0xff]   ;;  %v5996_v60 = vld [vmem:[%s8470_s5 + $0x348] ss:$16 sps:$4 sm:$0xff]  }
 0x1cb   :  { %v2804_v27 = vmax.f32 %v5607_v31, 0.0  ;;  %v2720_v14 = vpop.f32.mrb[3].mxu0  ;;  %v2802_v12 = vpop.f32.mrb[3].mxu1  ;;  %v6004_v31 = vld [vmem:[%s8470_s5 + $0x36c] ss:$16 sps:$4 sm:$0xff]  }
 0x1cc   :  { %v2805_v53 = vmax.f32 %v5608_v32, 0.0  ;;  %v2807_v5 = vmax.f32 %v5610_v43, 0.0  ;;  %v5999_v38 = vld [vmem:[%s8470_s5 + $0x360] ss:$16 sps:$4 sm:$0xff]   ;;  %v6002_v4 = vld [vmem:[%s8470_s5 + $0x368] ss:$16 sps:$4 sm:$0xff]  }
 0x1cd   :  { %v2808_v59 = vpack.c.bf16 %v2804_v27, %v2804_v27  ;;  %v6007_v32 = vld [vmem:[%s8470_s5 + $0x384] ss:$16 sps:$4 sm:$0xff]   ;;  %v6010_v43 = vld [vmem:[%s8470_s5 + $0x38c] ss:$16 sps:$4 sm:$0xff]   ;;  %v6005_v55 = vld [vmem:[%s8470_s5 + $0x380] ss:$16 sps:$4 sm:$0xff]  }
 0x1ce   :  { %v2809_v36 = vpack.c.bf16 %v2805_v53, %v2805_v53  ;;  %v2811_v15 = vpack.c.bf16 %v2807_v5, %v2807_v5  ;;  %v6008_v44 = vld [vmem:[%s8470_s5 + $0x388] ss:$16 sps:$4 sm:$0xff]   ;;  %v6013_v27 = vld [vmem:[%s8470_s5 + $0x3a4] ss:$16 sps:$4 sm:$0xff]   ;;  %v6016_v14 = vld [vmem:[%s8470_s5 + $0x3ac] ss:$16 sps:$4 sm:$0xff]   ;;  %v1991_v5 = vrot.slane %v7748_v10, %v6479_v52 }
 0x1cf   :  { %v6011_v12 = vld [vmem:[%s8470_s5 + $0x3a0] ss:$16 sps:$4 sm:$0xff]   ;;  %v6014_v53 = vld [vmem:[%s8470_s5 + $0x3a8] ss:$16 sps:$4 sm:$0xff]  }
 0x1d0   :  { %3634 = vmatprep.mubr.bf16.mxu0 %v2809_v36  ;;  %3716 = vmatprep.mubr.bf16.mxu1 %v2809_v36  ;;  %v6019_v36 = vld [vmem:[%s8470_s5 + $0x3c4] ss:$16 sps:$4 sm:$0xff]   ;;  %v6020_v10 = vld [vmem:[%s8470_s5 + $0x3c8] ss:$16 sps:$4 sm:$0xff]  }
 0x1d1   :  { %3635 = vmatmul.mubr.bf16.vlgmr.msra.gmra.mrb[4].mxu0 %v2808_v59  ;;  %3717 = vmatmul.mubr.bf16.vlgmr.msra.gmra.mrb[4].mxu1 %v2808_v59  ;;  %v5609_v59 = vadd.f32 %v7756_v29, %v1991_v5  ;;  %v6026_v29 = vld [vmem:[%s8470_s5 + $0x3e8] ss:$16 sps:$4 sm:$0xff]   ;;  %v6103_v5 = vld [vmem:[%s8472_s7 + $0x184] ss:$16 sps:$4 sm:$0xff]  }
 0x1d2   :  { %3644 = vmatpush1.bf16.msra.mxu0 %v5933_v41  ;;  %3726 = vmatpush1.bf16.msra.mxu1 %v5936_v9  ;;  %v6022_v41 = vld [vmem:[%s8470_s5 + $0x3cc] ss:$16 sps:$4 sm:$0xff]   ;;  %v6017_v9 = vld [vmem:[%s8470_s5 + $0x3c0] ss:$16 sps:$4 sm:$0xff]  }
 0x1d3   :  { %3675 = vmatprep.mubr.bf16.mxu0 %v2811_v15  ;;  %3757 = vmatprep.mubr.bf16.mxu1 %v2811_v15  ;;  %v6023_v15 = vld [vmem:[%s8470_s5 + $0x3e0] ss:$16 sps:$4 sm:$0xff]  }
 0x1d4   :  { %3645 = vmatprep.subr.bf16.mxu0 %v5941_v47  ;;  %3727 = vmatprep.subr.bf16.mxu1 %v5944_v25  ;;  %v6025_v47 = vld [vmem:[%s8470_s5 + $0x3e4] ss:$16 sps:$4 sm:$0xff]   ;;  %v6028_v25 = vld [vmem:[%s8470_s5 + $0x3ec] ss:$16 sps:$4 sm:$0xff]  }
 0x1d6   :  { %3646 = vmatpush1.bf16.msra.mxu0 %v5939_v19  ;;  %3728 = vmatpush1.bf16.msra.mxu1 %v5942_v58  ;;  %v2806_v19 = vmax.f32 %v5609_v59, 0.0  ;;  %v6031_v58 = vld [vmem:[%s8472_s7 + $0x4] ss:$16 sps:$4 sm:$0xff]   ;;  %v6112_v59 = vld [vmem:[%s8472_s7 + $0x1ac] ss:$16 sps:$4 sm:$0xff]  }
 0x1d7   :  { %3647 = vmatprep.subr.bf16.mxu0 %v5947_v18  ;;  %3729 = vmatprep.subr.bf16.mxu1 %v5950_v8  ;;  %v6034_v18 = vld [vmem:[%s8472_s7 + $0xc] ss:$16 sps:$4 sm:$0xff]   ;;  %v6029_v8 = vld [vmem:[%s8472_s7] ss:$16 sps:$4 sm:$0xff]  }
 0x1da   :  { %3648 = vmatpush1.bf16.msra.mxu0 %v5945_v23  ;;  %3730 = vmatpush1.bf16.msra.mxu1 %v5948_v20  ;;  %v6032_v23 = vld [vmem:[%s8472_s7 + $0x8] ss:$16 sps:$4 sm:$0xff]   ;;  %v2810_v20 = vpack.c.bf16 %v2806_v19, %v2806_v19  ;;  %v6113_v19 = vld [vmem:[%s8472_s7 + $0x1c0] ss:$16 sps:$4 sm:$0xff]  }
 0x1db   :  { %3649 = vmatprep.subr.bf16.mxu0 %v5953_v6  ;;  %3731 = vmatprep.subr.bf16.mxu1 %v5956_v40  ;;  %v6037_v6 = vld [vmem:[%s8472_s7 + $0x24] ss:$16 sps:$4 sm:$0xff]   ;;  %v6040_v40 = vld [vmem:[%s8472_s7 + $0x2c] ss:$16 sps:$4 sm:$0xff]  }
 0x1de   :  { %3650 = vmatpush1.bf16.msra.mxu0 %v5951_v45  ;;  %3732 = vmatpush1.bf16.msra.mxu1 %v5954_v57  ;;  %v6035_v45 = vld [vmem:[%s8472_s7 + $0x20] ss:$16 sps:$4 sm:$0xff]   ;;  %v6038_v57 = vld [vmem:[%s8472_s7 + $0x28] ss:$16 sps:$4 sm:$0xff]  }
 0x1df   :  { %3651 = vmatprep.subr.bf16.mxu0 %v5959_v42  ;;  %3733 = vmatprep.subr.bf16.mxu1 %v5962_v34  ;;  %v6043_v42 = vld [vmem:[%s8472_s7 + $0x44] ss:$16 sps:$4 sm:$0xff]   ;;  %v6046_v34 = vld [vmem:[%s8472_s7 + $0x4c] ss:$16 sps:$4 sm:$0xff]  }
 0x1e2   :  { %3652 = vmatpush1.bf16.msra.mxu0 %v5957_v21  ;;  %3734 = vmatpush1.bf16.msra.mxu1 %v5960_v61  ;;  %v6041_v21 = vld [vmem:[%s8472_s7 + $0x40] ss:$16 sps:$4 sm:$0xff]   ;;  %v6044_v61 = vld [vmem:[%s8472_s7 + $0x48] ss:$16 sps:$4 sm:$0xff]  }
 0x1e3   :  { %3653 = vmatprep.subr.bf16.mxu0 %v5965_v11  ;;  %3735 = vmatprep.subr.bf16.mxu1 %v5968_v16  ;;  %v6049_v11 = vld [vmem:[%s8472_s7 + $0x64] ss:$16 sps:$4 sm:$0xff]   ;;  %v6052_v16 = vld [vmem:[%s8472_s7 + $0x6c] ss:$16 sps:$4 sm:$0xff]  }
 0x1e6   :  { %3654 = vmatpush1.bf16.msra.mxu0 %v5963_v28  ;;  %3736 = vmatpush1.bf16.msra.mxu1 %v5966_v63  ;;  %v6047_v28 = vld [vmem:[%s8472_s7 + $0x60] ss:$16 sps:$4 sm:$0xff]   ;;  %v6050_v63 = vld [vmem:[%s8472_s7 + $0x68] ss:$16 sps:$4 sm:$0xff]  }
 0x1e7   :  { %3655 = vmatprep.subr.bf16.mxu0 %v5971_v24  ;;  %3737 = vmatprep.subr.bf16.mxu1 %v5974_v13  ;;  %v6055_v24 = vld [vmem:[%s8472_s7 + $0x84] ss:$16 sps:$4 sm:$0xff]   ;;  %v6058_v13 = vld [vmem:[%s8472_s7 + $0x8c] ss:$16 sps:$4 sm:$0xff]  }
 0x1ea   :  { %3656 = vmatpush1.bf16.msra.mxu0 %v5969_v56  ;;  %3738 = vmatpush1.bf16.msra.mxu1 %v5972_v1  ;;  %v6053_v56 = vld [vmem:[%s8472_s7 + $0x80] ss:$16 sps:$4 sm:$0xff]   ;;  %v6056_v1 = vld [vmem:[%s8472_s7 + $0x88] ss:$16 sps:$4 sm:$0xff]  }
 0x1eb   :  { %3657 = vmatprep.subr.bf16.mxu0 %v5977_v22  ;;  %3739 = vmatprep.subr.bf16.mxu1 %v5980_v17  ;;  %v6061_v22 = vld [vmem:[%s8472_s7 + $0xa4] ss:$16 sps:$4 sm:$0xff]   ;;  %v6064_v17 = vld [vmem:[%s8472_s7 + $0xac] ss:$16 sps:$4 sm:$0xff]  }
 0x1ee   :  { %3658 = vmatpush1.bf16.msra.mxu0 %v5975_v50  ;;  %3740 = vmatpush1.bf16.msra.mxu1 %v5978_v46  ;;  %v6059_v50 = vld [vmem:[%s8472_s7 + $0xa0] ss:$16 sps:$4 sm:$0xff]   ;;  %v6062_v46 = vld [vmem:[%s8472_s7 + $0xa8] ss:$16 sps:$4 sm:$0xff]  }
 0x1ef   :  { %3659 = vmatprep.subr.bf16.mxu0 %v5983_v35  ;;  %3741 = vmatprep.subr.bf16.mxu1 %v5986_v39  ;;  %v6067_v35 = vld [vmem:[%s8472_s7 + $0xc4] ss:$16 sps:$4 sm:$0xff]   ;;  %v6070_v39 = vld [vmem:[%s8472_s7 + $0xcc] ss:$16 sps:$4 sm:$0xff]  }
 0x1f2   :  { %3660 = vmatpush1.bf16.msra.mxu0 %v5981_v37  ;;  %3742 = vmatpush1.bf16.msra.mxu1 %v5984_v7  ;;  %v6065_v37 = vld [vmem:[%s8472_s7 + $0xc0] ss:$16 sps:$4 sm:$0xff]   ;;  %v6068_v7 = vld [vmem:[%s8472_s7 + $0xc8] ss:$16 sps:$4 sm:$0xff]  }
 0x1f3   :  { %3661 = vmatprep.subr.bf16.mxu0 %v5989_v49  ;;  %3743 = vmatprep.subr.bf16.mxu1 %v5992_v26  ;;  %v6073_v49 = vld [vmem:[%s8472_s7 + $0xe4] ss:$16 sps:$4 sm:$0xff]   ;;  %v6076_v26 = vld [vmem:[%s8472_s7 + $0xec] ss:$16 sps:$4 sm:$0xff]  }
 0x1f6   :  { %3662 = vmatpush1.bf16.msra.mxu0 %v5987_v0  ;;  %3744 = vmatpush1.bf16.msra.mxu1 %v5990_v2  ;;  %v6071_v0 = vld [vmem:[%s8472_s7 + $0xe0] ss:$16 sps:$4 sm:$0xff]   ;;  %v6074_v2 = vld [vmem:[%s8472_s7 + $0xe8] ss:$16 sps:$4 sm:$0xff]  }
 0x1f7   :  { %3663 = vmatprep.subr.bf16.mxu0 %v5995_v30  ;;  %3745 = vmatprep.subr.bf16.mxu1 %v5998_v3  ;;  %v6079_v30 = vld [vmem:[%s8472_s7 + $0x104] ss:$16 sps:$4 sm:$0xff]   ;;  %v6082_v3 = vld [vmem:[%s8472_s7 + $0x10c] ss:$16 sps:$4 sm:$0xff]  }
 0x1fa   :  { %3664 = vmatpush1.bf16.msra.mxu0 %v5993_v62  ;;  %3746 = vmatpush1.bf16.msra.mxu1 %v5996_v60  ;;  %v6077_v62 = vld [vmem:[%s8472_s7 + $0x100] ss:$16 sps:$4 sm:$0xff]   ;;  %v6080_v60 = vld [vmem:[%s8472_s7 + $0x108] ss:$16 sps:$4 sm:$0xff]  }
 0x1fb   :  { %3665 = vmatprep.subr.bf16.mxu0 %v6001_v33  ;;  %3747 = vmatprep.subr.bf16.mxu1 %v6004_v31  ;;  %v6085_v33 = vld [vmem:[%s8472_s7 + $0x124] ss:$16 sps:$4 sm:$0xff]   ;;  %v6088_v31 = vld [vmem:[%s8472_s7 + $0x12c] ss:$16 sps:$4 sm:$0xff]  }
 0x1fe   :  { %3666 = vmatpush1.bf16.msra.mxu0 %v5999_v38  ;;  %3748 = vmatpush1.bf16.msra.mxu1 %v6002_v4  ;;  %v6083_v38 = vld [vmem:[%s8472_s7 + $0x120] ss:$16 sps:$4 sm:$0xff]   ;;  %v6086_v4 = vld [vmem:[%s8472_s7 + $0x128] ss:$16 sps:$4 sm:$0xff]  }
 0x1ff   :  { %3667 = vmatprep.subr.bf16.mxu0 %v6007_v32  ;;  %3749 = vmatprep.subr.bf16.mxu1 %v6010_v43  ;;  %v6091_v32 = vld [vmem:[%s8472_s7 + $0x144] ss:$16 sps:$4 sm:$0xff]   ;;  %v6094_v43 = vld [vmem:[%s8472_s7 + $0x14c] ss:$16 sps:$4 sm:$0xff]  }
 0x202   :  { %3668 = vmatpush1.bf16.msra.mxu0 %v6005_v55  ;;  %3750 = vmatpush1.bf16.msra.mxu1 %v6008_v44  ;;  %v6089_v55 = vld [vmem:[%s8472_s7 + $0x140] ss:$16 sps:$4 sm:$0xff]   ;;  %v6092_v44 = vld [vmem:[%s8472_s7 + $0x148] ss:$16 sps:$4 sm:$0xff]  }
 0x203   :  { %3669 = vmatprep.subr.bf16.mxu0 %v6013_v27  ;;  %3751 = vmatprep.subr.bf16.mxu1 %v6016_v14  ;;  %v6097_v27 = vld [vmem:[%s8472_s7 + $0x164] ss:$16 sps:$4 sm:$0xff]   ;;  %v6100_v14 = vld [vmem:[%s8472_s7 + $0x16c] ss:$16 sps:$4 sm:$0xff]  }
 0x206   :  { %3670 = vmatpush1.bf16.msra.mxu0 %v6011_v12  ;;  %3752 = vmatpush1.bf16.msra.mxu1 %v6014_v53  ;;  %v6095_v12 = vld [vmem:[%s8472_s7 + $0x160] ss:$16 sps:$4 sm:$0xff]   ;;  %v6098_v53 = vld [vmem:[%s8472_s7 + $0x168] ss:$16 sps:$4 sm:$0xff]  }
 0x207   :  { %3671 = vmatprep.subr.bf16.mxu0 %v6019_v36  ;;  %3753 = vmatprep.subr.bf16.mxu1 %v6022_v41  ;;  %v6106_v36 = vld [vmem:[%s8472_s7 + $0x18c] ss:$16 sps:$4 sm:$0xff]   ;;  %v6101_v41 = vld [vmem:[%s8472_s7 + $0x180] ss:$16 sps:$4 sm:$0xff]  }
 0x20a   :  { %3672 = vmatpush1.bf16.msra.mxu0 %v6017_v9  ;;  %3754 = vmatpush1.bf16.msra.mxu1 %v6020_v10  ;;  %v6104_v9 = vld [vmem:[%s8472_s7 + $0x188] ss:$16 sps:$4 sm:$0xff]   ;;  %v6109_v10 = vld [vmem:[%s8472_s7 + $0x1a4] ss:$16 sps:$4 sm:$0xff]  }
 0x20b   :  { %3673 = vmatprep.subr.bf16.mxu0 %v6025_v47  ;;  %3755 = vmatprep.subr.bf16.mxu1 %v6028_v25  ;;  %v6107_v47 = vld [vmem:[%s8472_s7 + $0x1a0] ss:$16 sps:$4 sm:$0xff]   ;;  %v6110_v25 = vld [vmem:[%s8472_s7 + $0x1a8] ss:$16 sps:$4 sm:$0xff]  }
 0x20e   :  { %3674 = vmatpush1.bf16.msra.mxu0 %v6023_v15  ;;  %3756 = vmatpush1.bf16.msra.mxu1 %v6026_v29  ;;  %v6115_v15 = vld [vmem:[%s8472_s7 + $0x1c4] ss:$16 sps:$4 sm:$0xff]   ;;  %v6118_v29 = vld [vmem:[%s8472_s7 + $0x1cc] ss:$16 sps:$4 sm:$0xff]  }
 0x20f   :  { %4564 = vmatprep.subr.bf16.mxu0 %v6031_v58  ;;  %4646 = vmatprep.subr.bf16.mxu1 %v6034_v18  ;;  %v6116_v58 = vld [vmem:[%s8472_s7 + $0x1c8] ss:$16 sps:$4 sm:$0xff]   ;;  %v6121_v18 = vld [vmem:[%s8472_s7 + $0x1e4] ss:$16 sps:$4 sm:$0xff]  }
 0x211   :  { %3676 = vmatmul.mubr.bf16.vlgmr.msra.gmra.mrb[4].mxu0 %v2810_v20  ;;  %3758 = vmatmul.mubr.bf16.vlgmr.msra.gmra.mrb[4].mxu1 %v2810_v20  ;;  %v6122_v20 = vld [vmem:[%s8472_s7 + $0x1e8] ss:$16 sps:$4 sm:$0xff]  }
 0x212   :  { %4565 = vmatpush1.bf16.msra.mxu0 %v6029_v8  ;;  %4647 = vmatpush1.bf16.msra.mxu1 %v6032_v23  ;;  %v6124_v8 = vld [vmem:[%s8472_s7 + $0x1ec] ss:$16 sps:$4 sm:$0xff]   ;;  %v6119_v23 = vld [vmem:[%s8472_s7 + $0x1e0] ss:$16 sps:$4 sm:$0xff]  }
 0x213   :  { %4566 = vmatprep.subr.bf16.mxu0 %v6037_v6  ;;  %4648 = vmatprep.subr.bf16.mxu1 %v6040_v40  ;;  %v6127_v6 = vld [vmem:[%s8472_s7 + $0x204] ss:$16 sps:$4 sm:$0xff]   ;;  %v6130_v40 = vld [vmem:[%s8472_s7 + $0x20c] ss:$16 sps:$4 sm:$0xff]  }
 0x216   :  { %4567 = vmatpush1.bf16.msra.mxu0 %v6035_v45  ;;  %4649 = vmatpush1.bf16.msra.mxu1 %v6038_v57  ;;  %v8148_v45 = vld [vmem:[%s8471_s6] sm:$0xf] }
 0x217   :  { %4568 = vmatprep.subr.bf16.mxu0 %v6043_v42  ;;  %4650 = vmatprep.subr.bf16.mxu1 %v6046_v34  ;;  %v2945_v57 = vrot.slane %v8148_v45, %v6472_v48  ;;  %v2949_v42 = vrot.slane %v8148_v45, %v8514_v51  ;;  %v2957_v34 = vrot.slane %v8148_v45, %v6484_v54 }
 0x21a   :  { %4569 = vmatpush1.bf16.msra.mxu0 %v6041_v21  ;;  %4651 = vmatpush1.bf16.msra.mxu1 %v6044_v61 }
 0x21b   :  { %4570 = vmatprep.subr.bf16.mxu0 %v6049_v11  ;;  %4652 = vmatprep.subr.bf16.mxu1 %v6052_v16 }
 0x21e   :  { %4571 = vmatpush1.bf16.msra.mxu0 %v6047_v28  ;;  %4653 = vmatpush1.bf16.msra.mxu1 %v6050_v63 }
 0x21f   :  { %4572 = vmatprep.subr.bf16.mxu0 %v6055_v24  ;;  %4654 = vmatprep.subr.bf16.mxu1 %v6058_v13 }
 0x222   :  { %4573 = vmatpush1.bf16.msra.mxu0 %v6053_v56  ;;  %4655 = vmatpush1.bf16.msra.mxu1 %v6056_v1 }
 0x223   :  { %4574 = vmatprep.subr.bf16.mxu0 %v6061_v22  ;;  %4656 = vmatprep.subr.bf16.mxu1 %v6064_v17 }
 0x226   :  { %4575 = vmatpush1.bf16.msra.mxu0 %v6059_v50  ;;  %4657 = vmatpush1.bf16.msra.mxu1 %v6062_v46 }
 0x227   :  { %4576 = vmatprep.subr.bf16.mxu0 %v6067_v35  ;;  %4658 = vmatprep.subr.bf16.mxu1 %v6070_v39  ;;  %v6125_v39 = vld [vmem:[%s8472_s7 + $0x200] ss:$16 sps:$4 sm:$0xff]  }
 0x22a   :  { %4577 = vmatpush1.bf16.msra.mxu0 %v6065_v37  ;;  %4659 = vmatpush1.bf16.msra.mxu1 %v6068_v7  ;;  %v6128_v37 = vld [vmem:[%s8472_s7 + $0x208] ss:$16 sps:$4 sm:$0xff]  }
 0x22b   :  { %4578 = vmatprep.subr.bf16.mxu0 %v6073_v49  ;;  %4660 = vmatprep.subr.bf16.mxu1 %v6076_v26  ;;  %v6133_v49 = vld [vmem:[%s8472_s7 + $0x224] ss:$16 sps:$4 sm:$0xff]   ;;  %v6136_v26 = vld [vmem:[%s8472_s7 + $0x22c] ss:$16 sps:$4 sm:$0xff]  }
 0x22e   :  { %4579 = vmatpush1.bf16.msra.mxu0 %v6071_v0  ;;  %4661 = vmatpush1.bf16.msra.mxu1 %v6074_v2  ;;  %v6131_v2 = vld [vmem:[%s8472_s7 + $0x220] ss:$16 sps:$4 sm:$0xff]  }
 0x22f   :  { %4580 = vmatprep.subr.bf16.mxu0 %v6079_v30  ;;  %4662 = vmatprep.subr.bf16.mxu1 %v6082_v3  ;;  %v6134_v30 = vld [vmem:[%s8472_s7 + $0x228] ss:$16 sps:$4 sm:$0xff]   ;;  %v6139_v3 = vld [vmem:[%s8472_s7 + $0x244] ss:$16 sps:$4 sm:$0xff]  }
 0x232   :  { %4581 = vmatpush1.bf16.msra.mxu0 %v6077_v62  ;;  %4663 = vmatpush1.bf16.msra.mxu1 %v6080_v60  ;;  %v6142_v62 = vld [vmem:[%s8472_s7 + $0x24c] ss:$16 sps:$4 sm:$0xff]   ;;  %v6137_v60 = vld [vmem:[%s8472_s7 + $0x240] ss:$16 sps:$4 sm:$0xff]  }
 0x233   :  { %4582 = vmatprep.subr.bf16.mxu0 %v6085_v33  ;;  %4664 = vmatprep.subr.bf16.mxu1 %v6088_v31  ;;  %v6140_v33 = vld [vmem:[%s8472_s7 + $0x248] ss:$16 sps:$4 sm:$0xff]   ;;  %v6145_v31 = vld [vmem:[%s8472_s7 + $0x264] ss:$16 sps:$4 sm:$0xff]  }
 0x236   :  { %4583 = vmatpush1.bf16.msra.mxu0 %v6083_v38  ;;  %4665 = vmatpush1.bf16.msra.mxu1 %v6086_v4  ;;  %v6148_v38 = vld [vmem:[%s8472_s7 + $0x26c] ss:$16 sps:$4 sm:$0xff]   ;;  %v6143_v4 = vld [vmem:[%s8472_s7 + $0x260] ss:$16 sps:$4 sm:$0xff]  }
 0x237   :  { %4584 = vmatprep.subr.bf16.mxu0 %v6091_v32  ;;  %4666 = vmatprep.subr.bf16.mxu1 %v6094_v43  ;;  %v6146_v32 = vld [vmem:[%s8472_s7 + $0x268] ss:$16 sps:$4 sm:$0xff]   ;;  %v6151_v43 = vld [vmem:[%s8472_s7 + $0x284] ss:$16 sps:$4 sm:$0xff]  }
 0x23a   :  { %4585 = vmatpush1.bf16.msra.mxu0 %v6089_v55  ;;  %4667 = vmatpush1.bf16.msra.mxu1 %v6092_v44  ;;  %v6154_v55 = vld [vmem:[%s8472_s7 + $0x28c] ss:$16 sps:$4 sm:$0xff]   ;;  %v6149_v44 = vld [vmem:[%s8472_s7 + $0x280] ss:$16 sps:$4 sm:$0xff]  }
 0x23b   :  { %4586 = vmatprep.subr.bf16.mxu0 %v6097_v27  ;;  %4668 = vmatprep.subr.bf16.mxu1 %v6100_v14  ;;  %v6152_v27 = vld [vmem:[%s8472_s7 + $0x288] ss:$16 sps:$4 sm:$0xff]   ;;  %v6157_v14 = vld [vmem:[%s8472_s7 + $0x2a4] ss:$16 sps:$4 sm:$0xff]  }
 0x23e   :  { %4587 = vmatpush1.bf16.msra.mxu0 %v6095_v12  ;;  %4669 = vmatpush1.bf16.msra.mxu1 %v6098_v53  ;;  %v6160_v12 = vld [vmem:[%s8472_s7 + $0x2ac] ss:$16 sps:$4 sm:$0xff]   ;;  %v6155_v53 = vld [vmem:[%s8472_s7 + $0x2a0] ss:$16 sps:$4 sm:$0xff]  }
 0x23f   :  { %4588 = vmatprep.subr.bf16.mxu0 %v6103_v5  ;;  %4670 = vmatprep.subr.bf16.mxu1 %v6106_v36  ;;  %v6158_v5 = vld [vmem:[%s8472_s7 + $0x2a8] ss:$16 sps:$4 sm:$0xff]   ;;  %v6163_v36 = vld [vmem:[%s8472_s7 + $0x2c4] ss:$16 sps:$4 sm:$0xff]  }
 0x242   :  { %4589 = vmatpush1.bf16.msra.mxu0 %v6101_v41  ;;  %4671 = vmatpush1.bf16.msra.mxu1 %v6104_v9  ;;  %v6166_v41 = vld [vmem:[%s8472_s7 + $0x2cc] ss:$16 sps:$4 sm:$0xff]   ;;  %v6161_v9 = vld [vmem:[%s8472_s7 + $0x2c0] ss:$16 sps:$4 sm:$0xff]  }
 0x243   :  { %4590 = vmatprep.subr.bf16.mxu0 %v6109_v10  ;;  %4672 = vmatprep.subr.bf16.mxu1 %v6112_v59  ;;  %v6164_v10 = vld [vmem:[%s8472_s7 + $0x2c8] ss:$16 sps:$4 sm:$0xff]   ;;  %v6169_v59 = vld [vmem:[%s8472_s7 + $0x2e4] ss:$16 sps:$4 sm:$0xff]  }
 0x246   :  { %4591 = vmatpush1.bf16.msra.mxu0 %v6107_v47  ;;  %4673 = vmatpush1.bf16.msra.mxu1 %v6110_v25  ;;  %v6172_v47 = vld [vmem:[%s8472_s7 + $0x2ec] ss:$16 sps:$4 sm:$0xff]   ;;  %v6167_v25 = vld [vmem:[%s8472_s7 + $0x2e0] ss:$16 sps:$4 sm:$0xff]  }
 0x247   :  { %4592 = vmatprep.subr.bf16.mxu0 %v6115_v15  ;;  %4674 = vmatprep.subr.bf16.mxu1 %v6118_v29  ;;  %v6170_v15 = vld [vmem:[%s8472_s7 + $0x2e8] ss:$16 sps:$4 sm:$0xff]   ;;  %v6175_v29 = vld [vmem:[%s8472_s7 + $0x304] ss:$16 sps:$4 sm:$0xff]  }
 0x24a   :  { %4593 = vmatpush1.bf16.msra.mxu0 %v6113_v19  ;;  %4675 = vmatpush1.bf16.msra.mxu1 %v6116_v58  ;;  %v6178_v19 = vld [vmem:[%s8472_s7 + $0x30c] ss:$16 sps:$4 sm:$0xff]   ;;  %v6173_v58 = vld [vmem:[%s8472_s7 + $0x300] ss:$16 sps:$4 sm:$0xff]  }
 0x24b   :  { %4594 = vmatprep.subr.bf16.mxu0 %v6121_v18  ;;  %4676 = vmatprep.subr.bf16.mxu1 %v6124_v8  ;;  %v6176_v18 = vld [vmem:[%s8472_s7 + $0x308] ss:$16 sps:$4 sm:$0xff]   ;;  %v6181_v8 = vld [vmem:[%s8472_s7 + $0x324] ss:$16 sps:$4 sm:$0xff]  }
 0x24e   :  { %4595 = vmatpush1.bf16.msra.mxu0 %v6119_v23  ;;  %4677 = vmatpush1.bf16.msra.mxu1 %v6122_v20  ;;  %v6184_v23 = vld [vmem:[%s8472_s7 + $0x32c] ss:$16 sps:$4 sm:$0xff]   ;;  %v6179_v20 = vld [vmem:[%s8472_s7 + $0x320] ss:$16 sps:$4 sm:$0xff]  }
 0x24f   :  { %4605 = vmatprep.subr.bf16.mxu0 %v6127_v6  ;;  %4687 = vmatprep.subr.bf16.mxu1 %v6130_v40  ;;  %v6182_v6 = vld [vmem:[%s8472_s7 + $0x328] ss:$16 sps:$4 sm:$0xff]   ;;  %v6187_v40 = vld [vmem:[%s8472_s7 + $0x344] ss:$16 sps:$4 sm:$0xff]  }
 0x2e4   :  { %v3677_v21 = vpop.f32.mrb[4].mxu0  ;;  %v8156_v61 = vpop.f32.mrb[4].mxu1 }
 0x2e5   :  { %v5611_v11 = vadd.f32 %v3677_v21, %v2945_v57  ;;  %v3679_v16 = vpop.f32.mrb[5].mxu0  ;;  %v3761_v28 = vpop.f32.mrb[5].mxu1  ;;  %v6190_v57 = vld [vmem:[%s8472_s7 + $0x34c] ss:$16 sps:$4 sm:$0xff]   ;;  %v6193_v21 = vld [vmem:[%s8472_s7 + $0x364] ss:$16 sps:$4 sm:$0xff]  }
 0x2e6   :  { %v5612_v63 = vadd.f32 %v3679_v16, %v2949_v42  ;;  %v5614_v24 = vadd.f32 %v3761_v28, %v2957_v34  ;;  %v3681_v13 = vpop.f32.mrb[6].mxu0  ;;  %v3763_v56 = vpop.f32.mrb[6].mxu1  ;;  %v6185_v42 = vld [vmem:[%s8472_s7 + $0x340] ss:$16 sps:$4 sm:$0xff]   ;;  %v6188_v34 = vld [vmem:[%s8472_s7 + $0x348] ss:$16 sps:$4 sm:$0xff]  }
 0x2e7   :  { %v3766_v1 = vmax.f32 %v5611_v11, 0.0  ;;  %v3682_v22 = vpop.f32.mrb[7].mxu0  ;;  %v3764_v17 = vpop.f32.mrb[7].mxu1  ;;  %v6196_v11 = vld [vmem:[%s8472_s7 + $0x36c] ss:$16 sps:$4 sm:$0xff]  }
 0x2e8   :  { %v3767_v50 = vmax.f32 %v5612_v63, 0.0  ;;  %v3769_v46 = vmax.f32 %v5614_v24, 0.0  ;;  %v6191_v16 = vld [vmem:[%s8472_s7 + $0x360] ss:$16 sps:$4 sm:$0xff]   ;;  %v6194_v28 = vld [vmem:[%s8472_s7 + $0x368] ss:$16 sps:$4 sm:$0xff]  }
 0x2e9   :  { %v3770_v7 = vpack.c.bf16 %v3766_v1, %v3766_v1  ;;  %v6199_v63 = vld [vmem:[%s8472_s7 + $0x384] ss:$16 sps:$4 sm:$0xff]   ;;  %v6202_v24 = vld [vmem:[%s8472_s7 + $0x38c] ss:$16 sps:$4 sm:$0xff]   ;;  %v6197_v13 = vld [vmem:[%s8472_s7 + $0x380] ss:$16 sps:$4 sm:$0xff]  }
 0x2ea   :  { %v3771_v35 = vpack.c.bf16 %v3767_v50, %v3767_v50  ;;  %v3773_v0 = vpack.c.bf16 %v3769_v46, %v3769_v46  ;;  %v6200_v56 = vld [vmem:[%s8472_s7 + $0x388] ss:$16 sps:$4 sm:$0xff]   ;;  %v6205_v1 = vld [vmem:[%s8472_s7 + $0x3a4] ss:$16 sps:$4 sm:$0xff]   ;;  %v6208_v22 = vld [vmem:[%s8472_s7 + $0x3ac] ss:$16 sps:$4 sm:$0xff]   ;;  %v2953_v46 = vrot.slane %v8148_v45, %v6479_v52 }
 0x2eb   :  { %v6203_v17 = vld [vmem:[%s8472_s7 + $0x3a0] ss:$16 sps:$4 sm:$0xff]   ;;  %v6206_v50 = vld [vmem:[%s8472_s7 + $0x3a8] ss:$16 sps:$4 sm:$0xff]  }
 0x2ec   :  { %4596 = vmatprep.mubr.bf16.mxu0 %v3771_v35  ;;  %4678 = vmatprep.mubr.bf16.mxu1 %v3771_v35  ;;  %v6211_v35 = vld [vmem:[%s8472_s7 + $0x3c4] ss:$16 sps:$4 sm:$0xff]   ;;  %v6212_v45 = vld [vmem:[%s8472_s7 + $0x3c8] ss:$16 sps:$4 sm:$0xff]  }
 0x2ed   :  { %4597 = vmatmul.mubr.bf16.vlgmr.msra.gmra.mrb[8].mxu0 %v3770_v7  ;;  %4679 = vmatmul.mubr.bf16.vlgmr.msra.gmra.mrb[8].mxu1 %v3770_v7  ;;  %v5613_v7 = vadd.f32 %v8156_v61, %v2953_v46  ;;  %v6218_v61 = vld [vmem:[%s8472_s7 + $0x3e8] ss:$16 sps:$4 sm:$0xff]  }
 0x2ee   :  { %4606 = vmatpush1.bf16.msra.mxu0 %v6125_v39  ;;  %4688 = vmatpush1.bf16.msra.mxu1 %v6128_v37  ;;  %v6214_v39 = vld [vmem:[%s8472_s7 + $0x3cc] ss:$16 sps:$4 sm:$0xff]   ;;  %v6209_v37 = vld [vmem:[%s8472_s7 + $0x3c0] ss:$16 sps:$4 sm:$0xff]  }
 0x2ef   :  { %4637 = vmatprep.mubr.bf16.mxu0 %v3773_v0  ;;  %4719 = vmatprep.mubr.bf16.mxu1 %v3773_v0  ;;  %v6215_v0 = vld [vmem:[%s8472_s7 + $0x3e0] ss:$16 sps:$4 sm:$0xff]  }
 0x2f0   :  { %4607 = vmatprep.subr.bf16.mxu0 %v6133_v49  ;;  %4689 = vmatprep.subr.bf16.mxu1 %v6136_v26  ;;  %v6217_v49 = vld [vmem:[%s8472_s7 + $0x3e4] ss:$16 sps:$4 sm:$0xff]   ;;  %v6220_v26 = vld [vmem:[%s8472_s7 + $0x3ec] ss:$16 sps:$4 sm:$0xff]  }
 0x2f2   :  { %4608 = vmatpush1.bf16.msra.mxu0 %v6131_v2  ;;  %4690 = vmatpush1.bf16.msra.mxu1 %v6134_v30  ;;  %v3768_v2 = vmax.f32 %v5613_v7, 0.0  ;;  %v6221_v30 = vld [vmem:[%s8474_s9 + $0x40] sm:$0xff]  }
 0x2f3   :  { %4609 = vmatprep.subr.bf16.mxu0 %v6139_v3  ;;  %4691 = vmatprep.subr.bf16.mxu1 %v6142_v62  ;;  %v6222_v3 = vld [vmem:[%s8474_s9 + $0xc0] sm:$0xff]  }
 0x2f4   :  { %v6223_v62 = vld [vmem:[%s8474_s9] sm:$0xff]  }
 0x2f6   :  { %4610 = vmatpush1.bf16.msra.mxu0 %v6137_v60  ;;  %4692 = vmatpush1.bf16.msra.mxu1 %v6140_v33  ;;  %v6224_v60 = vld [vmem:[%s8474_s9 + $0x80] sm:$0xff]   ;;  %v3772_v33 = vpack.c.bf16 %v3768_v2, %v3768_v2 }
 0x2f7   :  { %4611 = vmatprep.subr.bf16.mxu0 %v6145_v31  ;;  %4693 = vmatprep.subr.bf16.mxu1 %v6148_v38  ;;  %v6225_v31 = vld [vmem:[%s8474_s9 + $0x48] sm:$0xff]  }
 0x2f8   :  { %v6226_v38 = vld [vmem:[%s8474_s9 + $0xc8] sm:$0xff]  }
 0x2fa   :  { %4612 = vmatpush1.bf16.msra.mxu0 %v6143_v4  ;;  %4694 = vmatpush1.bf16.msra.mxu1 %v6146_v32  ;;  %v6227_v4 = vld [vmem:[%s8474_s9 + $0x8] sm:$0xff]  }
 0x2fb   :  { %4613 = vmatprep.subr.bf16.mxu0 %v6151_v43  ;;  %4695 = vmatprep.subr.bf16.mxu1 %v6154_v55  ;;  %v6228_v32 = vld [vmem:[%s8474_s9 + $0x88] sm:$0xff]   ;;  %v6229_v43 = vld [vmem:[%s8474_s9 + $0x50] sm:$0xff]  }
 0x2fc   :  { %v6230_v55 = vld [vmem:[%s8474_s9 + $0xd0] sm:$0xff]  }
 0x2fe   :  { %4614 = vmatpush1.bf16.msra.mxu0 %v6149_v44  ;;  %4696 = vmatpush1.bf16.msra.mxu1 %v6152_v27  ;;  %v6231_v44 = vld [vmem:[%s8474_s9 + $0x10] sm:$0xff]  }
 0x2ff   :  { %4615 = vmatprep.subr.bf16.mxu0 %v6157_v14  ;;  %4697 = vmatprep.subr.bf16.mxu1 %v6160_v12  ;;  %v6232_v27 = vld [vmem:[%s8474_s9 + $0x90] sm:$0xff]   ;;  %v6233_v14 = vld [vmem:[%s8474_s9 + $0x58] sm:$0xff]  }
 0x300   :  { %v6234_v12 = vld [vmem:[%s8474_s9 + $0xd8] sm:$0xff]  }
 0x302   :  { %4616 = vmatpush1.bf16.msra.mxu0 %v6155_v53  ;;  %4698 = vmatpush1.bf16.msra.mxu1 %v6158_v5  ;;  %v6235_v53 = vld [vmem:[%s8474_s9 + $0x18] sm:$0xff]  }
 0x303   :  { %4617 = vmatprep.subr.bf16.mxu0 %v6163_v36  ;;  %4699 = vmatprep.subr.bf16.mxu1 %v6166_v41  ;;  %v6236_v5 = vld [vmem:[%s8474_s9 + $0x98] sm:$0xff]   ;;  %v6237_v36 = vld [vmem:[%s8474_s9 + $0x60] sm:$0xff]  }
 0x304   :  { %v6238_v41 = vld [vmem:[%s8474_s9 + $0xe0] sm:$0xff]  }
 0x306   :  { %4618 = vmatpush1.bf16.msra.mxu0 %v6161_v9  ;;  %4700 = vmatpush1.bf16.msra.mxu1 %v6164_v10  ;;  %v6239_v9 = vld [vmem:[%s8474_s9 + $0x20] sm:$0xff]  }
 0x307   :  { %4619 = vmatprep.subr.bf16.mxu0 %v6169_v59  ;;  %4701 = vmatprep.subr.bf16.mxu1 %v6172_v47  ;;  %v6240_v10 = vld [vmem:[%s8474_s9 + $0xa0] sm:$0xff]   ;;  %v6241_v59 = vld [vmem:[%s8474_s9 + $0x68] sm:$0xff]  }
 0x308   :  { %v6242_v47 = vld [vmem:[%s8474_s9 + $0xe8] sm:$0xff]  }
 0x30a   :  { %4620 = vmatpush1.bf16.msra.mxu0 %v6167_v25  ;;  %4702 = vmatpush1.bf16.msra.mxu1 %v6170_v15  ;;  %v6243_v25 = vld [vmem:[%s8474_s9 + $0x28] sm:$0xff]  }
 0x30b   :  { %4621 = vmatprep.subr.bf16.mxu0 %v6175_v29  ;;  %4703 = vmatprep.subr.bf16.mxu1 %v6178_v19  ;;  %v6244_v15 = vld [vmem:[%s8474_s9 + $0xa8] sm:$0xff]   ;;  %v6245_v29 = vld [vmem:[%s8474_s9 + $0x70] sm:$0xff]  }
 0x30c   :  { %v6246_v19 = vld [vmem:[%s8474_s9 + $0xf0] sm:$0xff]  }
 0x30e   :  { %4622 = vmatpush1.bf16.msra.mxu0 %v6173_v58  ;;  %4704 = vmatpush1.bf16.msra.mxu1 %v6176_v18  ;;  %v6247_v58 = vld [vmem:[%s8474_s9 + $0x30] sm:$0xff]  }
 0x30f   :  { %4623 = vmatprep.subr.bf16.mxu0 %v6181_v8  ;;  %4705 = vmatprep.subr.bf16.mxu1 %v6184_v23  ;;  %v6248_v18 = vld [vmem:[%s8474_s9 + $0xb0] sm:$0xff]   ;;  %v6249_v8 = vld [vmem:[%s8474_s9 + $0x78] sm:$0xff]  }
 0x310   :  { %v6250_v23 = vld [vmem:[%s8474_s9 + $0xf8] sm:$0xff]  }
 0x312   :  { %4624 = vmatpush1.bf16.msra.mxu0 %v6179_v20  ;;  %4706 = vmatpush1.bf16.msra.mxu1 %v6182_v6  ;;  %v6251_v20 = vld [vmem:[%s8474_s9 + $0x38] sm:$0xff]  }
 0x313   :  { %4625 = vmatprep.subr.bf16.mxu0 %v6187_v40  ;;  %4707 = vmatprep.subr.bf16.mxu1 %v6190_v57  ;;  %v6252_v6 = vld [vmem:[%s8474_s9 + $0xb8] sm:$0xff]   ;;  %v3902_v40 = vld [vmem:[%s8473_s8] sm:$0xf] }
 0x314   :  { %v3907_v57 = vrot.slane %v3902_v40, %v6472_v48 }
 0x316   :  { %4626 = vmatpush1.bf16.msra.mxu0 %v6185_v42  ;;  %4708 = vmatpush1.bf16.msra.mxu1 %v6188_v34  ;;  %v3915_v42 = vrot.slane %v3902_v40, %v6479_v52  ;;  %v3911_v34 = vrot.slane %v3902_v40, %v8514_v51 }
 0x317   :  { %4627 = vmatprep.subr.bf16.mxu0 %v6193_v21  ;;  %4709 = vmatprep.subr.bf16.mxu1 %v6196_v11  ;;  %v3919_v21 = vrot.slane %v3902_v40, %v6484_v54 }
 0x31a   :  { %4628 = vmatpush1.bf16.msra.mxu0 %v6191_v16  ;;  %4710 = vmatpush1.bf16.msra.mxu1 %v6194_v28 }
 0x31b   :  { %4629 = vmatprep.subr.bf16.mxu0 %v6199_v63  ;;  %4711 = vmatprep.subr.bf16.mxu1 %v6202_v24 }
 0x31e   :  { %4630 = vmatpush1.bf16.msra.mxu0 %v6197_v13  ;;  %4712 = vmatpush1.bf16.msra.mxu1 %v6200_v56 }
 0x31f   :  { %4631 = vmatprep.subr.bf16.mxu0 %v6205_v1  ;;  %4713 = vmatprep.subr.bf16.mxu1 %v6208_v22 }
 0x322   :  { %4632 = vmatpush1.bf16.msra.mxu0 %v6203_v17  ;;  %4714 = vmatpush1.bf16.msra.mxu1 %v6206_v50 }
 0x323   :  { %4633 = vmatprep.subr.bf16.mxu0 %v6211_v35  ;;  %4715 = vmatprep.subr.bf16.mxu1 %v6214_v39 }
 0x326   :  { %4634 = vmatpush1.bf16.msra.mxu0 %v6209_v37  ;;  %4716 = vmatpush1.bf16.msra.mxu1 %v6212_v45 }
 0x327   :  { %4635 = vmatprep.subr.bf16.mxu0 %v6217_v49  ;;  %4717 = vmatprep.subr.bf16.mxu1 %v6220_v26  ;;  %v5530_v26 = vld [vmem:[%s8475_s10] ss:$0 sm:$0xff] }
 0x32a   :  { %4636 = vmatpush1.bf16.msra.mxu0 %v6215_v0  ;;  %4718 = vmatpush1.bf16.msra.mxu1 %v6218_v61 }
 0x32b   :  { %5563 = vmatprep.subr.bf16.mxu0 %v6221_v30  ;;  %5585 = vmatprep.subr.bf16.mxu1 %v6222_v3 }
 0x32d   :  { %4638 = vmatmul.mubr.bf16.vlgmr.msra.gmra.mrb[8].mxu0 %v3772_v33  ;;  %4720 = vmatmul.mubr.bf16.vlgmr.msra.gmra.mrb[8].mxu1 %v3772_v33 }
 0x32e   :  { %5564 = vmatpush3.bf16.msra.mxu0 %v6223_v62  ;;  %5586 = vmatpush3.bf16.msra.mxu1 %v6224_v60 }
 0x32f   :  { %5565 = vmatprep.subr.bf16.mxu0 %v6225_v31  ;;  %5587 = vmatprep.subr.bf16.mxu1 %v6226_v38 }
 0x332   :  { %5566 = vmatpush3.bf16.msra.mxu0 %v6227_v4  ;;  %5588 = vmatpush3.bf16.msra.mxu1 %v6228_v32 }
 0x333   :  { %5567 = vmatprep.subr.bf16.mxu0 %v6229_v43  ;;  %5589 = vmatprep.subr.bf16.mxu1 %v6230_v55 }
 0x336   :  { %5568 = vmatpush3.bf16.msra.mxu0 %v6231_v44  ;;  %5590 = vmatpush3.bf16.msra.mxu1 %v6232_v27 }
 0x337   :  { %5569 = vmatprep.subr.bf16.mxu0 %v6233_v14  ;;  %5591 = vmatprep.subr.bf16.mxu1 %v6234_v12 }
 0x33a   :  { %5570 = vmatpush3.bf16.msra.mxu0 %v6235_v53  ;;  %5592 = vmatpush3.bf16.msra.mxu1 %v6236_v5 }
 0x33b   :  { %5571 = vmatprep.subr.bf16.mxu0 %v6237_v36  ;;  %5593 = vmatprep.subr.bf16.mxu1 %v6238_v41 }
 0x33e   :  { %5572 = vmatpush3.bf16.msra.mxu0 %v6239_v9  ;;  %5594 = vmatpush3.bf16.msra.mxu1 %v6240_v10 }
 0x33f   :  { %5573 = vmatprep.subr.bf16.mxu0 %v6241_v59  ;;  %5595 = vmatprep.subr.bf16.mxu1 %v6242_v47 }
 0x342   :  { %5574 = vmatpush3.bf16.msra.mxu0 %v6243_v25  ;;  %5596 = vmatpush3.bf16.msra.mxu1 %v6244_v15 }
 0x343   :  { %5575 = vmatprep.subr.bf16.mxu0 %v6245_v29  ;;  %5597 = vmatprep.subr.bf16.mxu1 %v6246_v19 }
 0x346   :  { %5576 = vmatpush3.bf16.msra.mxu0 %v6247_v58  ;;  %5598 = vmatpush3.bf16.msra.mxu1 %v6248_v18 }
 0x347   :  { %5577 = vmatprep.subr.bf16.mxu0 %v6249_v8  ;;  %5599 = vmatprep.subr.bf16.mxu1 %v6250_v23 }
 0x34a   :  { %5578 = vmatpush3.bf16.msra.mxu0 %v6251_v20  ;;  %5600 = vmatpush3.bf16.msra.mxu1 %v6252_v6 }
 0x400   :  { %v4639_v11 = vpop.f32.mrb[8].mxu0  ;;  %v4721_v16 = vpop.f32.mrb[8].mxu1 }
 0x401   :  { %v5615_v28 = vadd.f32 %v4639_v11, %v3907_v57  ;;  %v5617_v63 = vadd.f32 %v4721_v16, %v3915_v42  ;;  %v4641_v24 = vpop.f32.mrb[9].mxu0  ;;  %v4723_v13 = vpop.f32.mrb[9].mxu1 }
 0x402   :  { %v5616_v56 = vadd.f32 %v4641_v24, %v3911_v34  ;;  %v5618_v1 = vadd.f32 %v4723_v13, %v3919_v21  ;;  %v4643_v22 = vpop.f32.mrb[10].mxu0  ;;  %v4725_v17 = vpop.f32.mrb[10].mxu1 }
 0x403   :  { %v4728_v50 = vmax.f32 %v5615_v28, 0.0  ;;  %v4730_v46 = vmax.f32 %v5617_v63, 0.0  ;;  %v4644_v35 = vpop.f32.mrb[11].mxu0  ;;  %v4726_v48 = vpop.f32.mrb[11].mxu1 }
 0x404   :  { %v4729_v39 = vmax.f32 %v5616_v56, 0.0  ;;  %v4731_v52 = vmax.f32 %v5618_v1, 0.0 }
 0x405   :  { %v4732_v45 = vpack.c.bf16 %v4728_v50, %v4728_v50  ;;  %v4734_v54 = vpack.c.bf16 %v4730_v46, %v4730_v46 }
 0x406   :  { %v4733_v37 = vpack.c.bf16 %v4729_v39, %v4729_v39  ;;  %v4735_v51 = vpack.c.bf16 %v4731_v52, %v4731_v52 }
 0x408   :  { %5031 = vmatprep.mubr.bf16.mxu0 %v4733_v37  ;;  %5071 = vmatprep.mubr.bf16.mxu1 %v4735_v51 }
 0x409   :  { %5032 = vmatmul.mubr.bf16.vlgmr.msra.gmra.mrb[12].mxu0 %v4732_v45  ;;  %5072 = vmatmul.mubr.bf16.vlgmr.msra.gmra.mrb[12].mxu1 %v4734_v54 }
 0x4dc   :  { %v5579_v7 = vpop.f32.mrb[12].mxu0  ;;  %v5601_v49 = vpop.f32.mrb[12].mxu1 }
 0x4dd   :  { %v5580_v0 = vpop.f32.mrb[13].mxu0  ;;  %v5602_v61 = vpop.f32.mrb[13].mxu1 }
 0x4de   :  { %v5581_v2 = vadd.f32 %v5580_v0, %v5579_v7  ;;  %v5603_v30 = vadd.f32 %v5602_v61, %v5601_v49  ;;  %v5582_v3 = vpop.f32.mrb[14].mxu0  ;;  %v5604_v62 = vpop.f32.mrb[14].mxu1 }
 0x4df   :  { %v5583_v60 = vpop.f32.mrb[15].mxu0  ;;  %v5605_v33 = vpop.f32.mrb[15].mxu1 }
 0x4e0   :  { %v5034_v31 = vadd.f32 %v5581_v2, %v5530_v26 }
 0x4e2   :  { %v5074_v38 = vadd.f32 %v5603_v30, %v5034_v31 }
 0x4e4   :  { %5079 = vst [vmem:[#allocation2] sm:$0x3] %v5074_v38 }
 0x4e5   :  { %6265 = shalt.err (!%p6262_p4)
}
 0x4e6   :  { %s6266_s17 = scalar_lea.hbm %s8476_s11, 32 }
 0x4e7   :  { %p6267_p5 = scmp.ne.s32.totalorder %s8476_s11, %s6266_s17  ;;  %p6270_p6 = scmp.lt.u32.totalorder %s6266_s17, %s8476_s11 }
 0x4e9   :  { %p6272_p7 = pnand %p6270_p6, %p6267_p5 }
 0x4eb   :  { %6275 = shalt.err (!%p6272_p7)
}
 0x4ec   :  { %5089 = dma.vmem_to_hbm [thread:$0]  %s5087_s14, 32, %s8476_s11, [#allocation3]  }
 0x4ed   :  { %6276 = dma.done.wait [#allocation3], 32  }
 0x4ee   :  { %6277 = vsyncadd [#allocation3], 4294967264 }
 0x4ef   :  { %5093 = vsyncpa [#allocation3], 1 }

</bundles_post_ra>
